<compile_context>
chip_gen: v5e
topology: v5e:2x2
jax: 0.10.0
libtpu: 0.0.40
codegen_flags: <defaults>
</compile_context>

<pallas_src>
import collections
import functools

import jax
import jax.numpy as jnp
from jax.experimental import pallas as pl
from jax.experimental.pallas import tpu as pltpu


def _round_up(x, m):
    return (x + m - 1) // m * m


LayerMeta = collections.namedtuple("LayerMeta", "kind K Kp N Np tk tn")


# ---------------------------------------------------------------------------
# Kernel 1: tiled matmul + bias (+ LeakyReLU).  bf16 operands, f32 accumulator.
# Grid = (M tiles, N tiles, K tiles); K is the innermost reduction axis.
# ---------------------------------------------------------------------------
def _matmul_bias_kernel(p_ref, w_ref, b_ref, o_ref, acc_ref, *, apply_leaky):
    @pl.when(pl.program_id(2) == 0)
    def _():
        acc_ref[...] = jnp.zeros_like(acc_ref)

    acc_ref[...] += jnp.dot(p_ref[...], w_ref[...],
                            preferred_element_type=jnp.float32)

    @pl.when(pl.program_id(2) == pl.num_programs(2) - 1)
    def _():
        y = acc_ref[...] + b_ref[...]
        if apply_leaky:
            y = jnp.where(y > 0, y, jnp.float32(0.2) * y)
        o_ref[...] = y.astype(o_ref.dtype)


def _matmul_bias(patches_bf16, w_bf16, bias_row, apply_leaky, tm, tn, tk):
    Mp, Kp = patches_bf16.shape
    _, Np = w_bf16.shape
    grid = (Mp // tm, Np // tn, Kp // tk)
    cost = pl.CostEstimate(
        flops=2 * Mp * Kp * Np,
        transcendentals=0,
        bytes_accessed=Mp * Kp * 2 + Kp * Np * 2 + Mp * Np * 4 + Np * 4,
    )
    return pl.pallas_call(
        functools.partial(_matmul_bias_kernel, apply_leaky=apply_leaky),
        out_shape=jax.ShapeDtypeStruct((Mp, Np), jnp.float32),
        grid_spec=pltpu.PrefetchScalarGridSpec(
            num_scalar_prefetch=0,
            grid=grid,
            in_specs=[
                pl.BlockSpec((tm, tk), lambda i, j, k: (i, k)),
                pl.BlockSpec((tk, tn), lambda i, j, k: (k, j)),
                pl.BlockSpec((1, tn), lambda i, j, k: (0, j)),
            ],
            out_specs=pl.BlockSpec((tm, tn), lambda i, j, k: (i, j)),
            scratch_shapes=[pltpu.VMEM((tm, tn), jnp.float32)],
        ),
        compiler_params=pltpu.CompilerParams(
            dimension_semantics=("parallel", "parallel", "arbitrary"),
            vmem_limit_bytes=32 * 1024 * 1024,
        ),
        cost_estimate=cost,
    )(patches_bf16, w_bf16, bias_row)


# ---------------------------------------------------------------------------
# Kernel 2: final Cout=1 conv as a VPU reduction (no MXU, no N padding to 128).
# ---------------------------------------------------------------------------
def _dot_reduce_kernel(p_ref, w_ref, b_ref, o_ref):
    p = p_ref[...].astype(jnp.float32)     # (tm, Kp)
    w = w_ref[...].astype(jnp.float32)     # (1, Kp)
    o_ref[...] = jnp.sum(p * w, axis=1, keepdims=True) + b_ref[...]


def _dot_reduce(patches_bf16, w_row_bf16, bias_11, tm):
    Mp, Kp = patches_bf16.shape
    cost = pl.CostEstimate(
        flops=2 * Mp * Kp,
        transcendentals=0,
        bytes_accessed=Mp * Kp * 2 + Kp * 2 + Mp * 4,
    )
    return pl.pallas_call(
        _dot_reduce_kernel,
        out_shape=jax.ShapeDtypeStruct((Mp, 1), jnp.float32),
        grid_spec=pltpu.PrefetchScalarGridSpec(
            num_scalar_prefetch=0,
            grid=(Mp // tm,),
            in_specs=[
                pl.BlockSpec((tm, Kp), lambda i: (i, 0)),
                pl.BlockSpec((1, Kp), lambda i: (0, 0)),
                pl.BlockSpec((1, 1), lambda i: (0, 0)),
            ],
            out_specs=pl.BlockSpec((tm, 1), lambda i: (i, 0)),
        ),
        compiler_params=pltpu.CompilerParams(
            dimension_semantics=("parallel",),
            vmem_limit_bytes=32 * 1024 * 1024,
        ),
        cost_estimate=cost,
    )(patches_bf16, w_row_bf16, bias_11)


# ---------------------------------------------------------------------------
# Parameter handling (one-time, hoisted out of the forward path).
# ---------------------------------------------------------------------------
def init_discriminator_params(num_classes, key):
    """Deterministic params matching the nn.Conv2d shapes in __init__ (OIHW)."""
    chans = [num_classes, 64, 128, 256, 512, 1]
    params = []
    for layer in range(5):
        cin, cout = chans[layer], chans[layer + 1]
        key, kw, kb = jax.random.split(key, 3)
        w = 0.05 * jax.random.normal(kw, (cout, cin, 4, 4), dtype=jnp.float32)
        b = 0.05 * jax.random.normal(kb, (cout,), dtype=jnp.float32)
        params.append((w, b))
    return params


def _select_tiles(K, N):
    # K: full-K block when small (layer 1: K=64 stays 64, no padding to 128),
    # otherwise 512-wide K tiles (deeper layers have K % 512 == 0 already).
    if K <= 512:
        tk, Kp = K, K
    else:
        tk = 512
        Kp = _round_up(K, tk)
    Np = _round_up(N, 128)
    tn = 256 if Np % 256 == 0 else 128   # fill the 256-wide MXU on v6e/v7x
    return tk, Kp, tn, Np


def prepare_discriminator_params(params):
    """OIHW -> (kh*kw*Cin, Cout) bf16, padded to the tile grid.  Run once."""
    weights, metas = [], []
    for (w, b) in params:
        cout, cin, kh, kw = w.shape
        K, N = kh * kw * cin, cout
        w_mat = jnp.transpose(w, (2, 3, 1, 0)).reshape(K, N)   # rows: (di*4+dj)*Cin+ci
        if N == 1:
            Kp = _round_up(K, 128)
            w_p = jnp.pad(w_mat.astype(jnp.bfloat16), ((0, Kp - K), (0, 0))).T  # (1, Kp)
            b_p = b.reshape(1, 1).astype(jnp.float32)
            metas.append(LayerMeta("vpu", K, Kp, N, 1, Kp, 1))
        else:
            tk, Kp, tn, Np = _select_tiles(K, N)
            w_p = jnp.pad(w_mat.astype(jnp.bfloat16), ((0, Kp - K), (0, Np - N)))
            b_p = jnp.pad(b.astype(jnp.float32), (0, Np - N)).reshape(1, Np)
            metas.append(LayerMeta("mxu", K, Kp, N, Np, tk, tn))
        weights.append((w_p, b_p))
    return weights, tuple(metas)


# ---------------------------------------------------------------------------
# Conv layer: im2col (plain-JAX glue) + Pallas matmul / reduction.
# ---------------------------------------------------------------------------
def _im2col(x_nhwc, k=4, stride=2, pad=1):
    B, H, W, C = x_nhwc.shape
    Ho = (H + 2 * pad - k) // stride + 1
    Wo = (W + 2 * pad - k) // stride + 1
    xp = jnp.pad(x_nhwc, ((0, 0), (pad, pad), (pad, pad), (0, 0)))
    cols = []
    for di in range(k):
        for dj in range(k):
            cols.append(xp[:, di:di + Ho * stride:stride, dj:dj + Wo * stride:stride, :])
    patches = jnp.stack(cols, axis=3).reshape(B * Ho * Wo, k * k * C)
    return patches, Ho, Wo


def _pick_tm(M):
    Mp0 = _round_up(M, 16)          # bf16 sublane packing
    tm = min(256, Mp0)
    return tm, _round_up(Mp0, tm)


def conv2d_s2_pallas(x_nhwc, w_p, b_p, meta, apply_leaky):
    """Conv2d(kernel=4, stride=2, padding=1) + optional LeakyReLU(0.2)."""
    B = x_nhwc.shape[0]
    patches, Ho, Wo = _im2col(x_nhwc.astype(jnp.bfloat16))
    M, K = patches.shape
    tm, Mp = _pick_tm(M)
    patches_p = jnp.pad(patches, ((0, Mp - M), (0, meta.Kp - K)))

    if meta.kind == "vpu":
        out = _dot_reduce(patches_p, w_p, b_p, tm)
        y = out[:M, :1]
        if apply_leaky:  # never taken for the final layer; kept for generality
            y = jnp.where(y > 0, y, 0.2 * y)
        return y.reshape(B, Ho, Wo, 1)

    out = _matmul_bias(patches_p, w_p, b_p, apply_leaky, tm, meta.tn, meta.tk)
    return out[:M, :meta.N].reshape(B, Ho, Wo, meta.N)


def discriminator_forward(x_nchw, prepared, metas):
    """Pallas forward pass.  Input NCHW (PyTorch convention), output NCHW."""
    x = jnp.transpose(x_nchw, (0, 2, 3, 1))                  # -> NHWC
    n_layers = len(metas)
    for layer, ((w_p, b_p), meta) in enumerate(zip(prepared, metas)):
        apply_leaky = layer < n_layers - 1                   # conv5 has no LeakyReLU
        x = conv2d_s2_pallas(x, w_p, b_p, meta, apply_leaky)
    return jnp.transpose(x, (0, 3, 1, 2))                    # -> NCHW


# ---------------------------------------------------------------------------
# References (pure JAX, lax.conv) replicating the PyTorch forward.
# ---------------------------------------------------------------------------
def _reference_forward(x_nchw, params, cast_bf16=False):
    x = x_nchw
    for layer, (w, b) in enumerate(params):
        xin = x.astype(jnp.bfloat16) if cast_bf16 else x
        win = w.astype(jnp.bfloat16) if cast_bf16 else w
        y = jax.lax.conv_general_dilated(
            xin, win, window_strides=(2, 2), padding=((1, 1), (1, 1)),
            dimension_numbers=("NCHW", "OIHW", "NCHW"),
            preferred_element_type=jnp.float32)
        y = y + b[None, :, None, None]
        if layer < 4:
            y = jnp.where(y > 0, y, 0.2 * y)
        x = y
    return x


if __name__ == "__main__":
    num_classes = 4
    key = jax.random.PRNGKey(0)
    key, kx = jax.random.split(key)
    # 32x32 spatial -> 16 -> 8 -> 4 -> 2 -> 1 through five stride-2 convs.
    x = jax.random.normal(kx, (2, num_classes, 32, 32), dtype=jnp.float32)

    params = init_discriminator_params(num_classes, key)
    weights, metas = prepare_discriminator_params(params)   # one-time prep

    fwd = jax.jit(functools.partial(discriminator_forward, metas=metas))
    out = jax.block_until_ready(fwd(x, weights))
    assert out.shape == (2, 1, 1, 1), out.shape

    # Structural check against a bf16-operand / f32-accumulation conv reference.
    ref_bf16 = jax.block_until_ready(_reference_forward(x, params, cast_bf16=True))
    assert jnp.allclose(out, ref_bf16, atol=1e-2, rtol=1e-2), "mismatch vs bf16 reference"

    # Sanity check against the full-f32 reference (loose: bf16 MXU operands).
    ref_f32 = jax.block_until_ready(_reference_forward(x, params, cast_bf16=False))
    rel = jnp.max(jnp.abs(out - ref_f32)) / (jnp.max(jnp.abs(ref_f32)) + 1e-6)
    assert rel < 3e-2, f"relative error vs f32 reference too large: {rel}"

    print("KERNEL_OK")
</pallas_src>

<mosaic_0001>
module attributes {stable_mosaic.version = 11 : i64} {
  func.func @_matmul_bias_kernel(%arg0: i32, %arg1: i32, %arg2: i32, %arg3: memref<256x64xbf16, #tpu.memory_space<vmem>>, %arg4: memref<64x128xbf16, #tpu.memory_space<vmem>>, %arg5: memref<1x128xf32, #tpu.memory_space<vmem>>, %arg6: memref<256x128xf32, #tpu.memory_space<vmem>>, %arg7: memref<256x128xf32, #tpu.memory_space<vmem>>) attributes {dimension_semantics = [#tpu.dimension_semantics<parallel>, #tpu.dimension_semantics<parallel>, #tpu.dimension_semantics<arbitrary>], iteration_bounds = array<i64: 2, 1, 1>, scalar_prefetch = 0 : i64, scratch_operands = 1 : i64, tpu.core_type = #tpu.core_type<tc>, window_params = [{transform_indices = @transform_0, window_bounds = array<i64: 256, 64>}, {transform_indices = @transform_1, window_bounds = array<i64: 64, 128>}, {transform_indices = @transform_2, window_bounds = array<i64: 1, 128>}, {transform_indices = @transform_3, window_bounds = array<i64: 256, 128>}]} {
    %c0_i32 = arith.constant 0 : i32
    %0 = arith.cmpi eq, %arg2, %c0_i32 : i32
    %1 = arith.extui %0 : i1 to i32
    %c0_i32_0 = arith.constant 0 : i32
    %2 = arith.cmpi ne, %1, %c0_i32_0 : i32
    scf.if %2 {
      %cst_10 = arith.constant 0.000000e+00 : f32
      %12 = vector.broadcast %cst_10 : f32 to vector<256x128xf32>
      %c0_11 = arith.constant 0 : index
      %c0_12 = arith.constant 0 : index
      %13 = vector.load %arg7[%c0_11, %c0_12] : memref<256x128xf32, #tpu.memory_space<vmem>>, vector<256x128xf32>
      tpu.vector_store %arg7[%c0_11, %c0_12], %12 {strides = array<i32>} : memref<256x128xf32, #tpu.memory_space<vmem>>, vector<256x128xf32>,
    } else {
    }
    %c0 = arith.constant 0 : index
    %c0_1 = arith.constant 0 : index
    %3 = vector.load %arg7[%c0, %c0_1] : memref<256x128xf32, #tpu.memory_space<vmem>>, vector<256x128xf32>
    %c0_2 = arith.constant 0 : index
    %c0_3 = arith.constant 0 : index
    %4 = vector.load %arg3[%c0_2, %c0_3] : memref<256x64xbf16, #tpu.memory_space<vmem>>, vector<256x64xbf16>
    %c0_4 = arith.constant 0 : index
    %c0_5 = arith.constant 0 : index
    %5 = vector.load %arg4[%c0_4, %c0_5] : memref<64x128xbf16, #tpu.memory_space<vmem>>, vector<64x128xbf16>
    %cst = arith.constant dense<0.000000e+00> : vector<256x128xf32>
    %6 = tpu.matmul %4, %5, %cst {dimension_numbers = #tpu.dot_dimension_numbers<[1], [0], [0], [1], [0, 0, 1, 1], [], []>} : vector<256x64xbf16>, vector<64x128xbf16>, vector<256x128xf32> -> vector<256x128xf32>
    %7 = arith.addf %3, %6 : vector<256x128xf32>
    %c0_6 = arith.constant 0 : index
    %c0_7 = arith.constant 0 : index
    %8 = vector.load %arg7[%c0_6, %c0_7] : memref<256x128xf32, #tpu.memory_space<vmem>>, vector<256x128xf32>
    tpu.vector_store %arg7[%c0_6, %c0_7], %7 {strides = array<i32>} : memref<256x128xf32, #tpu.memory_space<vmem>>, vector<256x128xf32>,
    %c0_i32_8 = arith.constant 0 : i32
    %9 = arith.cmpi eq, %arg2, %c0_i32_8 : i32
    %10 = arith.extui %9 : i1 to i32
    %c0_i32_9 = arith.constant 0 : i32
    %11 = arith.cmpi ne, %10, %c0_i32_9 : i32
    scf.if %11 {
      %c0_10 = arith.constant 0 : index
      %c0_11 = arith.constant 0 : index
      %12 = vector.load %arg7[%c0_10, %c0_11] : memref<256x128xf32, #tpu.memory_space<vmem>>, vector<256x128xf32>
      %c0_12 = arith.constant 0 : index
      %c0_13 = arith.constant 0 : index
      %13 = vector.load %arg5[%c0_12, %c0_13] : memref<1x128xf32, #tpu.memory_space<vmem>>, vector<1x128xf32>
      %14 = vector.broadcast %13 : vector<1x128xf32> to vector<256x128xf32>
      %15 = arith.addf %12, %14 : vector<256x128xf32>
      %cst_14 = arith.constant 0.000000e+00 : f32
      %16 = vector.broadcast %cst_14 : f32 to vector<256x128xf32>
      %17 = arith.cmpf ogt, %15, %16 : vector<256x128xf32>
      %cst_15 = arith.constant 2.000000e-01 : f32
      %18 = vector.broadcast %cst_15 : f32 to vector<256x128xf32>
      %19 = arith.mulf %18, %15 : vector<256x128xf32>
      %20 = arith.select %17, %15, %19 : vector<256x128xi1>, vector<256x128xf32>
      %c0_16 = arith.constant 0 : index
      %c0_17 = arith.constant 0 : index
      %21 = vector.load %arg6[%c0_16, %c0_17] : memref<256x128xf32, #tpu.memory_space<vmem>>, vector<256x128xf32>
      tpu.vector_store %arg6[%c0_16, %c0_17], %20 {strides = array<i32>} : memref<256x128xf32, #tpu.memory_space<vmem>>, vector<256x128xf32>,
    } else {
    }
    return
  }
  func.func @transform_0(%arg0: i32, %arg1: i32, %arg2: i32) -> (i32, i32) {
    %c0_i32 = arith.constant 0 : i32
    return %arg0, %arg2 : i32, i32
  }
  func.func @transform_1(%arg0: i32, %arg1: i32, %arg2: i32) -> (i32, i32) {
    %c0_i32 = arith.constant 0 : i32
    return %arg2, %arg1 : i32, i32
  }
  func.func @transform_2(%arg0: i32, %arg1: i32, %arg2: i32) -> (i32, i32) {
    %c0_i32 = arith.constant 0 : i32
    %c0_i32_0 = arith.constant 0 : i32
    return %c0_i32, %arg1 : i32, i32
  }
  func.func @transform_3(%arg0: i32, %arg1: i32, %arg2: i32) -> (i32, i32) {
    %c0_i32 = arith.constant 0 : i32
    return %arg0, %arg1 : i32, i32
  }
}

module attributes {stable_mosaic.version = 11 : i64} {
  func.func @_matmul_bias_kernel(%arg0: i32, %arg1: i32, %arg2: i32, %arg3: memref<128x512xbf16, #tpu.memory_space<vmem>>, %arg4: memref<512x128xbf16, #tpu.memory_space<vmem>>, %arg5: memref<1x128xf32, #tpu.memory_space<vmem>>, %arg6: memref<128x128xf32, #tpu.memory_space<vmem>>, %arg7: memref<128x128xf32, #tpu.memory_space<vmem>>) attributes {dimension_semantics = [#tpu.dimension_semantics<parallel>, #tpu.dimension_semantics<parallel>, #tpu.dimension_semantics<arbitrary>], iteration_bounds = array<i64: 1, 1, 2>, scalar_prefetch = 0 : i64, scratch_operands = 1 : i64, tpu.core_type = #tpu.core_type<tc>, window_params = [{transform_indices = @transform_0, window_bounds = array<i64: 128, 512>}, {transform_indices = @transform_1, window_bounds = array<i64: 512, 128>}, {transform_indices = @transform_2, window_bounds = array<i64: 1, 128>}, {transform_indices = @transform_3, window_bounds = array<i64: 128, 128>}]} {
    %c0_i32 = arith.constant 0 : i32
    %0 = arith.cmpi eq, %arg2, %c0_i32 : i32
    %1 = arith.extui %0 : i1 to i32
    %c0_i32_0 = arith.constant 0 : i32
    %2 = arith.cmpi ne, %1, %c0_i32_0 : i32
    scf.if %2 {
      %cst_9 = arith.constant 0.000000e+00 : f32
      %12 = vector.broadcast %cst_9 : f32 to vector<128x128xf32>
      %c0_10 = arith.constant 0 : index
      %c0_11 = arith.constant 0 : index
      %13 = vector.load %arg7[%c0_10, %c0_11] : memref<128x128xf32, #tpu.memory_space<vmem>>, vector<128x128xf32>
      tpu.vector_store %arg7[%c0_10, %c0_11], %12 {strides = array<i32>} : memref<128x128xf32, #tpu.memory_space<vmem>>, vector<128x128xf32>,
    } else {
    }
    %c0 = arith.constant 0 : index
    %c0_1 = arith.constant 0 : index
    %3 = vector.load %arg7[%c0, %c0_1] : memref<128x128xf32, #tpu.memory_space<vmem>>, vector<128x128xf32>
    %c0_2 = arith.constant 0 : index
    %c0_3 = arith.constant 0 : index
    %4 = vector.load %arg3[%c0_2, %c0_3] : memref<128x512xbf16, #tpu.memory_space<vmem>>, vector<128x512xbf16>
    %c0_4 = arith.constant 0 : index
    %c0_5 = arith.constant 0 : index
    %5 = vector.load %arg4[%c0_4, %c0_5] : memref<512x128xbf16, #tpu.memory_space<vmem>>, vector<512x128xbf16>
    %cst = arith.constant dense<0.000000e+00> : vector<128x128xf32>
    %6 = tpu.matmul %4, %5, %cst {dimension_numbers = #tpu.dot_dimension_numbers<[1], [0], [0], [1], [0, 0, 1, 1], [], []>} : vector<128x512xbf16>, vector<512x128xbf16>, vector<128x128xf32> -> vector<128x128xf32>
    %7 = arith.addf %3, %6 : vector<128x128xf32>
    %c0_6 = arith.constant 0 : index
    %c0_7 = arith.constant 0 : index
    %8 = vector.load %arg7[%c0_6, %c0_7] : memref<128x128xf32, #tpu.memory_space<vmem>>, vector<128x128xf32>
    tpu.vector_store %arg7[%c0_6, %c0_7], %7 {strides = array<i32>} : memref<128x128xf32, #tpu.memory_space<vmem>>, vector<128x128xf32>,
    %c1_i32 = arith.constant 1 : i32
    %9 = arith.cmpi eq, %arg2, %c1_i32 : i32
    %10 = arith.extui %9 : i1 to i32
    %c0_i32_8 = arith.constant 0 : i32
    %11 = arith.cmpi ne, %10, %c0_i32_8 : i32
    scf.if %11 {
      %c0_9 = arith.constant 0 : index
      %c0_10 = arith.constant 0 : index
      %12 = vector.load %arg7[%c0_9, %c0_10] : memref<128x128xf32, #tpu.memory_space<vmem>>, vector<128x128xf32>
      %c0_11 = arith.constant 0 : index
      %c0_12 = arith.constant 0 : index
      %13 = vector.load %arg5[%c0_11, %c0_12] : memref<1x128xf32, #tpu.memory_space<vmem>>, vector<1x128xf32>
      %14 = vector.broadcast %13 : vector<1x128xf32> to vector<128x128xf32>
      %15 = arith.addf %12, %14 : vector<128x128xf32>
      %cst_13 = arith.constant 0.000000e+00 : f32
      %16 = vector.broadcast %cst_13 : f32 to vector<128x128xf32>
      %17 = arith.cmpf ogt, %15, %16 : vector<128x128xf32>
      %cst_14 = arith.constant 2.000000e-01 : f32
      %18 = vector.broadcast %cst_14 : f32 to vector<128x128xf32>
      %19 = arith.mulf %18, %15 : vector<128x128xf32>
      %20 = arith.select %17, %15, %19 : vector<128x128xi1>, vector<128x128xf32>
      %c0_15 = arith.constant 0 : index
      %c0_16 = arith.constant 0 : index
      %21 = vector.load %arg6[%c0_15, %c0_16] : memref<128x128xf32, #tpu.memory_space<vmem>>, vector<128x128xf32>
      tpu.vector_store %arg6[%c0_15, %c0_16], %20 {strides = array<i32>} : memref<128x128xf32, #tpu.memory_space<vmem>>, vector<128x128xf32>,
    } else {
    }
    return
  }
  func.func @transform_0(%arg0: i32, %arg1: i32, %arg2: i32) -> (i32, i32) {
    %c0_i32 = arith.constant 0 : i32
    return %arg0, %arg2 : i32, i32
  }
  func.func @transform_1(%arg0: i32, %arg1: i32, %arg2: i32) -> (i32, i32) {
    %c0_i32 = arith.constant 0 : i32
    return %arg2, %arg1 : i32, i32
  }
  func.func @transform_2(%arg0: i32, %arg1: i32, %arg2: i32) -> (i32, i32) {
    %c0_i32 = arith.constant 0 : i32
    %c0_i32_0 = arith.constant 0 : i32
    return %c0_i32, %arg1 : i32, i32
  }
  func.func @transform_3(%arg0: i32, %arg1: i32, %arg2: i32) -> (i32, i32) {
    %c0_i32 = arith.constant 0 : i32
    return %arg0, %arg1 : i32, i32
  }
}

module attributes {stable_mosaic.version = 11 : i64} {
  func.func @_matmul_bias_kernel(%arg0: i32, %arg1: i32, %arg2: i32, %arg3: memref<32x512xbf16, #tpu.memory_space<vmem>>, %arg4: memref<512x256xbf16, #tpu.memory_space<vmem>>, %arg5: memref<1x256xf32, #tpu.memory_space<vmem>>, %arg6: memref<32x256xf32, #tpu.memory_space<vmem>>, %arg7: memref<32x256xf32, #tpu.memory_space<vmem>>) attributes {dimension_semantics = [#tpu.dimension_semantics<parallel>, #tpu.dimension_semantics<parallel>, #tpu.dimension_semantics<arbitrary>], iteration_bounds = array<i64: 1, 1, 4>, scalar_prefetch = 0 : i64, scratch_operands = 1 : i64, tpu.core_type = #tpu.core_type<tc>, window_params = [{transform_indices = @transform_0, window_bounds = array<i64: 32, 512>}, {transform_indices = @transform_1, window_bounds = array<i64: 512, 256>}, {transform_indices = @transform_2, window_bounds = array<i64: 1, 256>}, {transform_indices = @transform_3, window_bounds = array<i64: 32, 256>}]} {
    %c0_i32 = arith.constant 0 : i32
    %0 = arith.cmpi eq, %arg2, %c0_i32 : i32
    %1 = arith.extui %0 : i1 to i32
    %c0_i32_0 = arith.constant 0 : i32
    %2 = arith.cmpi ne, %1, %c0_i32_0 : i32
    scf.if %2 {
      %cst_9 = arith.constant 0.000000e+00 : f32
      %12 = vector.broadcast %cst_9 : f32 to vector<32x256xf32>
      %c0_10 = arith.constant 0 : index
      %c0_11 = arith.constant 0 : index
      %13 = vector.load %arg7[%c0_10, %c0_11] : memref<32x256xf32, #tpu.memory_space<vmem>>, vector<32x256xf32>
      tpu.vector_store %arg7[%c0_10, %c0_11], %12 {strides = array<i32>} : memref<32x256xf32, #tpu.memory_space<vmem>>, vector<32x256xf32>,
    } else {
    }
    %c0 = arith.constant 0 : index
    %c0_1 = arith.constant 0 : index
    %3 = vector.load %arg7[%c0, %c0_1] : memref<32x256xf32, #tpu.memory_space<vmem>>, vector<32x256xf32>
    %c0_2 = arith.constant 0 : index
    %c0_3 = arith.constant 0 : index
    %4 = vector.load %arg3[%c0_2, %c0_3] : memref<32x512xbf16, #tpu.memory_space<vmem>>, vector<32x512xbf16>
    %c0_4 = arith.constant 0 : index
    %c0_5 = arith.constant 0 : index
    %5 = vector.load %arg4[%c0_4, %c0_5] : memref<512x256xbf16, #tpu.memory_space<vmem>>, vector<512x256xbf16>
    %cst = arith.constant dense<0.000000e+00> : vector<32x256xf32>
    %6 = tpu.matmul %4, %5, %cst {dimension_numbers = #tpu.dot_dimension_numbers<[1], [0], [0], [1], [0, 0, 1, 1], [], []>} : vector<32x512xbf16>, vector<512x256xbf16>, vector<32x256xf32> -> vector<32x256xf32>
    %7 = arith.addf %3, %6 : vector<32x256xf32>
    %c0_6 = arith.constant 0 : index
    %c0_7 = arith.constant 0 : index
    %8 = vector.load %arg7[%c0_6, %c0_7] : memref<32x256xf32, #tpu.memory_space<vmem>>, vector<32x256xf32>
    tpu.vector_store %arg7[%c0_6, %c0_7], %7 {strides = array<i32>} : memref<32x256xf32, #tpu.memory_space<vmem>>, vector<32x256xf32>,
    %c3_i32 = arith.constant 3 : i32
    %9 = arith.cmpi eq, %arg2, %c3_i32 : i32
    %10 = arith.extui %9 : i1 to i32
    %c0_i32_8 = arith.constant 0 : i32
    %11 = arith.cmpi ne, %10, %c0_i32_8 : i32
    scf.if %11 {
      %c0_9 = arith.constant 0 : index
      %c0_10 = arith.constant 0 : index
      %12 = vector.load %arg7[%c0_9, %c0_10] : memref<32x256xf32, #tpu.memory_space<vmem>>, vector<32x256xf32>
      %c0_11 = arith.constant 0 : index
      %c0_12 = arith.constant 0 : index
      %13 = vector.load %arg5[%c0_11, %c0_12] : memref<1x256xf32, #tpu.memory_space<vmem>>, vector<1x256xf32>
      %14 = vector.broadcast %13 : vector<1x256xf32> to vector<32x256xf32>
      %15 = arith.addf %12, %14 : vector<32x256xf32>
      %cst_13 = arith.constant 0.000000e+00 : f32
      %16 = vector.broadcast %cst_13 : f32 to vector<32x256xf32>
      %17 = arith.cmpf ogt, %15, %16 : vector<32x256xf32>
      %cst_14 = arith.constant 2.000000e-01 : f32
      %18 = vector.broadcast %cst_14 : f32 to vector<32x256xf32>
      %19 = arith.mulf %18, %15 : vector<32x256xf32>
      %20 = arith.select %17, %15, %19 : vector<32x256xi1>, vector<32x256xf32>
      %c0_15 = arith.constant 0 : index
      %c0_16 = arith.constant 0 : index
      %21 = vector.load %arg6[%c0_15, %c0_16] : memref<32x256xf32, #tpu.memory_space<vmem>>, vector<32x256xf32>
      tpu.vector_store %arg6[%c0_15, %c0_16], %20 {strides = array<i32>} : memref<32x256xf32, #tpu.memory_space<vmem>>, vector<32x256xf32>,
    } else {
    }
    return
  }
  func.func @transform_0(%arg0: i32, %arg1: i32, %arg2: i32) -> (i32, i32) {
    %c0_i32 = arith.constant 0 : i32
    return %arg0, %arg2 : i32, i32
  }
  func.func @transform_1(%arg0: i32, %arg1: i32, %arg2: i32) -> (i32, i32) {
    %c0_i32 = arith.constant 0 : i32
    return %arg2, %arg1 : i32, i32
  }
  func.func @transform_2(%arg0: i32, %arg1: i32, %arg2: i32) -> (i32, i32) {
    %c0_i32 = arith.constant 0 : i32
    %c0_i32_0 = arith.constant 0 : i32
    return %c0_i32, %arg1 : i32, i32
  }
  func.func @transform_3(%arg0: i32, %arg1: i32, %arg2: i32) -> (i32, i32) {
    %c0_i32 = arith.constant 0 : i32
    return %arg0, %arg1 : i32, i32
  }
}

module attributes {stable_mosaic.version = 11 : i64} {
  func.func @_matmul_bias_kernel(%arg0: i32, %arg1: i32, %arg2: i32, %arg3: memref<16x512xbf16, #tpu.memory_space<vmem>>, %arg4: memref<512x256xbf16, #tpu.memory_space<vmem>>, %arg5: memref<1x256xf32, #tpu.memory_space<vmem>>, %arg6: memref<16x256xf32, #tpu.memory_space<vmem>>, %arg7: memref<16x256xf32, #tpu.memory_space<vmem>>) attributes {dimension_semantics = [#tpu.dimension_semantics<parallel>, #tpu.dimension_semantics<parallel>, #tpu.dimension_semantics<arbitrary>], iteration_bounds = array<i64: 1, 2, 8>, scalar_prefetch = 0 : i64, scratch_operands = 1 : i64, tpu.core_type = #tpu.core_type<tc>, window_params = [{transform_indices = @transform_0, window_bounds = array<i64: 16, 512>}, {transform_indices = @transform_1, window_bounds = array<i64: 512, 256>}, {transform_indices = @transform_2, window_bounds = array<i64: 1, 256>}, {transform_indices = @transform_3, window_bounds = array<i64: 16, 256>}]} {
    %c0_i32 = arith.constant 0 : i32
    %0 = arith.cmpi eq, %arg2, %c0_i32 : i32
    %1 = arith.extui %0 : i1 to i32
    %c0_i32_0 = arith.constant 0 : i32
    %2 = arith.cmpi ne, %1, %c0_i32_0 : i32
    scf.if %2 {
      %cst_9 = arith.constant 0.000000e+00 : f32
      %12 = vector.broadcast %cst_9 : f32 to vector<16x256xf32>
      %c0_10 = arith.constant 0 : index
      %c0_11 = arith.constant 0 : index
      %13 = vector.load %arg7[%c0_10, %c0_11] : memref<16x256xf32, #tpu.memory_space<vmem>>, vector<16x256xf32>
      tpu.vector_store %arg7[%c0_10, %c0_11], %12 {strides = array<i32>} : memref<16x256xf32, #tpu.memory_space<vmem>>, vector<16x256xf32>,
    } else {
    }
    %c0 = arith.constant 0 : index
    %c0_1 = arith.constant 0 : index
    %3 = vector.load %arg7[%c0, %c0_1] : memref<16x256xf32, #tpu.memory_space<vmem>>, vector<16x256xf32>
    %c0_2 = arith.constant 0 : index
    %c0_3 = arith.constant 0 : index
    %4 = vector.load %arg3[%c0_2, %c0_3] : memref<16x512xbf16, #tpu.memory_space<vmem>>, vector<16x512xbf16>
    %c0_4 = arith.constant 0 : index
    %c0_5 = arith.constant 0 : index
    %5 = vector.load %arg4[%c0_4, %c0_5] : memref<512x256xbf16, #tpu.memory_space<vmem>>, vector<512x256xbf16>
    %cst = arith.constant dense<0.000000e+00> : vector<16x256xf32>
    %6 = tpu.matmul %4, %5, %cst {dimension_numbers = #tpu.dot_dimension_numbers<[1], [0], [0], [1], [0, 0, 1, 1], [], []>} : vector<16x512xbf16>, vector<512x256xbf16>, vector<16x256xf32> -> vector<16x256xf32>
    %7 = arith.addf %3, %6 : vector<16x256xf32>
    %c0_6 = arith.constant 0 : index
    %c0_7 = arith.constant 0 : index
    %8 = vector.load %arg7[%c0_6, %c0_7] : memref<16x256xf32, #tpu.memory_space<vmem>>, vector<16x256xf32>
    tpu.vector_store %arg7[%c0_6, %c0_7], %7 {strides = array<i32>} : memref<16x256xf32, #tpu.memory_space<vmem>>, vector<16x256xf32>,
    %c7_i32 = arith.constant 7 : i32
    %9 = arith.cmpi eq, %arg2, %c7_i32 : i32
    %10 = arith.extui %9 : i1 to i32
    %c0_i32_8 = arith.constant 0 : i32
    %11 = arith.cmpi ne, %10, %c0_i32_8 : i32
    scf.if %11 {
      %c0_9 = arith.constant 0 : index
      %c0_10 = arith.constant 0 : index
      %12 = vector.load %arg7[%c0_9, %c0_10] : memref<16x256xf32, #tpu.memory_space<vmem>>, vector<16x256xf32>
      %c0_11 = arith.constant 0 : index
      %c0_12 = arith.constant 0 : index
      %13 = vector.load %arg5[%c0_11, %c0_12] : memref<1x256xf32, #tpu.memory_space<vmem>>, vector<1x256xf32>
      %14 = vector.broadcast %13 : vector<1x256xf32> to vector<16x256xf32>
      %15 = arith.addf %12, %14 : vector<16x256xf32>
      %cst_13 = arith.constant 0.000000e+00 : f32
      %16 = vector.broadcast %cst_13 : f32 to vector<16x256xf32>
      %17 = arith.cmpf ogt, %15, %16 : vector<16x256xf32>
      %cst_14 = arith.constant 2.000000e-01 : f32
      %18 = vector.broadcast %cst_14 : f32 to vector<16x256xf32>
      %19 = arith.mulf %18, %15 : vector<16x256xf32>
      %20 = arith.select %17, %15, %19 : vector<16x256xi1>, vector<16x256xf32>
      %c0_15 = arith.constant 0 : index
      %c0_16 = arith.constant 0 : index
      %21 = vector.load %arg6[%c0_15, %c0_16] : memref<16x256xf32, #tpu.memory_space<vmem>>, vector<16x256xf32>
      tpu.vector_store %arg6[%c0_15, %c0_16], %20 {strides = array<i32>} : memref<16x256xf32, #tpu.memory_space<vmem>>, vector<16x256xf32>,
    } else {
    }
    return
  }
  func.func @transform_0(%arg0: i32, %arg1: i32, %arg2: i32) -> (i32, i32) {
    %c0_i32 = arith.constant 0 : i32
    return %arg0, %arg2 : i32, i32
  }
  func.func @transform_1(%arg0: i32, %arg1: i32, %arg2: i32) -> (i32, i32) {
    %c0_i32 = arith.constant 0 : i32
    return %arg2, %arg1 : i32, i32
  }
  func.func @transform_2(%arg0: i32, %arg1: i32, %arg2: i32) -> (i32, i32) {
    %c0_i32 = arith.constant 0 : i32
    %c0_i32_0 = arith.constant 0 : i32
    return %c0_i32, %arg1 : i32, i32
  }
  func.func @transform_3(%arg0: i32, %arg1: i32, %arg2: i32) -> (i32, i32) {
    %c0_i32 = arith.constant 0 : i32
    return %arg0, %arg1 : i32, i32
  }
}

module attributes {stable_mosaic.version = 11 : i64} {
  func.func @_dot_reduce_kernel(%arg0: i32, %arg1: memref<16x8192xbf16, #tpu.memory_space<vmem>>, %arg2: memref<1x8192xbf16, #tpu.memory_space<vmem>>, %arg3: memref<1x1xf32, #tpu.memory_space<vmem>>, %arg4: memref<16x1xf32, #tpu.memory_space<vmem>>) attributes {dimension_semantics = [#tpu.dimension_semantics<parallel>], iteration_bounds = array<i64: 1>, scalar_prefetch = 0 : i64, scratch_operands = 0 : i64, tpu.core_type = #tpu.core_type<tc>, window_params = [{transform_indices = @transform_0, window_bounds = array<i64: 16, 8192>}, {pipeline_mode = #tpu.pipeline_mode<synchronous>, transform_indices = @transform_1, window_bounds = array<i64: 1, 8192>}, {pipeline_mode = #tpu.pipeline_mode<synchronous>, transform_indices = @transform_2, window_bounds = array<i64: 1, 1>}, {transform_indices = @transform_3, window_bounds = array<i64: 16, 1>}]} {
    %c0 = arith.constant 0 : index
    %c0_0 = arith.constant 0 : index
    %0 = vector.load %arg1[%c0, %c0_0] : memref<16x8192xbf16, #tpu.memory_space<vmem>>, vector<16x8192xbf16>
    %1 = arith.extf %0 : vector<16x8192xbf16> to vector<16x8192xf32>
    %c0_1 = arith.constant 0 : index
    %c0_2 = arith.constant 0 : index
    %2 = vector.load %arg2[%c0_1, %c0_2] : memref<1x8192xbf16, #tpu.memory_space<vmem>>, vector<1x8192xbf16>
    %3 = arith.extf %2 : vector<1x8192xbf16> to vector<1x8192xf32>
    %4 = vector.broadcast %3 : vector<1x8192xf32> to vector<16x8192xf32>
    %5 = arith.mulf %1, %4 : vector<16x8192xf32>
    %cst = arith.constant dense<0.000000e+00> : vector<16xf32>
    %6 = vector.multi_reduction <add>, %5, %cst [1] : vector<16x8192xf32> to vector<16xf32>
    %7 = vector.shape_cast %6 : vector<16xf32> to vector<16x1xf32>
    %c0_3 = arith.constant 0 : index
    %c0_4 = arith.constant 0 : index
    %8 = vector.load %arg3[%c0_3, %c0_4] : memref<1x1xf32, #tpu.memory_space<vmem>>, vector<1x1xf32>
    %9 = vector.broadcast %8 : vector<1x1xf32> to vector<16x1xf32>
    %10 = arith.addf %7, %9 : vector<16x1xf32>
    %c0_5 = arith.constant 0 : index
    %c0_6 = arith.constant 0 : index
    %11 = vector.load %arg4[%c0_5, %c0_6] : memref<16x1xf32, #tpu.memory_space<vmem>>, vector<16x1xf32>
    tpu.vector_store %arg4[%c0_5, %c0_6], %10 {strides = array<i32>} : memref<16x1xf32, #tpu.memory_space<vmem>>, vector<16x1xf32>,
    return
  }
  func.func @transform_0(%arg0: i32) -> (i32, i32) {
    %c0_i32 = arith.constant 0 : i32
    %c0_i32_0 = arith.constant 0 : i32
    return %arg0, %c0_i32 : i32, i32
  }
  func.func @transform_1(%arg0: i32) -> (i32, i32) {
    %c0_i32 = arith.constant 0 : i32
    %c0_i32_0 = arith.constant 0 : i32
    %c0_i32_1 = arith.constant 0 : i32
    return %c0_i32, %c0_i32_0 : i32, i32
  }
  func.func @transform_2(%arg0: i32) -> (i32, i32) {
    %c0_i32 = arith.constant 0 : i32
    %c0_i32_0 = arith.constant 0 : i32
    %c0_i32_1 = arith.constant 0 : i32
    return %c0_i32, %c0_i32_0 : i32, i32
  }
  func.func @transform_3(%arg0: i32) -> (i32, i32) {
    %c0_i32 = arith.constant 0 : i32
    %c0_i32_0 = arith.constant 0 : i32
    return %arg0, %c0_i32 : i32, i32
  }
}

</mosaic_0001>

<bundles_post_ra>
// kernel: discriminator_forward.5
= control target key start
LH: loop header
LB: loop body
LE: loop exit
PB: predicated region body
PF: predicated region fallthrough
CT: control target
= control target key end

     0   :  { %s1194_s12 = smov 0   ;;  %s1196_s13 = smov 0   ;;  %s1348_s0 = inlined_call_operand.vmem [shape: bf16[512,64], index: 0, kind: input, shape index: {}]   ;;  %s1349_s1 = inlined_call_operand.vmem [shape: bf16[64,128], index: 1, kind: input, shape index: {}]   ;;  %s1350_s2 = inlined_call_operand.vmem [shape: f32[1,128], index: 2, kind: input, shape index: {}]   ;;  %s1351_s3 = inlined_call_operand.vmem [shape: f32[512,128], index: 3, kind: output, shape index: {}]  }
   0x1   :  { %s1198_s14 = smov 0  }
   0x2 LB: > { %s32_s15 = sadd.s32 1, %s1168_s13  ;;  %p990_p0 = scmp.ge.s32.totalorder %s1172_s14, 1  ;;  %s1172_s14 = sphi %s1198_s14, %s13_s14   ;;  %s1168_s13 = sphi %s1196_s13, %s1353_s13   ;;  %s1164_s12 = sphi %s1194_s12, %s1352_s12  }
   0x3   : > { %p34_p1 = scmp.ge.s32.totalorder %s32_s15, 2  ;;  %p188_p2 = scmp.lt.s32.totalorder %s1172_s14, 3 }
   0x5   : > { %s1355_s15 = smov (%p34_p1, %s32_s15), 0  ;;  %p189_p3 = pnand %p990_p0, %p188_p2 }
   0x6   : > { %s991_s18 = sshll.u32 (!%p189_p3), %s1164_s12, 5 }
   0x7   : > { %192 = sbr.rel (%p189_p3) target bundleno = 224 (0xe0), region = 32  ;;  %p230_p4 = scmp.lt.s32.totalorder (!%p189_p3), %s991_s18, 63 }
   0xc   : > { %v1112_v0 = vld [vmem:[%s1349_s1 + $0x18] sm:$0xff]  ;;  %v1111_v1 = vld [vmem:[%s1349_s1 + $0x10] sm:$0xff]  ;;  %s1357_s18 = smov (!%p230_p4, %s991_s18), 63  ;;  %v1110_v2 = vld [vmem:[%s1349_s1 + $0x8] sm:$0xff]  ;;  %vm472_vm0 = vcmask 523264  }
   0xd   : > { %525 = vmatpush.bf16.msra.mxu0 %v1112_v0  ;;  %1113 = vmatpush.bf16.msra.mxu1 %v1112_v0  ;;  %s992_s23 = sshll.u32 %s1357_s18, 2  ;;  %v1109_v3 = vld [vmem:[%s1349_s1] sm:$0xff]  ;;  %s994_s4 = sshll.u32 %s1357_s18, 3 }
   0xe   : > { %1114 = vmatpush.bf16.msra.mxu2 %v1112_v0  ;;  %1115 = vmatpush.bf16.msra.mxu3 %v1112_v0  ;;  %s1230_s28 = scalar_lea.vmem %s1348_s0, %s992_s23  ;;  %v1267_v20 = vld [vmem:[%s1350_s2] ss:$0 sm:$0xff]  ;;  %s1275_s7 = scalar_lea.vmem %s1351_s3, %s994_s4 }
   0xf   : > { %v1093_v4 = vld [vmem:[%s1230_s28] sm:$0xff]  ;;  %v1094_v8 = vld [vmem:[%s1230_s28 + $0x8] sm:$0xff]  ;;  %v1095_v12 = vld [vmem:[%s1230_s28 + $0x10] sm:$0xff] }
  0x10   : > { %v1097_v5 = vld [vmem:[%s1230_s28 + $0x20] sm:$0xff]  ;;  %v1098_v9 = vld [vmem:[%s1230_s28 + $0x28] sm:$0xff]  ;;  %v1099_v13 = vld [vmem:[%s1230_s28 + $0x30] sm:$0xff] }
  0x11   : > { %526 = vmatpush.bf16.msra.mxu0 %v1111_v1  ;;  %1116 = vmatpush.bf16.msra.mxu1 %v1111_v1  ;;  %v1101_v6 = vld [vmem:[%s1230_s28 + $0x40] sm:$0xff]  ;;  %v1102_v10 = vld [vmem:[%s1230_s28 + $0x48] sm:$0xff]  ;;  %v1103_v14 = vld [vmem:[%s1230_s28 + $0x50] sm:$0xff] }
  0x12   : > { %1117 = vmatpush.bf16.msra.mxu2 %v1111_v1  ;;  %1118 = vmatpush.bf16.msra.mxu3 %v1111_v1  ;;  %v1105_v7 = vld [vmem:[%s1230_s28 + $0x60] sm:$0xff]  ;;  %v1106_v11 = vld [vmem:[%s1230_s28 + $0x68] sm:$0xff]  ;;  %v1107_v15 = vld [vmem:[%s1230_s28 + $0x70] sm:$0xff] }
  0x13   : > { %v1096_v16 = vld [vmem:[%s1230_s28 + $0x18] sm:$0xff] }
  0x14   : > { %v1100_v17 = vld [vmem:[%s1230_s28 + $0x38] sm:$0xff] }
  0x15   : > { %527 = vmatpush.bf16.msra.mxu0 %v1110_v2  ;;  %1119 = vmatpush.bf16.msra.mxu1 %v1110_v2  ;;  %v1104_v18 = vld [vmem:[%s1230_s28 + $0x58] sm:$0xff] }
  0x16   : > { %1120 = vmatpush.bf16.msra.mxu2 %v1110_v2  ;;  %1121 = vmatpush.bf16.msra.mxu3 %v1110_v2  ;;  %v1108_v19 = vld [vmem:[%s1230_s28 + $0x78] sm:$0xff] }
  0x19   : > { %528 = vmatpush.bf16.msra.mxu0 %v1109_v3  ;;  %1122 = vmatpush.bf16.msra.mxu1 %v1109_v3 }
  0x1a   : > { %1123 = vmatpush.bf16.msra.mxu2 %v1109_v3  ;;  %1124 = vmatpush.bf16.msra.mxu3 %v1109_v3 }
  0x1c   : > { %1075 = vmatmul.msk.bf16.vlgmr.msra.gmra.mxu0 %vm472_vm0, %v1093_v4  ;;  %1079 = vmatmul.msk.bf16.vlgmr.msra.gmra.mxu1 %vm472_vm0, %v1097_v5 }
  0x1d   : > { %1083 = vmatmul.msk.bf16.vlgmr.msra.gmra.mxu2 %vm472_vm0, %v1101_v6  ;;  %1087 = vmatmul.msk.bf16.vlgmr.msra.gmra.mxu3 %vm472_vm0, %v1105_v7 }
  0x2c   : > { %1076 = vmatmul.msk.bf16.gmra.mxu0 %vm472_vm0, %v1094_v8  ;;  %1080 = vmatmul.msk.bf16.gmra.mxu1 %vm472_vm0, %v1098_v9 }
  0x2d   : > { %1084 = vmatmul.msk.bf16.gmra.mxu2 %vm472_vm0, %v1102_v10  ;;  %1088 = vmatmul.msk.bf16.gmra.mxu3 %vm472_vm0, %v1106_v11 }
  0x3c   : > { %1077 = vmatmul.msk.bf16.gmra.mxu0 %vm472_vm0, %v1095_v12  ;;  %1081 = vmatmul.msk.bf16.gmra.mxu1 %vm472_vm0, %v1099_v13 }
  0x3d   : > { %1085 = vmatmul.msk.bf16.gmra.mxu2 %vm472_vm0, %v1103_v14  ;;  %1089 = vmatmul.msk.bf16.gmra.mxu3 %vm472_vm0, %v1107_v15 }
  0x4c   : > { %1078 = vmatmul.msk.bf16.gmra.mxu0 %vm472_vm0, %v1096_v16  ;;  %1082 = vmatmul.msk.bf16.gmra.mxu1 %vm472_vm0, %v1100_v17 }
  0x4d   : > { %1086 = vmatmul.msk.bf16.gmra.mxu2 %vm472_vm0, %v1104_v18  ;;  %1090 = vmatmul.msk.bf16.gmra.mxu3 %vm472_vm0, %v1108_v19 }
  0x99   : > { %v530_v21 = vpop.f32.mrf.mxu0  ;;  %v550_v22 = vpop.f32.mrf.mxu1 }
  0x9a   : > { %v713_v23 = vadd.f32 %v1267_v20, %v530_v21  ;;  %v721_v24 = vadd.f32 %v1267_v20, %v550_v22 }
  0x9c   : > { %vm745_vm1 = vcmp.gt.f32.partialorder %v713_v23, 0.0  ;;  %v777_v25 = vmul.f32 0.2, %v713_v23  ;;  %vm753_vm2 = vcmp.gt.f32.partialorder %v721_v24, 0.0  ;;  %v785_v26 = vmul.f32 0.2, %v721_v24 }
  0x9e   : > { %v809_v27 = vsel %vm745_vm1, %v713_v23, %v777_v25  ;;  %v817_v28 = vsel %vm753_vm2, %v721_v24, %v785_v26 }
  0x9f   : > { %841 = vst [vmem:[%s1275_s7] sm:$0xff] %v809_v27 }
  0xa0   : > { %849 = vst [vmem:[%s1275_s7 + $0x40] sm:$0xff] %v817_v28  ;;  %v570_v29 = vpop.f32.mrf.mxu2  ;;  %v590_v30 = vpop.f32.mrf.mxu3 }
  0xa1   : > { %v729_v31 = vadd.f32 %v1267_v20, %v570_v29  ;;  %v737_v32 = vadd.f32 %v1267_v20, %v590_v30  ;;  %v532_v33 = vpop.f32.mrf.mxu0  ;;  %v552_v34 = vpop.f32.mrf.mxu1 }
  0xa2   : > { %v714_v35 = vadd.f32 %v1267_v20, %v532_v33  ;;  %v722_v36 = vadd.f32 %v1267_v20, %v552_v34 }
  0xa3   : > { %vm761_vm3 = vcmp.gt.f32.partialorder %v729_v31, 0.0  ;;  %v793_v37 = vmul.f32 0.2, %v729_v31  ;;  %vm769_vm4 = vcmp.gt.f32.partialorder %v737_v32, 0.0  ;;  %v801_v38 = vmul.f32 0.2, %v737_v32 }
  0xa4   : > { %vm746_vm5 = vcmp.gt.f32.partialorder %v714_v35, 0.0  ;;  %v778_v39 = vmul.f32 0.2, %v714_v35  ;;  %vm754_vm6 = vcmp.gt.f32.partialorder %v722_v36, 0.0  ;;  %v786_v40 = vmul.f32 0.2, %v722_v36 }
  0xa5   : > { %v825_v41 = vsel %vm761_vm3, %v729_v31, %v793_v37  ;;  %v833_v42 = vsel %vm769_vm4, %v737_v32, %v801_v38 }
  0xa6   : > { %857 = vst [vmem:[%s1275_s7 + $0x80] sm:$0xff] %v825_v41  ;;  %v810_v43 = vsel %vm746_vm5, %v714_v35, %v778_v39  ;;  %v818_v44 = vsel %vm754_vm6, %v722_v36, %v786_v40 }
  0xa7   : > { %865 = vst [vmem:[%s1275_s7 + $0xc0] sm:$0xff] %v833_v42 }
  0xa8   : > { %842 = vst [vmem:[%s1275_s7 + $0x8] sm:$0xff] %v810_v43  ;;  %v572_v45 = vpop.f32.mrf.mxu2  ;;  %v592_v46 = vpop.f32.mrf.mxu3 }
  0xa9   : > { %850 = vst [vmem:[%s1275_s7 + $0x48] sm:$0xff] %v818_v44  ;;  %v730_v47 = vadd.f32 %v1267_v20, %v572_v45  ;;  %v738_v48 = vadd.f32 %v1267_v20, %v592_v46  ;;  %v535_v49 = vpop.f32.mrf.mxu0  ;;  %v555_v50 = vpop.f32.mrf.mxu1 }
  0xaa   : > { %v715_v51 = vadd.f32 %v1267_v20, %v535_v49  ;;  %v723_v52 = vadd.f32 %v1267_v20, %v555_v50 }
  0xab   : > { %vm762_vm7 = vcmp.gt.f32.partialorder %v730_v47, 0.0  ;;  %v794_v53 = vmul.f32 0.2, %v730_v47  ;;  %vm770_vm8 = vcmp.gt.f32.partialorder %v738_v48, 0.0  ;;  %v802_v54 = vmul.f32 0.2, %v738_v48 }
  0xac   : > { %vm747_vm9 = vcmp.gt.f32.partialorder %v715_v51, 0.0  ;;  %v779_v55 = vmul.f32 0.2, %v715_v51  ;;  %vm755_vm10 = vcmp.gt.f32.partialorder %v723_v52, 0.0  ;;  %v787_v56 = vmul.f32 0.2, %v723_v52 }
  0xad   : > { %v826_v57 = vsel %vm762_vm7, %v730_v47, %v794_v53  ;;  %v834_v58 = vsel %vm770_vm8, %v738_v48, %v802_v54 }
  0xae   : > { %858 = vst [vmem:[%s1275_s7 + $0x88] sm:$0xff] %v826_v57  ;;  %v811_v59 = vsel %vm747_vm9, %v715_v51, %v779_v55  ;;  %v819_v60 = vsel %vm755_vm10, %v723_v52, %v787_v56 }
  0xaf   : > { %866 = vst [vmem:[%s1275_s7 + $0xc8] sm:$0xff] %v834_v58 }
  0xb0   : > { %843 = vst [vmem:[%s1275_s7 + $0x10] sm:$0xff] %v811_v59  ;;  %v575_v61 = vpop.f32.mrf.mxu2  ;;  %v595_v62 = vpop.f32.mrf.mxu3 }
  0xb1   : > { %851 = vst [vmem:[%s1275_s7 + $0x50] sm:$0xff] %v819_v60  ;;  %v731_v63 = vadd.f32 %v1267_v20, %v575_v61  ;;  %v739_v0 = vadd.f32 %v1267_v20, %v595_v62  ;;  %v537_v1 = vpop.f32.mrf.mxu0  ;;  %v557_v2 = vpop.f32.mrf.mxu1 }
  0xb2   : > { %v716_v3 = vadd.f32 %v1267_v20, %v537_v1  ;;  %v724_v4 = vadd.f32 %v1267_v20, %v557_v2 }
  0xb3   : > { %vm763_vm11 = vcmp.gt.f32.partialorder %v731_v63, 0.0  ;;  %v795_v5 = vmul.f32 0.2, %v731_v63  ;;  %vm771_vm12 = vcmp.gt.f32.partialorder %v739_v0, 0.0  ;;  %v803_v6 = vmul.f32 0.2, %v739_v0 }
  0xb4   : > { %vm748_vm13 = vcmp.gt.f32.partialorder %v716_v3, 0.0  ;;  %v780_v7 = vmul.f32 0.2, %v716_v3  ;;  %vm756_vm14 = vcmp.gt.f32.partialorder %v724_v4, 0.0  ;;  %v788_v8 = vmul.f32 0.2, %v724_v4 }
  0xb5   : > { %v827_v9 = vsel %vm763_vm11, %v731_v63, %v795_v5  ;;  %v835_v10 = vsel %vm771_vm12, %v739_v0, %v803_v6 }
  0xb6   : > { %859 = vst [vmem:[%s1275_s7 + $0x90] sm:$0xff] %v827_v9  ;;  %v812_v11 = vsel %vm748_vm13, %v716_v3, %v780_v7  ;;  %v820_v12 = vsel %vm756_vm14, %v724_v4, %v788_v8 }
  0xb7   : > { %867 = vst [vmem:[%s1275_s7 + $0xd0] sm:$0xff] %v835_v10 }
  0xb8   : > { %844 = vst [vmem:[%s1275_s7 + $0x18] sm:$0xff] %v812_v11  ;;  %v577_v13 = vpop.f32.mrf.mxu2  ;;  %v597_v14 = vpop.f32.mrf.mxu3 }
  0xb9   : > { %852 = vst [vmem:[%s1275_s7 + $0x58] sm:$0xff] %v820_v12  ;;  %v732_v15 = vadd.f32 %v1267_v20, %v577_v13  ;;  %v740_v16 = vadd.f32 %v1267_v20, %v597_v14  ;;  %v540_v17 = vpop.f32.mrf.mxu0  ;;  %v560_v18 = vpop.f32.mrf.mxu1 }
  0xba   : > { %v717_v19 = vadd.f32 %v1267_v20, %v540_v17  ;;  %v725_v21 = vadd.f32 %v1267_v20, %v560_v18 }
  0xbb   : > { %vm764_vm15 = vcmp.gt.f32.partialorder %v732_v15, 0.0  ;;  %v796_v22 = vmul.f32 0.2, %v732_v15  ;;  %vm772_vm0 = vcmp.gt.f32.partialorder %v740_v16, 0.0  ;;  %v804_v23 = vmul.f32 0.2, %v740_v16 }
  0xbc   : > { %vm749_vm1 = vcmp.gt.f32.partialorder %v717_v19, 0.0  ;;  %v781_v24 = vmul.f32 0.2, %v717_v19  ;;  %vm757_vm2 = vcmp.gt.f32.partialorder %v725_v21, 0.0  ;;  %v789_v25 = vmul.f32 0.2, %v725_v21 }
  0xbd   : > { %v828_v26 = vsel %vm764_vm15, %v732_v15, %v796_v22  ;;  %v836_v27 = vsel %vm772_vm0, %v740_v16, %v804_v23 }
  0xbe   : > { %860 = vst [vmem:[%s1275_s7 + $0x98] sm:$0xff] %v828_v26  ;;  %v813_v28 = vsel %vm749_vm1, %v717_v19, %v781_v24  ;;  %v821_v29 = vsel %vm757_vm2, %v725_v21, %v789_v25 }
  0xbf   : > { %868 = vst [vmem:[%s1275_s7 + $0xd8] sm:$0xff] %v836_v27 }
  0xc0   : > { %845 = vst [vmem:[%s1275_s7 + $0x20] sm:$0xff] %v813_v28  ;;  %v580_v30 = vpop.f32.mrf.mxu2  ;;  %v600_v31 = vpop.f32.mrf.mxu3 }
  0xc1   : > { %853 = vst [vmem:[%s1275_s7 + $0x60] sm:$0xff] %v821_v29  ;;  %v733_v32 = vadd.f32 %v1267_v20, %v580_v30  ;;  %v741_v33 = vadd.f32 %v1267_v20, %v600_v31  ;;  %v542_v34 = vpop.f32.mrf.mxu0  ;;  %v562_v35 = vpop.f32.mrf.mxu1 }
  0xc2   : > { %v718_v36 = vadd.f32 %v1267_v20, %v542_v34  ;;  %v726_v37 = vadd.f32 %v1267_v20, %v562_v35 }
  0xc3   : > { %vm765_vm3 = vcmp.gt.f32.partialorder %v733_v32, 0.0  ;;  %v797_v38 = vmul.f32 0.2, %v733_v32  ;;  %vm773_vm4 = vcmp.gt.f32.partialorder %v741_v33, 0.0  ;;  %v805_v39 = vmul.f32 0.2, %v741_v33 }
  0xc4   : > { %vm750_vm5 = vcmp.gt.f32.partialorder %v718_v36, 0.0  ;;  %v782_v40 = vmul.f32 0.2, %v718_v36  ;;  %vm758_vm6 = vcmp.gt.f32.partialorder %v726_v37, 0.0  ;;  %v790_v41 = vmul.f32 0.2, %v726_v37 }
  0xc5   : > { %v829_v42 = vsel %vm765_vm3, %v733_v32, %v797_v38  ;;  %v837_v43 = vsel %vm773_vm4, %v741_v33, %v805_v39 }
  0xc6   : > { %861 = vst [vmem:[%s1275_s7 + $0xa0] sm:$0xff] %v829_v42  ;;  %v814_v44 = vsel %vm750_vm5, %v718_v36, %v782_v40  ;;  %v822_v45 = vsel %vm758_vm6, %v726_v37, %v790_v41 }
  0xc7   : > { %869 = vst [vmem:[%s1275_s7 + $0xe0] sm:$0xff] %v837_v43 }
  0xc8   : > { %846 = vst [vmem:[%s1275_s7 + $0x28] sm:$0xff] %v814_v44  ;;  %v582_v46 = vpop.f32.mrf.mxu2  ;;  %v602_v47 = vpop.f32.mrf.mxu3 }
  0xc9   : > { %854 = vst [vmem:[%s1275_s7 + $0x68] sm:$0xff] %v822_v45  ;;  %v734_v48 = vadd.f32 %v1267_v20, %v582_v46  ;;  %v742_v49 = vadd.f32 %v1267_v20, %v602_v47  ;;  %v545_v50 = vpop.f32.mrf.mxu0  ;;  %v565_v51 = vpop.f32.mrf.mxu1 }
  0xca   : > { %v719_v52 = vadd.f32 %v1267_v20, %v545_v50  ;;  %v727_v53 = vadd.f32 %v1267_v20, %v565_v51 }
  0xcb   : > { %vm766_vm7 = vcmp.gt.f32.partialorder %v734_v48, 0.0  ;;  %v798_v54 = vmul.f32 0.2, %v734_v48  ;;  %vm774_vm8 = vcmp.gt.f32.partialorder %v742_v49, 0.0  ;;  %v806_v55 = vmul.f32 0.2, %v742_v49 }
  0xcc   : > { %vm751_vm9 = vcmp.gt.f32.partialorder %v719_v52, 0.0  ;;  %v783_v56 = vmul.f32 0.2, %v719_v52  ;;  %vm759_vm10 = vcmp.gt.f32.partialorder %v727_v53, 0.0  ;;  %v791_v57 = vmul.f32 0.2, %v727_v53 }
  0xcd   : > { %v830_v58 = vsel %vm766_vm7, %v734_v48, %v798_v54  ;;  %v838_v59 = vsel %vm774_vm8, %v742_v49, %v806_v55 }
  0xce   : > { %862 = vst [vmem:[%s1275_s7 + $0xa8] sm:$0xff] %v830_v58  ;;  %v815_v60 = vsel %vm751_vm9, %v719_v52, %v783_v56  ;;  %v823_v61 = vsel %vm759_vm10, %v727_v53, %v791_v57 }
  0xcf   : > { %870 = vst [vmem:[%s1275_s7 + $0xe8] sm:$0xff] %v838_v59 }
  0xd0   : > { %847 = vst [vmem:[%s1275_s7 + $0x30] sm:$0xff] %v815_v60  ;;  %v585_v62 = vpop.f32.mrf.mxu2  ;;  %v605_v63 = vpop.f32.mrf.mxu3 }
  0xd1   : > { %855 = vst [vmem:[%s1275_s7 + $0x70] sm:$0xff] %v823_v61  ;;  %v735_v0 = vadd.f32 %v1267_v20, %v585_v62  ;;  %v743_v1 = vadd.f32 %v1267_v20, %v605_v63  ;;  %v547_v2 = vpop.f32.mrf.mxu0  ;;  %v567_v3 = vpop.f32.mrf.mxu1 }
  0xd2   : > { %v720_v4 = vadd.f32 %v1267_v20, %v547_v2  ;;  %v728_v5 = vadd.f32 %v1267_v20, %v567_v3 }
  0xd3   : > { %vm767_vm11 = vcmp.gt.f32.partialorder %v735_v0, 0.0  ;;  %v799_v6 = vmul.f32 0.2, %v735_v0  ;;  %vm775_vm12 = vcmp.gt.f32.partialorder %v743_v1, 0.0  ;;  %v807_v7 = vmul.f32 0.2, %v743_v1 }
  0xd4   : > { %vm752_vm13 = vcmp.gt.f32.partialorder %v720_v4, 0.0  ;;  %v784_v8 = vmul.f32 0.2, %v720_v4  ;;  %vm760_vm14 = vcmp.gt.f32.partialorder %v728_v5, 0.0  ;;  %v792_v9 = vmul.f32 0.2, %v728_v5 }
  0xd5   : > { %v831_v10 = vsel %vm767_vm11, %v735_v0, %v799_v6  ;;  %v839_v11 = vsel %vm775_vm12, %v743_v1, %v807_v7 }
  0xd6   : > { %863 = vst [vmem:[%s1275_s7 + $0xb0] sm:$0xff] %v831_v10  ;;  %v816_v12 = vsel %vm752_vm13, %v720_v4, %v784_v8  ;;  %v824_v13 = vsel %vm760_vm14, %v728_v5, %v792_v9 }
  0xd7   : > { %871 = vst [vmem:[%s1275_s7 + $0xf0] sm:$0xff] %v839_v11 }
  0xd8   : > { %848 = vst [vmem:[%s1275_s7 + $0x38] sm:$0xff] %v816_v12  ;;  %v587_v14 = vpop.f32.mrf.mxu2  ;;  %v607_v15 = vpop.f32.mrf.mxu3 }
  0xd9   : > { %856 = vst [vmem:[%s1275_s7 + $0x78] sm:$0xff] %v824_v13  ;;  %v736_v16 = vadd.f32 %v1267_v20, %v587_v14  ;;  %v744_v17 = vadd.f32 %v1267_v20, %v607_v15 }
  0xdb   : > { %vm768_vm15 = vcmp.gt.f32.partialorder %v736_v16, 0.0  ;;  %v800_v18 = vmul.f32 0.2, %v736_v16  ;;  %vm776_vm0 = vcmp.gt.f32.partialorder %v744_v17, 0.0  ;;  %v808_v19 = vmul.f32 0.2, %v744_v17 }
  0xdd   : > { %v832_v21 = vsel %vm768_vm15, %v736_v16, %v800_v18  ;;  %v840_v22 = vsel %vm776_vm0, %v744_v17, %v808_v19 }
  0xde   : > { %864 = vst [vmem:[%s1275_s7 + $0xb8] sm:$0xff] %v832_v21 }
  0xdf   : > { %872 = vst [vmem:[%s1275_s7 + $0xf8] sm:$0xff] %v840_v22 }
  0xe0 PF: > { %s13_s14 = sadd.s32 1, %s1172_s14   ;;  %s1352_s12 = smov %s1168_s13 }
  0xe1   : > { %p10_p5 = scmp.ge.s32.totalorder %s13_s14, 4   ;;  %s1353_s13 = smov %s1355_s15 }
  0xe3   :  { %12 = sbr.rel (!%p10_p5) target bundleno = 2 (0x2), region = 76 }

// kernel: discriminator_forward.6
= control target key start
LH: loop header
LB: loop body
LE: loop exit
PB: predicated region body
PF: predicated region fallthrough
CT: control target
= control target key end

     0   :  { %s1703_s12 = smov 0   ;;  %s1705_s13 = smov 0   ;;  %s2007_s0 = inlined_call_operand.vmem [shape: bf16[128,1024], index: 0, kind: input, shape index: {}]   ;;  %s2008_s1 = inlined_call_operand.vmem [shape: bf16[1024,128], index: 1, kind: input, shape index: {}]   ;;  %s2009_s2 = inlined_call_operand.vmem [shape: f32[1,128], index: 2, kind: input, shape index: {}]   ;;  %s2010_s3 = inlined_call_operand.vmem [shape: f32[128,128], index: 3, kind: output, shape index: {}]  }
   0x1   :  { %s1707_s14 = smov 0   ;;  %s1709_s15 = smov 0  }
   0x2   :  { %s1711_s16 = smov 0  }
   0x3 LB: > { %s25_s17 = sadd.s32 1, %s1676_s15  ;;  %p48_p1 = scmp.ne.s32.totalorder %s1668_s13, %s1664_s12  ;;  %s1680_s16 = sphi %s1711_s16, %s13_s16   ;;  %s1676_s15 = sphi %s1709_s15, %s2014_s15   ;;  %s1672_s14 = sphi %s1707_s14, %s2013_s14   ;;  %s1668_s13 = sphi %s1705_s13, %s2012_s13   ;;  %s1664_s12 = sphi %s1703_s12, %s2011_s12  }
   0x4   : > { %p26_p0 = scmp.ge.s32.totalorder %s25_s17, 2  ;;  %p49_p2 = scmp.eq.s32.totalorder %s1680_s16, 0 }
   0x5   : > { %s41_s19 = sadd.s32 1, %s1668_s13  ;;  %p1265_p5 = scmp.ge.s32.totalorder %s1680_s16, 2 }
   0x6   : > { %s2016_s17 = smov (%p26_p0, %s25_s17), 0  ;;  %p50_p3 = por %p49_p2, %p48_p1 }
   0x7   : > { %s37_s18 = ssub.s32 %s1676_s15, %s2016_s17  ;;  %162 = sbr.rel (%p1265_p5) target bundleno = 48 (0x30), region = 20 }
   0x8   : > { %p39_p4 = scmp.eq.s32.totalorder %s37_s18, 0 }
   0xa   : > { %s1738_s20 = scalar_select %p39_p4, %s1668_s13, %s41_s19  }
   0xc   : > { %165 = sbr.rel (!%p50_p3) target bundleno = 48 (0x30), region = 24  ;;  %s167_s21 = sand.u32 (%p50_p3), 1, %s1668_s13  }
   0xd   : > { %s1535_s22 = sshll.u32 (%p50_p3), %s1676_s15, 4  ;;  %s1266_s23 = sshll.u32 (%p50_p3), %s167_s21, 8 }
   0xe   : > { %s1746_s26 = scalar_lea.vmem (%p50_p3), %s2007_s0, %s1535_s22  ;;  %s1751_s27 = scalar_lea.vmem (%p50_p3), [#allocation3], %s1266_s23 }
   0xf   : > { %v188_v0 = vld [vmem:[%s1746_s26] sm:$0xff] (%p50_p3)  ;;  %v190_v1 = vld [vmem:[%s1746_s26 + $0x8] sm:$0xff] (%p50_p3) }
  0x10   : > { %v192_v2 = vld [vmem:[%s1746_s26 + $0x20] sm:$0xff] (%p50_p3)  ;;  %189 = vst [vmem:[%s1751_s27] sm:$0xff] (%p50_p3), %v188_v0  ;;  %v194_v3 = vld [vmem:[%s1746_s26 + $0x28] sm:$0xff] (%p50_p3) }
  0x11   : > { %191 = vst [vmem:[%s1751_s27 + $0x8] sm:$0xff] %v190_v1  ;;  %v196_v4 = vld [vmem:[%s1746_s26 + $0x40] sm:$0xff]  ;;  %v198_v5 = vld [vmem:[%s1746_s26 + $0x48] sm:$0xff] }
  0x12   : > { %193 = vst [vmem:[%s1751_s27 + $0x10] sm:$0xff] %v192_v2  ;;  %v200_v6 = vld [vmem:[%s1746_s26 + $0x60] sm:$0xff]  ;;  %v202_v7 = vld [vmem:[%s1746_s26 + $0x68] sm:$0xff] }
  0x13   : > { %195 = vst [vmem:[%s1751_s27 + $0x18] sm:$0xff] %v194_v3  ;;  %v204_v8 = vld [vmem:[%s1746_s26 + $0x80] sm:$0xff]  ;;  %v206_v9 = vld [vmem:[%s1746_s26 + $0x88] sm:$0xff] }
  0x14   : > { %197 = vst [vmem:[%s1751_s27 + $0x20] sm:$0xff] %v196_v4  ;;  %v208_v10 = vld [vmem:[%s1746_s26 + $0xa0] sm:$0xff]  ;;  %v210_v11 = vld [vmem:[%s1746_s26 + $0xa8] sm:$0xff] }
  0x15   : > { %199 = vst [vmem:[%s1751_s27 + $0x28] sm:$0xff] %v198_v5  ;;  %v212_v12 = vld [vmem:[%s1746_s26 + $0xc0] sm:$0xff]  ;;  %v214_v13 = vld [vmem:[%s1746_s26 + $0xc8] sm:$0xff] }
  0x16   : > { %201 = vst [vmem:[%s1751_s27 + $0x30] sm:$0xff] %v200_v6  ;;  %v216_v14 = vld [vmem:[%s1746_s26 + $0xe0] sm:$0xff]  ;;  %v218_v15 = vld [vmem:[%s1746_s26 + $0xe8] sm:$0xff] }
  0x17   : > { %203 = vst [vmem:[%s1751_s27 + $0x38] sm:$0xff] %v202_v7  ;;  %v220_v16 = vld [vmem:[%s1746_s26 + $0x100] sm:$0xff]  ;;  %v222_v17 = vld [vmem:[%s1746_s26 + $0x108] sm:$0xff] }
  0x18   : > { %205 = vst [vmem:[%s1751_s27 + $0x40] sm:$0xff] %v204_v8  ;;  %v224_v18 = vld [vmem:[%s1746_s26 + $0x120] sm:$0xff]  ;;  %v226_v19 = vld [vmem:[%s1746_s26 + $0x128] sm:$0xff] }
  0x19   : > { %207 = vst [vmem:[%s1751_s27 + $0x48] sm:$0xff] %v206_v9  ;;  %v228_v20 = vld [vmem:[%s1746_s26 + $0x140] sm:$0xff]  ;;  %v230_v21 = vld [vmem:[%s1746_s26 + $0x148] sm:$0xff] }
  0x1a   : > { %209 = vst [vmem:[%s1751_s27 + $0x50] sm:$0xff] %v208_v10  ;;  %v232_v22 = vld [vmem:[%s1746_s26 + $0x160] sm:$0xff]  ;;  %v234_v23 = vld [vmem:[%s1746_s26 + $0x168] sm:$0xff] }
  0x1b   : > { %211 = vst [vmem:[%s1751_s27 + $0x58] sm:$0xff] %v210_v11  ;;  %v236_v24 = vld [vmem:[%s1746_s26 + $0x180] sm:$0xff]  ;;  %v238_v25 = vld [vmem:[%s1746_s26 + $0x188] sm:$0xff] }
  0x1c   : > { %213 = vst [vmem:[%s1751_s27 + $0x60] sm:$0xff] %v212_v12  ;;  %v240_v26 = vld [vmem:[%s1746_s26 + $0x1a0] sm:$0xff]  ;;  %v242_v27 = vld [vmem:[%s1746_s26 + $0x1a8] sm:$0xff] }
  0x1d   : > { %215 = vst [vmem:[%s1751_s27 + $0x68] sm:$0xff] %v214_v13  ;;  %v244_v28 = vld [vmem:[%s1746_s26 + $0x1c0] sm:$0xff]  ;;  %v246_v29 = vld [vmem:[%s1746_s26 + $0x1c8] sm:$0xff] }
  0x1e   : > { %217 = vst [vmem:[%s1751_s27 + $0x70] sm:$0xff] %v216_v14  ;;  %v248_v30 = vld [vmem:[%s1746_s26 + $0x1e0] sm:$0xff]  ;;  %v250_v31 = vld [vmem:[%s1746_s26 + $0x1e8] sm:$0xff] }
  0x1f   : > { %219 = vst [vmem:[%s1751_s27 + $0x78] sm:$0xff] %v218_v15 }
  0x20   : > { %221 = vst [vmem:[%s1751_s27 + $0x80] sm:$0xff] %v220_v16 }
  0x21   : > { %223 = vst [vmem:[%s1751_s27 + $0x88] sm:$0xff] %v222_v17 }
  0x22   : > { %225 = vst [vmem:[%s1751_s27 + $0x90] sm:$0xff] %v224_v18 }
  0x23   : > { %227 = vst [vmem:[%s1751_s27 + $0x98] sm:$0xff] %v226_v19 }
  0x24   : > { %229 = vst [vmem:[%s1751_s27 + $0xa0] sm:$0xff] %v228_v20 }
  0x25   : > { %231 = vst [vmem:[%s1751_s27 + $0xa8] sm:$0xff] %v230_v21 }
  0x26   : > { %233 = vst [vmem:[%s1751_s27 + $0xb0] sm:$0xff] %v232_v22 }
  0x27   : > { %235 = vst [vmem:[%s1751_s27 + $0xb8] sm:$0xff] %v234_v23 }
  0x28   : > { %237 = vst [vmem:[%s1751_s27 + $0xc0] sm:$0xff] %v236_v24 }
  0x29   : > { %239 = vst [vmem:[%s1751_s27 + $0xc8] sm:$0xff] %v238_v25 }
  0x2a   : > { %241 = vst [vmem:[%s1751_s27 + $0xd0] sm:$0xff] %v240_v26 }
  0x2b   : > { %243 = vst [vmem:[%s1751_s27 + $0xd8] sm:$0xff] %v242_v27 }
  0x2c   : > { %245 = vst [vmem:[%s1751_s27 + $0xe0] sm:$0xff] %v244_v28 }
  0x2d   : > { %247 = vst [vmem:[%s1751_s27 + $0xe8] sm:$0xff] %v246_v29 }
  0x2e   : > { %249 = vst [vmem:[%s1751_s27 + $0xf0] sm:$0xff] %v248_v30 }
  0x2f   : > { %251 = vst [vmem:[%s1751_s27 + $0xf8] sm:$0xff] %v250_v31 }
  0x30 PF: > { %p1269_p6 = scmp.ge.s32.totalorder %s1680_s16, 1  ;;  %p268_p7 = scmp.lt.s32.totalorder %s1680_s16, 3 }
  0x32   : > { %p269_p8 = pnand %p1269_p6, %p268_p7 }
  0x33   : > { %s275_s28 = sand.u32 (!%p269_p8), 1, %s1664_s12   ;;  %s1271_s29 = sshll.u32 (!%p269_p8), %s1672_s14, 6 }
  0x34   : > { %272 = sbr.rel (%p269_p8) target bundleno = 394 (0x18a), region = 51  ;;  %s1270_s30 = sshll.u32 (!%p269_p8), %s275_s28, 8 }
  0x35   : > { %p315_p9 = scmp.lt.s32.totalorder (!%p269_p8), %s1271_s29, 127  ;;  %s1823_s8 = scalar_lea.vmem (!%p269_p8), [#allocation3], %s1270_s30 }
  0x36   : > { %p1273_p10 = scmp.ne.s32.totalorder (!%p269_p8), %s1672_s14, 0 }
  0x39   : > { %s2018_s29 = smov (!%p315_p9, %s1271_s29), 127  ;;  %338 = sbr.rel (%p1273_p10) target bundleno = 79 (0x4f), region = 59 }
  0x3a   : > { %s1272_s4 = sshll.u32 %s2018_s29, 2 }
  0x3b   : > { %s1821_s7 = scalar_lea.vmem %s2008_s1, %s1272_s4 }
  0x3e   : > { %v1682_v32 = vmov 0.0  }
  0x3f   : > { %339 = vst [vmem:[#allocation2 + $0x30] sm:$0xff] %v1682_v32 }
  0x40   : > { %340 = vst [vmem:[#allocation2] sm:$0xff] %v1682_v32 }
  0x41   : > { %341 = vst [vmem:[#allocation2 + $0x58] sm:$0xff] %v1682_v32 }
  0x42   : > { %342 = vst [vmem:[#allocation2 + $0x18] sm:$0xff] %v1682_v32 }
  0x43   : > { %343 = vst [vmem:[#allocation2 + $0x50] sm:$0xff] %v1682_v32 }
  0x44   : > { %344 = vst [vmem:[#allocation2 + $0x68] sm:$0xff] %v1682_v32 }
  0x45   : > { %345 = vst [vmem:[#allocation2 + $0x8] sm:$0xff] %v1682_v32 }
  0x46   : > { %346 = vst [vmem:[#allocation2 + $0x48] sm:$0xff] %v1682_v32 }
  0x47   : > { %347 = vst [vmem:[#allocation2 + $0x40] sm:$0xff] %v1682_v32 }
  0x48   : > { %348 = vst [vmem:[#allocation2 + $0x20] sm:$0xff] %v1682_v32 }
  0x49   : > { %349 = vst [vmem:[#allocation2 + $0x10] sm:$0xff] %v1682_v32 }
  0x4a   : > { %350 = vst [vmem:[#allocation2 + $0x38] sm:$0xff] %v1682_v32 }
  0x4b   : > { %351 = vst [vmem:[#allocation2 + $0x60] sm:$0xff] %v1682_v32 }
  0x4c   : > { %352 = vst [vmem:[#allocation2 + $0x70] sm:$0xff] %v1682_v32 }
  0x4d   : > { %353 = vst [vmem:[#allocation2 + $0x78] sm:$0xff] %v1682_v32 }
  0x4e   : > { %354 = vst [vmem:[#allocation2 + $0x28] sm:$0xff] %v1682_v32 }
  0x4f PF: > { %v1575_v33 = vld [vmem:[%s1821_s7 + $0x38] sm:$0xff]  ;;  %v1574_v37 = vld [vmem:[%s1821_s7 + $0x30] sm:$0xff]  ;;  %v1573_v41 = vld [vmem:[%s1821_s7 + $0x28] sm:$0xff]  ;;  %p1530_p11 = scmp.ne.s32.totalorder %s1672_s14, 1 }
  0x50   : > { %v1583_v34 = vld [vmem:[%s1821_s7 + $0x78] sm:$0xff]  ;;  %819 = vmatpush.bf16.msra.mxu0 %v1575_v33  ;;  %v1582_v38 = vld [vmem:[%s1821_s7 + $0x70] sm:$0xff]  ;;  %v1581_v42 = vld [vmem:[%s1821_s7 + $0x68] sm:$0xff] }
  0x51   : > { %v1591_v35 = vld [vmem:[%s1821_s7 + $0xb8] sm:$0xff]  ;;  %868 = vmatpush.bf16.msra.mxu1 %v1583_v34  ;;  %v1590_v39 = vld [vmem:[%s1821_s7 + $0xb0] sm:$0xff]  ;;  %v1589_v43 = vld [vmem:[%s1821_s7 + $0xa8] sm:$0xff] }
  0x52   : > { %v1599_v36 = vld [vmem:[%s1821_s7 + $0xf8] sm:$0xff]  ;;  %917 = vmatpush.bf16.msra.mxu2 %v1591_v35  ;;  %v1598_v40 = vld [vmem:[%s1821_s7 + $0xf0] sm:$0xff]  ;;  %v1597_v44 = vld [vmem:[%s1821_s7 + $0xe8] sm:$0xff] }
  0x53   : > { %966 = vmatpush.bf16.msra.mxu3 %v1599_v36  ;;  %v1572_v45 = vld [vmem:[%s1821_s7 + $0x20] sm:$0xff]  ;;  %v1571_v49 = vld [vmem:[%s1821_s7 + $0x18] sm:$0xff]  ;;  %v1570_v53 = vld [vmem:[%s1821_s7 + $0x10] sm:$0xff] }
  0x54   : > { %820 = vmatpush.bf16.msra.mxu0 %v1574_v37  ;;  %v1580_v46 = vld [vmem:[%s1821_s7 + $0x60] sm:$0xff]  ;;  %v1579_v50 = vld [vmem:[%s1821_s7 + $0x58] sm:$0xff]  ;;  %v1578_v54 = vld [vmem:[%s1821_s7 + $0x50] sm:$0xff] }
  0x55   : > { %869 = vmatpush.bf16.msra.mxu1 %v1582_v38  ;;  %v1588_v47 = vld [vmem:[%s1821_s7 + $0xa0] sm:$0xff]  ;;  %v1587_v51 = vld [vmem:[%s1821_s7 + $0x98] sm:$0xff]  ;;  %v1586_v55 = vld [vmem:[%s1821_s7 + $0x90] sm:$0xff] }
  0x56   : > { %918 = vmatpush.bf16.msra.mxu2 %v1590_v39  ;;  %v1596_v48 = vld [vmem:[%s1821_s7 + $0xe0] sm:$0xff]  ;;  %v1595_v52 = vld [vmem:[%s1821_s7 + $0xd8] sm:$0xff]  ;;  %v1594_v56 = vld [vmem:[%s1821_s7 + $0xd0] sm:$0xff] }
  0x57   : > { %967 = vmatpush.bf16.msra.mxu3 %v1598_v40  ;;  %v1569_v57 = vld [vmem:[%s1821_s7 + $0x8] sm:$0xff]  ;;  %v1568_v61 = vld [vmem:[%s1821_s7] sm:$0xff]  ;;  %v1538_v2 = vld [vmem:[%s1823_s8 + $0xc] sm:$0xf0] }
  0x58   : > { %821 = vmatpush.bf16.msra.mxu0 %v1573_v41  ;;  %v1577_v58 = vld [vmem:[%s1821_s7 + $0x48] sm:$0xff]  ;;  %v1576_v62 = vld [vmem:[%s1821_s7 + $0x40] sm:$0xff]  ;;  %v1278_v4 = vld [vmem:[%s1823_s8 + $0x10] sm:$0xf0] }
  0x59   : > { %870 = vmatpush.bf16.msra.mxu1 %v1581_v42  ;;  %v1585_v59 = vld [vmem:[%s1821_s7 + $0x88] sm:$0xff]  ;;  %v1584_v63 = vld [vmem:[%s1821_s7 + $0x80] sm:$0xff]  ;;  %v1539_v6 = vld [vmem:[%s1823_s8 + $0x14] sm:$0xf0] }
  0x5a   : > { %919 = vmatpush.bf16.msra.mxu2 %v1589_v43  ;;  %v1593_v60 = vld [vmem:[%s1821_s7 + $0xc8] sm:$0xff]  ;;  %v1592_v0 = vld [vmem:[%s1821_s7 + $0xc0] sm:$0xff]  ;;  %v1286_v8 = vld [vmem:[%s1823_s8 + $0x18] sm:$0xf0] }
  0x5b   : > { %968 = vmatpush.bf16.msra.mxu3 %v1597_v44  ;;  %v1276_v1 = vld [vmem:[%s1823_s8] sm:$0xf]  ;;  %v1536_v3 = vld [vmem:[%s1823_s8 + $0x4] sm:$0xf]  ;;  %v1284_v5 = vld [vmem:[%s1823_s8 + $0x8] sm:$0xf] }
  0x5c   : > { %822 = vmatpush.bf16.msra.mxu0 %v1572_v45  ;;  %v1537_v7 = vld [vmem:[%s1823_s8 + $0xc] sm:$0xf]  ;;  %v1277_v9 = vor.u32 %v1538_v2, %v1276_v1  ;;  %v1281_v10 = vor.u32 %v1536_v3, %v1278_v4  ;;  %v1285_v11 = vor.u32 %v1539_v6, %v1284_v5  ;;  %v1292_v13 = vld [vmem:[%s1823_s8 + $0x20] sm:$0xf]  ;;  %v1542_v14 = vld [vmem:[%s1823_s8 + $0x2c] sm:$0xf0] }
  0x5d   : > { %871 = vmatpush.bf16.msra.mxu1 %v1580_v46  ;;  %v1289_v12 = vor.u32 %v1537_v7, %v1286_v8  ;;  %v1540_v15 = vld [vmem:[%s1823_s8 + $0x24] sm:$0xf]  ;;  %v1294_v16 = vld [vmem:[%s1823_s8 + $0x30] sm:$0xf0]  ;;  %v1300_v17 = vld [vmem:[%s1823_s8 + $0x28] sm:$0xf]  ;;  %v1293_v21 = vor.u32 %v1542_v14, %v1292_v13 }
  0x5e   : > { %920 = vmatpush.bf16.msra.mxu2 %v1588_v47  ;;  %v1543_v18 = vld [vmem:[%s1823_s8 + $0x34] sm:$0xf0]  ;;  %v1541_v19 = vld [vmem:[%s1823_s8 + $0x2c] sm:$0xf]  ;;  %v1302_v20 = vld [vmem:[%s1823_s8 + $0x38] sm:$0xf0]  ;;  %v1297_v22 = vor.u32 %v1540_v15, %v1294_v16 }
  0x5f   : > { %969 = vmatpush.bf16.msra.mxu3 %v1596_v48  ;;  %v1301_v23 = vor.u32 %v1543_v18, %v1300_v17  ;;  %v1305_v24 = vor.u32 %v1541_v19, %v1302_v20  ;;  %v1308_v25 = vld [vmem:[%s1823_s8 + $0x40] sm:$0xf]  ;;  %v1546_v26 = vld [vmem:[%s1823_s8 + $0x4c] sm:$0xf0]  ;;  %v1544_v27 = vld [vmem:[%s1823_s8 + $0x44] sm:$0xf] }
  0x60   : > { %823 = vmatpush.bf16.msra.mxu0 %v1571_v49  ;;  %v1310_v28 = vld [vmem:[%s1823_s8 + $0x50] sm:$0xf0]  ;;  %v1316_v29 = vld [vmem:[%s1823_s8 + $0x48] sm:$0xf]  ;;  %v1547_v30 = vld [vmem:[%s1823_s8 + $0x54] sm:$0xf0]  ;;  %v1309_v33 = vor.u32 %v1546_v26, %v1308_v25 }
  0x61   : > { %872 = vmatpush.bf16.msra.mxu1 %v1579_v50  ;;  %v1545_v31 = vld [vmem:[%s1823_s8 + $0x4c] sm:$0xf]  ;;  %v1318_v32 = vld [vmem:[%s1823_s8 + $0x58] sm:$0xf0]  ;;  %v1313_v34 = vor.u32 %v1544_v27, %v1310_v28  ;;  %v1317_v35 = vor.u32 %v1547_v30, %v1316_v29  ;;  %v1324_v37 = vld [vmem:[%s1823_s8 + $0x60] sm:$0xf] }
  0x62   : > { %921 = vmatpush.bf16.msra.mxu2 %v1587_v51  ;;  %v1321_v36 = vor.u32 %v1545_v31, %v1318_v32  ;;  %v1550_v38 = vld [vmem:[%s1823_s8 + $0x6c] sm:$0xf0]  ;;  %v1548_v39 = vld [vmem:[%s1823_s8 + $0x64] sm:$0xf]  ;;  %v1326_v40 = vld [vmem:[%s1823_s8 + $0x70] sm:$0xf0] }
  0x63   : > { %970 = vmatpush.bf16.msra.mxu3 %v1595_v52  ;;  %v1332_v41 = vld [vmem:[%s1823_s8 + $0x68] sm:$0xf]  ;;  %v1551_v42 = vld [vmem:[%s1823_s8 + $0x74] sm:$0xf0]  ;;  %v1549_v43 = vld [vmem:[%s1823_s8 + $0x6c] sm:$0xf]  ;;  %v1325_v45 = vor.u32 %v1550_v38, %v1324_v37  ;;  %v1329_v46 = vor.u32 %v1548_v39, %v1326_v40 }
  0x64   : > { %824 = vmatpush.bf16.msra.mxu0 %v1570_v53  ;;  %v1334_v44 = vld [vmem:[%s1823_s8 + $0x78] sm:$0xf0]  ;;  %v1333_v47 = vor.u32 %v1551_v42, %v1332_v41  ;;  %v1340_v49 = vld [vmem:[%s1823_s8 + $0x80] sm:$0xf]  ;;  %v1554_v50 = vld [vmem:[%s1823_s8 + $0x8c] sm:$0xf0] }
  0x65   : > { %873 = vmatpush.bf16.msra.mxu1 %v1578_v54  ;;  %v1337_v48 = vor.u32 %v1549_v43, %v1334_v44  ;;  %v1552_v51 = vld [vmem:[%s1823_s8 + $0x84] sm:$0xf]  ;;  %v1342_v52 = vld [vmem:[%s1823_s8 + $0x90] sm:$0xf0]  ;;  %v1348_v53 = vld [vmem:[%s1823_s8 + $0x88] sm:$0xf] }
  0x66   : > { %922 = vmatpush.bf16.msra.mxu2 %v1586_v55  ;;  %v1555_v54 = vld [vmem:[%s1823_s8 + $0x94] sm:$0xf0]  ;;  %v1553_v55 = vld [vmem:[%s1823_s8 + $0x8c] sm:$0xf]  ;;  %v1364_v1 = vld [vmem:[%s1823_s8 + $0xa8] sm:$0xf] }
  0x67   : > { %971 = vmatpush.bf16.msra.mxu3 %v1594_v56  ;;  %v1350_v56 = vld [vmem:[%s1823_s8 + $0x98] sm:$0xf0]  ;;  %v1559_v2 = vld [vmem:[%s1823_s8 + $0xb4] sm:$0xf0]  ;;  %v1557_v3 = vld [vmem:[%s1823_s8 + $0xac] sm:$0xf] }
  0x68   : > { %825 = vmatpush.bf16.msra.mxu0 %v1569_v57  ;;  %v1341_v57 = vor.u32 %v1554_v50, %v1340_v49  ;;  %v1366_v4 = vld [vmem:[%s1823_s8 + $0xb8] sm:$0xf0]  ;;  %v1365_v7 = vor.u32 %v1559_v2, %v1364_v1  ;;  %v1380_v13 = vld [vmem:[%s1823_s8 + $0xc8] sm:$0xf]  ;;  %v1563_v14 = vld [vmem:[%s1823_s8 + $0xd4] sm:$0xf0] }
  0x69   : > { %874 = vmatpush.bf16.msra.mxu1 %v1577_v58  ;;  %v1345_v58 = vor.u32 %v1552_v51, %v1342_v52  ;;  %v1369_v8 = vor.u32 %v1557_v3, %v1366_v4  ;;  %v1561_v15 = vld [vmem:[%s1823_s8 + $0xcc] sm:$0xf]  ;;  %v1382_v16 = vld [vmem:[%s1823_s8 + $0xd8] sm:$0xf0]  ;;  %v1381_v19 = vor.u32 %v1563_v14, %v1380_v13  ;;  %v1396_v25 = vld [vmem:[%s1823_s8 + $0xe8] sm:$0xf] }
  0x6a   : > { %923 = vmatpush.bf16.msra.mxu2 %v1585_v59  ;;  %v1349_v59 = vor.u32 %v1555_v54, %v1348_v53  ;;  %v1385_v20 = vor.u32 %v1561_v15, %v1382_v16  ;;  %v1567_v26 = vld [vmem:[%s1823_s8 + $0xf4] sm:$0xf0]  ;;  %v1565_v27 = vld [vmem:[%s1823_s8 + $0xec] sm:$0xf]  ;;  %v1398_v28 = vld [vmem:[%s1823_s8 + $0xf8] sm:$0xf0] }
  0x6b   : > { %972 = vmatpush.bf16.msra.mxu3 %v1593_v60  ;;  %v1353_v60 = vor.u32 %v1553_v55, %v1350_v56  ;;  %v1397_v31 = vor.u32 %v1567_v26, %v1396_v25  ;;  %v1401_v32 = vor.u32 %v1565_v27, %v1398_v28  ;;  %v355_v41 = vld [vmem:[#allocation2 + $0x30] sm:$0xff]  ;;  %v356_v50 = vld [vmem:[#allocation2] sm:$0xff]  ;;  %v358_v4 = vld [vmem:[#allocation2 + $0x18] sm:$0xff] }
  0x6c   : > { %826 = vmatpush.bf16.msra.mxu0 %v1568_v61  ;;  %v1356_v61 = vld [vmem:[%s1823_s8 + $0xa0] sm:$0xf]  ;;  %v359_v13 = vld [vmem:[#allocation2 + $0x50] sm:$0xff] }
  0x6d   : > { %875 = vmatpush.bf16.msra.mxu1 %v1576_v62  ;;  %v1558_v62 = vld [vmem:[%s1823_s8 + $0xac] sm:$0xf0] }
  0x6e   : > { %924 = vmatpush.bf16.msra.mxu2 %v1584_v63  ;;  %v1556_v63 = vld [vmem:[%s1823_s8 + $0xa4] sm:$0xf]  ;;  %v1357_v5 = vor.u32 %v1558_v62, %v1356_v61 }
  0x6f   : > { %973 = vmatpush.bf16.msra.mxu3 %v1592_v0  ;;  %827 = vmatmul.bf16.vlgmr.msra.gmra.mxu0 %v1277_v9  ;;  %v1358_v0 = vld [vmem:[%s1823_s8 + $0xb0] sm:$0xf0]  ;;  %v1372_v9 = vld [vmem:[%s1823_s8 + $0xc0] sm:$0xf] }
  0x70   : > { %876 = vmatmul.bf16.vlgmr.msra.gmra.mxu1 %v1281_v10  ;;  %v1361_v6 = vor.u32 %v1556_v63, %v1358_v0  ;;  %v1562_v10 = vld [vmem:[%s1823_s8 + $0xcc] sm:$0xf0] }
  0x71   : > { %925 = vmatmul.bf16.vlgmr.msra.gmra.mxu2 %v1285_v11  ;;  %v1560_v11 = vld [vmem:[%s1823_s8 + $0xc4] sm:$0xf]  ;;  %v1373_v17 = vor.u32 %v1562_v10, %v1372_v9 }
  0x72   : > { %974 = vmatmul.bf16.vlgmr.msra.gmra.mxu3 %v1289_v12  ;;  %v1374_v12 = vld [vmem:[%s1823_s8 + $0xd0] sm:$0xf0] }
  0x73   : > { %v1377_v18 = vor.u32 %v1560_v11, %v1374_v12 }
  0x7f   : > { %832 = vmatmul.bf16.gmra.mxu0 %v1293_v21  ;;  %v1388_v21 = vld [vmem:[%s1823_s8 + $0xe0] sm:$0xf] }
  0x80   : > { %881 = vmatmul.bf16.gmra.mxu1 %v1297_v22  ;;  %v1566_v22 = vld [vmem:[%s1823_s8 + $0xec] sm:$0xf0] }
  0x81   : > { %930 = vmatmul.bf16.gmra.mxu2 %v1301_v23  ;;  %v1564_v23 = vld [vmem:[%s1823_s8 + $0xe4] sm:$0xf]  ;;  %v1389_v29 = vor.u32 %v1566_v22, %v1388_v21  ;;  %v360_v22 = vld [vmem:[#allocation2 + $0x68] sm:$0xff] }
  0x82   : > { %979 = vmatmul.bf16.gmra.mxu3 %v1305_v24  ;;  %v1390_v24 = vld [vmem:[%s1823_s8 + $0xf0] sm:$0xf0] }
  0x83   : > { %v1393_v30 = vor.u32 %v1564_v23, %v1390_v24 }
  0x8f   : > { %837 = vmatmul.bf16.gmra.mxu0 %v1309_v33 }
  0x90   : > { %886 = vmatmul.bf16.gmra.mxu1 %v1313_v34 }
  0x91   : > { %935 = vmatmul.bf16.gmra.mxu2 %v1317_v35 }
  0x92   : > { %984 = vmatmul.bf16.gmra.mxu3 %v1321_v36 }
  0x9f   : > { %842 = vmatmul.bf16.gmra.mxu0 %v1325_v45 }
  0xa0   : > { %891 = vmatmul.bf16.gmra.mxu1 %v1329_v46 }
  0xa1   : > { %940 = vmatmul.bf16.gmra.mxu2 %v1333_v47 }
  0xa2   : > { %989 = vmatmul.bf16.gmra.mxu3 %v1337_v48 }
  0xaf   : > { %847 = vmatmul.bf16.gmra.mxu0 %v1341_v57 }
  0xb0   : > { %896 = vmatmul.bf16.gmra.mxu1 %v1345_v58 }
  0xb1   : > { %945 = vmatmul.bf16.gmra.mxu2 %v1349_v59  ;;  %v357_v59 = vld [vmem:[#allocation2 + $0x58] sm:$0xff] }
  0xb2   : > { %994 = vmatmul.bf16.gmra.mxu3 %v1353_v60 }
  0xbf   : > { %852 = vmatmul.bf16.gmra.mxu0 %v1357_v5 }
  0xc0   : > { %901 = vmatmul.bf16.gmra.mxu1 %v1361_v6 }
  0xc1   : > { %950 = vmatmul.bf16.gmra.mxu2 %v1365_v7 }
  0xc2   : > { %999 = vmatmul.bf16.gmra.mxu3 %v1369_v8 }
  0xcf   : > { %857 = vmatmul.bf16.gmra.mxu0 %v1373_v17 }
  0xd0   : > { %906 = vmatmul.bf16.gmra.mxu1 %v1377_v18 }
  0xd1   : > { %955 = vmatmul.bf16.gmra.mxu2 %v1381_v19 }
  0xd2   : > { %1004 = vmatmul.bf16.gmra.mxu3 %v1385_v20 }
  0xdf   : > { %862 = vmatmul.bf16.gmra.mxu0 %v1389_v29 }
  0xe0   : > { %911 = vmatmul.bf16.gmra.mxu1 %v1393_v30 }
  0xe1   : > { %960 = vmatmul.bf16.gmra.mxu2 %v1397_v31  ;;  %v361_v31 = vld [vmem:[#allocation2 + $0x8] sm:$0xff] }
  0xe2   : > { %1009 = vmatmul.bf16.gmra.mxu3 %v1401_v32 }
  0xec   : > { %v828_v33 = vpop.f32.mrf.mxu0 }
  0xed   : > { %v877_v34 = vpop.f32.mrf.mxu1 }
  0xee   : > { %v878_v35 = vadd.f32 %v877_v34, %v828_v33 }
  0xf4   : > { %v926_v36 = vpop.f32.mrf.mxu2  ;;  %v830_v39 = vpop.f32.mrf.mxu0 }
  0xf5   : > { %v975_v37 = vpop.f32.mrf.mxu3  ;;  %v927_v38 = vadd.f32 %v926_v36, %v878_v35  ;;  %v879_v40 = vpop.f32.mrf.mxu1 }
  0xf6   : > { %v880_v44 = vadd.f32 %v879_v40, %v830_v39  ;;  %v362_v40 = vld [vmem:[#allocation2 + $0x48] sm:$0xff] }
  0xf7   : > { %v976_v42 = vadd.f32 %v975_v37, %v927_v38 }
  0xf9   : > { %v1015_v43 = vadd.f32 %v976_v42, %v355_v41 }
  0xfb   : > { %1031 = vst [vmem:[#allocation2 + $0x30] sm:$0xff] %v1015_v43 }
  0xfc   : > { %v928_v45 = vpop.f32.mrf.mxu2  ;;  %v833_v48 = vpop.f32.mrf.mxu0 }
  0xfd   : > { %v977_v46 = vpop.f32.mrf.mxu3  ;;  %v929_v47 = vadd.f32 %v928_v45, %v880_v44  ;;  %v882_v49 = vpop.f32.mrf.mxu1 }
  0xfe   : > { %v883_v53 = vadd.f32 %v882_v49, %v833_v48  ;;  %v363_v49 = vld [vmem:[#allocation2 + $0x40] sm:$0xff] }
  0xff   : > { %v978_v51 = vadd.f32 %v977_v46, %v929_v47 }
 0x101   : > { %v1016_v52 = vadd.f32 %v978_v51, %v356_v50 }
 0x103   : > { %1032 = vst [vmem:[#allocation2] sm:$0xff] %v1016_v52 }
 0x104   : > { %v931_v54 = vpop.f32.mrf.mxu2  ;;  %v835_v57 = vpop.f32.mrf.mxu0 }
 0x105   : > { %v980_v55 = vpop.f32.mrf.mxu3  ;;  %v932_v56 = vadd.f32 %v931_v54, %v883_v53  ;;  %v884_v58 = vpop.f32.mrf.mxu1 }
 0x106   : > { %v885_v62 = vadd.f32 %v884_v58, %v835_v57  ;;  %v364_v58 = vld [vmem:[#allocation2 + $0x20] sm:$0xff] }
 0x107   : > { %v981_v60 = vadd.f32 %v980_v55, %v932_v56 }
 0x109   : > { %v1017_v61 = vadd.f32 %v981_v60, %v357_v59 }
 0x10b   : > { %1033 = vst [vmem:[#allocation2 + $0x58] sm:$0xff] %v1017_v61 }
 0x10c   : > { %v933_v63 = vpop.f32.mrf.mxu2  ;;  %v838_v2 = vpop.f32.mrf.mxu0 }
 0x10d   : > { %v982_v0 = vpop.f32.mrf.mxu3  ;;  %v934_v1 = vadd.f32 %v933_v63, %v885_v62  ;;  %v887_v3 = vpop.f32.mrf.mxu1 }
 0x10e   : > { %v888_v7 = vadd.f32 %v887_v3, %v838_v2  ;;  %v365_v3 = vld [vmem:[#allocation2 + $0x10] sm:$0xff] }
 0x10f   : > { %v983_v5 = vadd.f32 %v982_v0, %v934_v1 }
 0x111   : > { %v1018_v6 = vadd.f32 %v983_v5, %v358_v4 }
 0x113   : > { %1034 = vst [vmem:[#allocation2 + $0x18] sm:$0xff] %v1018_v6 }
 0x114   : > { %v936_v8 = vpop.f32.mrf.mxu2  ;;  %v840_v11 = vpop.f32.mrf.mxu0 }
 0x115   : > { %v985_v9 = vpop.f32.mrf.mxu3  ;;  %v937_v10 = vadd.f32 %v936_v8, %v888_v7  ;;  %v889_v12 = vpop.f32.mrf.mxu1 }
 0x116   : > { %v890_v16 = vadd.f32 %v889_v12, %v840_v11  ;;  %v366_v12 = vld [vmem:[#allocation2 + $0x38] sm:$0xff] }
 0x117   : > { %v986_v14 = vadd.f32 %v985_v9, %v937_v10 }
 0x119   : > { %v1019_v15 = vadd.f32 %v986_v14, %v359_v13 }
 0x11b   : > { %1035 = vst [vmem:[#allocation2 + $0x50] sm:$0xff] %v1019_v15 }
 0x11c   : > { %v938_v17 = vpop.f32.mrf.mxu2  ;;  %v843_v20 = vpop.f32.mrf.mxu0 }
 0x11d   : > { %v987_v18 = vpop.f32.mrf.mxu3  ;;  %v939_v19 = vadd.f32 %v938_v17, %v890_v16  ;;  %v892_v21 = vpop.f32.mrf.mxu1 }
 0x11e   : > { %v893_v25 = vadd.f32 %v892_v21, %v843_v20  ;;  %v367_v21 = vld [vmem:[#allocation2 + $0x60] sm:$0xff] }
 0x11f   : > { %v988_v23 = vadd.f32 %v987_v18, %v939_v19 }
 0x121   : > { %v1020_v24 = vadd.f32 %v988_v23, %v360_v22 }
 0x123   : > { %1036 = vst [vmem:[#allocation2 + $0x68] sm:$0xff] %v1020_v24 }
 0x124   : > { %v941_v26 = vpop.f32.mrf.mxu2  ;;  %v845_v29 = vpop.f32.mrf.mxu0 }
 0x125   : > { %v990_v27 = vpop.f32.mrf.mxu3  ;;  %v942_v28 = vadd.f32 %v941_v26, %v893_v25  ;;  %v894_v30 = vpop.f32.mrf.mxu1 }
 0x126   : > { %v895_v34 = vadd.f32 %v894_v30, %v845_v29 }
 0x127   : > { %v991_v32 = vadd.f32 %v990_v27, %v942_v28  ;;  %v368_v28 = vld [vmem:[#allocation2 + $0x70] sm:$0xff] }
 0x129   : > { %v1021_v33 = vadd.f32 %v991_v32, %v361_v31 }
 0x12b   : > { %1037 = vst [vmem:[#allocation2 + $0x8] sm:$0xff] %v1021_v33 }
 0x12c   : > { %v943_v35 = vpop.f32.mrf.mxu2  ;;  %v848_v38 = vpop.f32.mrf.mxu0 }
 0x12d   : > { %v992_v36 = vpop.f32.mrf.mxu3  ;;  %v944_v37 = vadd.f32 %v943_v35, %v895_v34  ;;  %v897_v39 = vpop.f32.mrf.mxu1 }
 0x12e   : > { %v898_v43 = vadd.f32 %v897_v39, %v848_v38 }
 0x12f   : > { %v993_v41 = vadd.f32 %v992_v36, %v944_v37  ;;  %v369_v37 = vld [vmem:[#allocation2 + $0x78] sm:$0xff] }
 0x131   : > { %v1022_v42 = vadd.f32 %v993_v41, %v362_v40 }
 0x133   : > { %1038 = vst [vmem:[#allocation2 + $0x48] sm:$0xff] %v1022_v42 }
 0x134   : > { %v946_v44 = vpop.f32.mrf.mxu2  ;;  %v850_v47 = vpop.f32.mrf.mxu0 }
 0x135   : > { %v995_v45 = vpop.f32.mrf.mxu3  ;;  %v947_v46 = vadd.f32 %v946_v44, %v898_v43  ;;  %v899_v48 = vpop.f32.mrf.mxu1 }
 0x136   : > { %v900_v52 = vadd.f32 %v899_v48, %v850_v47 }
 0x137   : > { %v996_v50 = vadd.f32 %v995_v45, %v947_v46  ;;  %v370_v45 = vld [vmem:[#allocation2 + $0x28] sm:$0xff] }
 0x139   : > { %v1023_v51 = vadd.f32 %v996_v50, %v363_v49 }
 0x13b   : > { %1039 = vst [vmem:[#allocation2 + $0x40] sm:$0xff] %v1023_v51 }
 0x13c   : > { %v948_v53 = vpop.f32.mrf.mxu2  ;;  %v853_v56 = vpop.f32.mrf.mxu0 }
 0x13d   : > { %v997_v54 = vpop.f32.mrf.mxu3  ;;  %v949_v55 = vadd.f32 %v948_v53, %v900_v52  ;;  %v902_v57 = vpop.f32.mrf.mxu1 }
 0x13e   : > { %v903_v61 = vadd.f32 %v902_v57, %v853_v56 }
 0x13f   : > { %v998_v59 = vadd.f32 %v997_v54, %v949_v55 }
 0x141   : > { %v1024_v60 = vadd.f32 %v998_v59, %v364_v58 }
 0x143   : > { %1040 = vst [vmem:[#allocation2 + $0x20] sm:$0xff] %v1024_v60 }
 0x144   : > { %v951_v62 = vpop.f32.mrf.mxu2  ;;  %v855_v1 = vpop.f32.mrf.mxu0 }
 0x145   : > { %v1000_v63 = vpop.f32.mrf.mxu3  ;;  %v952_v0 = vadd.f32 %v951_v62, %v903_v61  ;;  %v904_v2 = vpop.f32.mrf.mxu1 }
 0x146   : > { %v905_v6 = vadd.f32 %v904_v2, %v855_v1 }
 0x147   : > { %v1001_v4 = vadd.f32 %v1000_v63, %v952_v0 }
 0x149   : > { %v1025_v5 = vadd.f32 %v1001_v4, %v365_v3 }
 0x14b   : > { %1041 = vst [vmem:[#allocation2 + $0x10] sm:$0xff] %v1025_v5 }
 0x14c   : > { %v953_v7 = vpop.f32.mrf.mxu2  ;;  %v858_v10 = vpop.f32.mrf.mxu0 }
 0x14d   : > { %v1002_v8 = vpop.f32.mrf.mxu3  ;;  %v954_v9 = vadd.f32 %v953_v7, %v905_v6  ;;  %v907_v11 = vpop.f32.mrf.mxu1 }
 0x14e   : > { %v908_v15 = vadd.f32 %v907_v11, %v858_v10 }
 0x14f   : > { %v1003_v13 = vadd.f32 %v1002_v8, %v954_v9 }
 0x151   : > { %v1026_v14 = vadd.f32 %v1003_v13, %v366_v12 }
 0x153   : > { %1042 = vst [vmem:[#allocation2 + $0x38] sm:$0xff] %v1026_v14 }
 0x154   : > { %v956_v16 = vpop.f32.mrf.mxu2  ;;  %v860_v19 = vpop.f32.mrf.mxu0 }
 0x155   : > { %v1005_v17 = vpop.f32.mrf.mxu3  ;;  %v957_v18 = vadd.f32 %v956_v16, %v908_v15  ;;  %v909_v20 = vpop.f32.mrf.mxu1 }
 0x156   : > { %v910_v24 = vadd.f32 %v909_v20, %v860_v19 }
 0x157   : > { %v1006_v22 = vadd.f32 %v1005_v17, %v957_v18 }
 0x159   : > { %v1027_v23 = vadd.f32 %v1006_v22, %v367_v21 }
 0x15b   : > { %1043 = vst [vmem:[#allocation2 + $0x60] sm:$0xff] %v1027_v23 }
 0x15c   : > { %v958_v25 = vpop.f32.mrf.mxu2  ;;  %v863_v29 = vpop.f32.mrf.mxu0 }
 0x15d   : > { %v1007_v26 = vpop.f32.mrf.mxu3  ;;  %v959_v27 = vadd.f32 %v958_v25, %v910_v24  ;;  %v912_v30 = vpop.f32.mrf.mxu1 }
 0x15e   : > { %v913_v33 = vadd.f32 %v912_v30, %v863_v29 }
 0x15f   : > { %v1008_v31 = vadd.f32 %v1007_v26, %v959_v27 }
 0x161   : > { %v1028_v32 = vadd.f32 %v1008_v31, %v368_v28 }
 0x163   : > { %1044 = vst [vmem:[#allocation2 + $0x70] sm:$0xff] %v1028_v32 }
 0x164   : > { %v961_v34 = vpop.f32.mrf.mxu2  ;;  %v865_v39 = vpop.f32.mrf.mxu0 }
 0x165   : > { %v1010_v35 = vpop.f32.mrf.mxu3  ;;  %v962_v36 = vadd.f32 %v961_v34, %v913_v33  ;;  %v914_v40 = vpop.f32.mrf.mxu1 }
 0x166   : > { %v915_v42 = vadd.f32 %v914_v40, %v865_v39 }
 0x167   : > { %v1011_v38 = vadd.f32 %v1010_v35, %v962_v36 }
 0x169   : > { %v1029_v41 = vadd.f32 %v1011_v38, %v369_v37 }
 0x16b   : > { %1045 = vst [vmem:[#allocation2 + $0x78] sm:$0xff] %v1029_v41 }
 0x16c   : > { %v963_v43 = vpop.f32.mrf.mxu2 }
 0x16d   : > { %v964_v44 = vadd.f32 %v963_v43, %v915_v42  ;;  %v1012_v46 = vpop.f32.mrf.mxu3 }
 0x16f   : > { %v1013_v47 = vadd.f32 %v1012_v46, %v964_v44  ;;  %1050 = sbr.rel (%p1530_p11) target bundleno = 394 (0x18a), region = 63 }
 0x171   : > { %v1030_v48 = vadd.f32 %v1013_v47, %v370_v45 }
 0x173   : > { %1046 = vst [vmem:[#allocation2 + $0x28] sm:$0xff] %v1030_v48 }
 0x174   : > { %v1051_v49 = vld [vmem:[#allocation2 + $0x30] sm:$0xff]  ;;  %v1926_v50 = vld [vmem:[%s2009_s2] ss:$0 sm:$0xff]  ;;  %v1053_v52 = vld [vmem:[#allocation2 + $0x58] sm:$0xff] }
 0x175   : > { %v1052_v51 = vld [vmem:[#allocation2] sm:$0xff]  ;;  %v1054_v53 = vld [vmem:[#allocation2 + $0x18] sm:$0xff]  ;;  %v1071_v54 = vadd.f32 %v1926_v50, %v1051_v49  ;;  %v1073_v56 = vadd.f32 %v1926_v50, %v1053_v52  ;;  %v1055_v58 = vld [vmem:[#allocation2 + $0x50] sm:$0xff] }
 0x176   : > { %v1072_v55 = vadd.f32 %v1926_v50, %v1052_v51  ;;  %v1074_v57 = vadd.f32 %v1926_v50, %v1054_v53  ;;  %v1056_v59 = vld [vmem:[#allocation2 + $0x68] sm:$0xff]  ;;  %v1075_v61 = vadd.f32 %v1926_v50, %v1055_v58  ;;  %v1059_v8 = vld [vmem:[#allocation2 + $0x40] sm:$0xff]  ;;  %v1061_v10 = vld [vmem:[#allocation2 + $0x10] sm:$0xff] }
 0x177   : > { %v1057_v60 = vld [vmem:[#allocation2 + $0x8] sm:$0xff]  ;;  %v1076_v62 = vadd.f32 %v1926_v50, %v1056_v59  ;;  %vm1087_vm0 = vcmp.gt.f32.partialorder %v1071_v54, 0.0  ;;  %v1103_v1 = vmul.f32 0.2, %v1071_v54  ;;  %vm1089_vm2 = vcmp.gt.f32.partialorder %v1073_v56, 0.0  ;;  %v1060_v9 = vld [vmem:[#allocation2 + $0x20] sm:$0xff] }
 0x178   : > { %v1077_v63 = vadd.f32 %v1926_v50, %v1057_v60  ;;  %v1058_v0 = vld [vmem:[#allocation2 + $0x48] sm:$0xff]  ;;  %vm1088_vm1 = vcmp.gt.f32.partialorder %v1072_v55, 0.0  ;;  %v1104_v2 = vmul.f32 0.2, %v1072_v55  ;;  %v1105_v3 = vmul.f32 0.2, %v1073_v56 }
 0x179   : > { %vm1090_vm3 = vcmp.gt.f32.partialorder %v1074_v57, 0.0  ;;  %v1106_v4 = vmul.f32 0.2, %v1074_v57  ;;  %v1119_v5 = vsel %vm1087_vm0, %v1071_v54, %v1103_v1  ;;  %vm1091_vm4 = vcmp.gt.f32.partialorder %v1075_v61, 0.0  ;;  %v1062_v14 = vld [vmem:[#allocation2 + $0x38] sm:$0xff]  ;;  %v1063_v22 = vld [vmem:[#allocation2 + $0x60] sm:$0xff] }
 0x17a   : > { %v1120_v6 = vsel %vm1088_vm1, %v1072_v55, %v1104_v2  ;;  %v1107_v7 = vmul.f32 0.2, %v1075_v61  ;;  %1135 = vst [vmem:[%s2010_s3] sm:$0xff] %v1119_v5  ;;  %v1121_v11 = vsel %vm1089_vm2, %v1073_v56, %v1105_v3  ;;  %vm1092_vm5 = vcmp.gt.f32.partialorder %v1076_v62, 0.0  ;;  %v1064_v23 = vld [vmem:[#allocation2 + $0x70] sm:$0xff]  ;;  %v1065_v27 = vld [vmem:[#allocation2 + $0x78] sm:$0xff]  ;;  %v1066_v28 = vld [vmem:[#allocation2 + $0x28] sm:$0xff] }
 0x17b   : > { %v1122_v12 = vsel %vm1090_vm3, %v1074_v57, %v1106_v4  ;;  %v1108_v13 = vmul.f32 0.2, %v1076_v62  ;;  %1136 = vst [vmem:[%s2010_s3 + $0x8] sm:$0xff] %v1120_v6  ;;  %vm1093_vm6 = vcmp.gt.f32.partialorder %v1077_v63, 0.0  ;;  %v1109_v16 = vmul.f32 0.2, %v1077_v63 }
 0x17c   : > { %v1123_v15 = vsel %vm1091_vm4, %v1075_v61, %v1107_v7  ;;  %v1078_v17 = vadd.f32 %v1926_v50, %v1058_v0  ;;  %1137 = vst [vmem:[%s2010_s3 + $0x10] sm:$0xff] %v1121_v11  ;;  %v1079_v19 = vadd.f32 %v1926_v50, %v1059_v8  ;;  %v1080_v20 = vadd.f32 %v1926_v50, %v1060_v9 }
 0x17d   : > { %v1124_v18 = vsel %vm1092_vm5, %v1076_v62, %v1108_v13  ;;  %v1081_v21 = vadd.f32 %v1926_v50, %v1061_v10  ;;  %1138 = vst [vmem:[%s2010_s3 + $0x18] sm:$0xff] %v1122_v12  ;;  %v1125_v24 = vsel %vm1093_vm6, %v1077_v63, %v1109_v16  ;;  %v1082_v26 = vadd.f32 %v1926_v50, %v1062_v14 }
 0x17e   : > { %vm1094_vm7 = vcmp.gt.f32.partialorder %v1078_v17, 0.0  ;;  %v1110_v25 = vmul.f32 0.2, %v1078_v17  ;;  %1139 = vst [vmem:[%s2010_s3 + $0x20] sm:$0xff] %v1123_v15  ;;  %vm1095_vm8 = vcmp.gt.f32.partialorder %v1079_v19, 0.0  ;;  %vm1096_vm9 = vcmp.gt.f32.partialorder %v1080_v20, 0.0 }
 0x17f   : > { %v1111_v29 = vmul.f32 0.2, %v1079_v19  ;;  %vm1097_vm10 = vcmp.gt.f32.partialorder %v1081_v21, 0.0  ;;  %1140 = vst [vmem:[%s2010_s3 + $0x28] sm:$0xff] %v1124_v18  ;;  %v1112_v31 = vmul.f32 0.2, %v1080_v20  ;;  %v1083_v35 = vadd.f32 %v1926_v50, %v1063_v22 }
 0x180   : > { %v1126_v30 = vsel %vm1094_vm7, %v1078_v17, %v1110_v25  ;;  %v1113_v32 = vmul.f32 0.2, %v1081_v21  ;;  %vm1098_vm11 = vcmp.gt.f32.partialorder %v1082_v26, 0.0  ;;  %1141 = vst [vmem:[%s2010_s3 + $0x30] sm:$0xff] %v1125_v24  ;;  %v1114_v34 = vmul.f32 0.2, %v1082_v26 }
 0x181   : > { %v1127_v33 = vsel %vm1095_vm8, %v1079_v19, %v1111_v29  ;;  %v1084_v36 = vadd.f32 %v1926_v50, %v1064_v23  ;;  %1142 = vst [vmem:[%s2010_s3 + $0x38] sm:$0xff] %v1126_v30  ;;  %v1128_v37 = vsel %vm1096_vm9, %v1080_v20, %v1112_v31  ;;  %v1085_v39 = vadd.f32 %v1926_v50, %v1065_v27 }
 0x182   : > { %v1129_v38 = vsel %vm1097_vm10, %v1081_v21, %v1113_v32  ;;  %v1086_v40 = vadd.f32 %v1926_v50, %v1066_v28  ;;  %1143 = vst [vmem:[%s2010_s3 + $0x40] sm:$0xff] %v1127_v33  ;;  %v1130_v41 = vsel %vm1098_vm11, %v1082_v26, %v1114_v34  ;;  %vm1099_vm12 = vcmp.gt.f32.partialorder %v1083_v35, 0.0 }
 0x183   : > { %v1115_v42 = vmul.f32 0.2, %v1083_v35  ;;  %vm1100_vm13 = vcmp.gt.f32.partialorder %v1084_v36, 0.0  ;;  %1144 = vst [vmem:[%s2010_s3 + $0x48] sm:$0xff] %v1128_v37  ;;  %v1116_v43 = vmul.f32 0.2, %v1084_v36 }
 0x184   : > { %vm1101_vm14 = vcmp.gt.f32.partialorder %v1085_v39, 0.0  ;;  %v1117_v44 = vmul.f32 0.2, %v1085_v39  ;;  %1145 = vst [vmem:[%s2010_s3 + $0x50] sm:$0xff] %v1129_v38  ;;  %vm1102_vm15 = vcmp.gt.f32.partialorder %v1086_v40, 0.0 }
 0x185   : > { %v1131_v45 = vsel %vm1099_vm12, %v1083_v35, %v1115_v42  ;;  %v1118_v46 = vmul.f32 0.2, %v1086_v40  ;;  %1146 = vst [vmem:[%s2010_s3 + $0x58] sm:$0xff] %v1130_v41  ;;  %v1132_v47 = vsel %vm1100_vm13, %v1084_v36, %v1116_v43 }
 0x186   : > { %v1133_v48 = vsel %vm1101_vm14, %v1085_v39, %v1117_v44  ;;  %1147 = vst [vmem:[%s2010_s3 + $0x60] sm:$0xff] %v1131_v45 }
 0x187   : > { %v1134_v49 = vsel %vm1102_vm15, %v1086_v40, %v1118_v46  ;;  %1148 = vst [vmem:[%s2010_s3 + $0x68] sm:$0xff] %v1132_v47 }
 0x188   : > { %1149 = vst [vmem:[%s2010_s3 + $0x70] sm:$0xff] %v1133_v48 }
 0x189   : > { %1150 = vst [vmem:[%s2010_s3 + $0x78] sm:$0xff] %v1134_v49 }
 0x18a PF: > { %s13_s16 = sadd.s32 1, %s1680_s16   ;;  %s2011_s12 = smov %s1668_s13 }
 0x18b   : > { %p10_p12 = scmp.ge.s32.totalorder %s13_s16, 4   ;;  %s2012_s13 = smov %s1738_s20 }
 0x18c   : > { %s2013_s14 = smov %s1676_s15  ;;  %s2014_s15 = smov %s2016_s17 }
 0x18d   :  { %12 = sbr.rel (!%p10_p12) target bundleno = 3 (0x3), region = 104 }

// kernel: discriminator_forward.7
= control target key start
LH: loop header
LB: loop body
LE: loop exit
PB: predicated region body
PF: predicated region fallthrough
CT: control target
= control target key end

     0   :  { %s1588_s12 = smov 0   ;;  %s1590_s13 = smov 0   ;;  %s1858_s0 = inlined_call_operand.vmem [shape: bf16[32,2048], index: 0, kind: input, shape index: {}]   ;;  %s1859_s1 = inlined_call_operand.vmem [shape: bf16[2048,256], index: 1, kind: input, shape index: {}]   ;;  %s1860_s2 = inlined_call_operand.vmem [shape: f32[1,256], index: 2, kind: input, shape index: {}]   ;;  %s1861_s3 = inlined_call_operand.vmem [shape: f32[32,256], index: 3, kind: output, shape index: {}]  }
   0x1   :  { %s1592_s14 = smov 0   ;;  %s1594_s15 = smov 0  }
   0x2   :  { %s1596_s16 = smov 0  }
   0x3 LB: > { %s25_s17 = sadd.s32 1, %s1561_s15  ;;  %p48_p1 = scmp.ne.s32.totalorder %s1553_s13, %s1549_s12  ;;  %s1565_s16 = sphi %s1596_s16, %s13_s16   ;;  %s1561_s15 = sphi %s1594_s15, %s1865_s15   ;;  %s1557_s14 = sphi %s1592_s14, %s1864_s14   ;;  %s1553_s13 = sphi %s1590_s13, %s1863_s13   ;;  %s1549_s12 = sphi %s1588_s12, %s1862_s12  }
   0x4   : > { %p26_p0 = scmp.ge.s32.totalorder %s25_s17, 4  ;;  %p49_p2 = scmp.eq.s32.totalorder %s1565_s16, 0 }
   0x5   : > { %s41_s19 = sadd.s32 1, %s1553_s13  ;;  %p1109_p5 = scmp.ge.s32.totalorder %s1565_s16, 4 }
   0x6   : > { %s1867_s17 = smov (%p26_p0, %s25_s17), 0  ;;  %p50_p3 = por %p49_p2, %p48_p1 }
   0x7   : > { %s37_s18 = ssub.s32 %s1561_s15, %s1867_s17  ;;  %164 = sbr.rel (%p1109_p5) target bundleno = 24 (0x18), region = 20 }
   0x8   : > { %p39_p4 = scmp.eq.s32.totalorder %s37_s18, 0 }
   0xa   : > { %s1623_s20 = scalar_select %p39_p4, %s1553_s13, %s41_s19  }
   0xc   : > { %167 = sbr.rel (!%p50_p3) target bundleno = 24 (0x18), region = 24  ;;  %s169_s21 = sand.u32 (%p50_p3), 1, %s1553_s13  }
   0xd   : > { %s1412_s22 = sshll.u32 (%p50_p3), %s1561_s15, 4  ;;  %s1110_s23 = sshll.u32 (%p50_p3), %s169_s21, 6 }
   0xe   : > { %s177_s26 = scalar_lea.vmem (%p50_p3), %s1858_s0, %s1412_s22  ;;  %s171_s27 = scalar_lea.vmem (%p50_p3), [#allocation3], %s1110_s23 }
   0xf   : > { %v190_v0 = vld [vmem:[%s177_s26] sm:$0xff] (%p50_p3)  ;;  %v192_v1 = vld [vmem:[%s177_s26 + $0x8] sm:$0xff] (%p50_p3) }
  0x10   : > { %v194_v2 = vld [vmem:[%s177_s26 + $0x40] sm:$0xff] (%p50_p3)  ;;  %191 = vst [vmem:[%s171_s27] sm:$0xff] (%p50_p3), %v190_v0  ;;  %v196_v3 = vld [vmem:[%s177_s26 + $0x48] sm:$0xff] (%p50_p3) }
  0x11   : > { %193 = vst [vmem:[%s171_s27 + $0x8] sm:$0xff] %v192_v1  ;;  %v198_v4 = vld [vmem:[%s177_s26 + $0x80] sm:$0xff]  ;;  %v200_v5 = vld [vmem:[%s177_s26 + $0x88] sm:$0xff] }
  0x12   : > { %195 = vst [vmem:[%s171_s27 + $0x10] sm:$0xff] %v194_v2  ;;  %v202_v6 = vld [vmem:[%s177_s26 + $0xc0] sm:$0xff]  ;;  %v204_v7 = vld [vmem:[%s177_s26 + $0xc8] sm:$0xff] }
  0x13   : > { %197 = vst [vmem:[%s171_s27 + $0x18] sm:$0xff] %v196_v3 }
  0x14   : > { %199 = vst [vmem:[%s171_s27 + $0x20] sm:$0xff] %v198_v4 }
  0x15   : > { %201 = vst [vmem:[%s171_s27 + $0x28] sm:$0xff] %v200_v5 }
  0x16   : > { %203 = vst [vmem:[%s171_s27 + $0x30] sm:$0xff] %v202_v6 }
  0x17   : > { %205 = vst [vmem:[%s171_s27 + $0x38] sm:$0xff] %v204_v7 }
  0x18 PF: > { %p1113_p6 = scmp.ge.s32.totalorder %s1565_s16, 1  ;;  %p225_p7 = scmp.lt.s32.totalorder %s1565_s16, 5 }
  0x1a   : > { %p226_p8 = pnand %p1113_p6, %p225_p7 }
  0x1b   : > { %s232_s28 = sand.u32 (!%p226_p8), 1, %s1549_s12   ;;  %s1115_s29 = sshll.u32 (!%p226_p8), %s1557_s14, 6 }
  0x1c   : > { %229 = sbr.rel (%p226_p8) target bundleno = 294 (0x126), region = 51  ;;  %s1114_s30 = sshll.u32 (!%p226_p8), %s232_s28, 6 }
  0x1d   : > { %p278_p9 = scmp.lt.s32.totalorder (!%p226_p8), %s1115_s29, 255  ;;  %s1640_s8 = scalar_lea.vmem (!%p226_p8), [#allocation3], %s1114_s30 }
  0x1e   : > { %p1118_p10 = scmp.ne.s32.totalorder (!%p226_p8), %s1557_s14, 0 }
  0x21   : > { %s1869_s29 = smov (!%p278_p9, %s1115_s29), 255  ;;  %308 = sbr.rel (%p1118_p10) target bundleno = 47 (0x2f), region = 59 }
  0x22   : > { %s1413_s4 = sshll.u32 %s1869_s29, 3 }
  0x23   : > { %s1638_s7 = scalar_lea.vmem %s1859_s1, %s1413_s4 }
  0x26   : > { %v1567_v8 = vmov 0.0  }
  0x27   : > { %309 = vst [vmem:[#allocation2 + $0x30] sm:$0xff] %v1567_v8 }
  0x28   : > { %310 = vst [vmem:[#allocation2] sm:$0xff] %v1567_v8 }
  0x29   : > { %311 = vst [vmem:[#allocation2 + $0x18] sm:$0xff] %v1567_v8 }
  0x2a   : > { %312 = vst [vmem:[#allocation2 + $0x10] sm:$0xff] %v1567_v8 }
  0x2b   : > { %313 = vst [vmem:[#allocation2 + $0x8] sm:$0xff] %v1567_v8 }
  0x2c   : > { %314 = vst [vmem:[#allocation2 + $0x20] sm:$0xff] %v1567_v8 }
  0x2d   : > { %315 = vst [vmem:[#allocation2 + $0x28] sm:$0xff] %v1567_v8 }
  0x2e   : > { %316 = vst [vmem:[#allocation2 + $0x38] sm:$0xff] %v1567_v8 }
  0x2f PF: > { %v1209_v9 = vld [vmem:[%s1638_s7 + $0x70] sm:$0xf]  ;;  %v1437_v10 = vld [vmem:[%s1638_s7 + $0x74] sm:$0xf0]  ;;  %v1201_v20 = vld [vmem:[%s1638_s7 + $0x60] sm:$0xf] }
  0x30   : > { %v1273_v11 = vld [vmem:[%s1638_s7 + $0xf0] sm:$0xf]  ;;  %v1210_v12 = vor.u32 %v1437_v10, %v1209_v9  ;;  %v1453_v13 = vld [vmem:[%s1638_s7 + $0xf4] sm:$0xf0]  ;;  %v1435_v22 = vld [vmem:[%s1638_s7 + $0x64] sm:$0xf0] }
  0x31   : > { %v1337_v14 = vld [vmem:[%s1638_s7 + $0x170] sm:$0xf]  ;;  %v1469_v15 = vld [vmem:[%s1638_s7 + $0x174] sm:$0xf0]  ;;  %v1274_v16 = vor.u32 %v1453_v13, %v1273_v11  ;;  %v1265_v23 = vld [vmem:[%s1638_s7 + $0xe0] sm:$0xf]  ;;  %v1202_v25 = vor.u32 %v1435_v22, %v1201_v20 }
  0x32   : > { %v1338_v17 = vor.u32 %v1469_v15, %v1337_v14  ;;  %v1401_v18 = vld [vmem:[%s1638_s7 + $0x1f0] sm:$0xf]  ;;  %v1485_v19 = vld [vmem:[%s1638_s7 + $0x1f4] sm:$0xf0]  ;;  %757 = vmatpush.bf16.msra.mxu0 %v1210_v12  ;;  %v1451_v24 = vld [vmem:[%s1638_s7 + $0xe4] sm:$0xf0] }
  0x33   : > { %v1402_v21 = vor.u32 %v1485_v19, %v1401_v18  ;;  %776 = vmatpush.bf16.msra.mxu1 %v1274_v16  ;;  %v1266_v26 = vor.u32 %v1451_v24, %v1265_v23  ;;  %v1329_v27 = vld [vmem:[%s1638_s7 + $0x160] sm:$0xf]  ;;  %v1467_v28 = vld [vmem:[%s1638_s7 + $0x164] sm:$0xf0]  ;;  %v1193_v32 = vld [vmem:[%s1638_s7 + $0x50] sm:$0xf] }
  0x34   : > { %795 = vmatpush.bf16.msra.mxu2 %v1338_v17  ;;  %v1393_v29 = vld [vmem:[%s1638_s7 + $0x1e0] sm:$0xf]  ;;  %v1330_v30 = vor.u32 %v1467_v28, %v1329_v27  ;;  %v1483_v31 = vld [vmem:[%s1638_s7 + $0x1e4] sm:$0xf0]  ;;  %v1433_v33 = vld [vmem:[%s1638_s7 + $0x54] sm:$0xf0] }
  0x35   : > { %814 = vmatpush.bf16.msra.mxu3 %v1402_v21  ;;  %v1394_v34 = vor.u32 %v1483_v31, %v1393_v29  ;;  %v1257_v35 = vld [vmem:[%s1638_s7 + $0xd0] sm:$0xf]  ;;  %v1449_v36 = vld [vmem:[%s1638_s7 + $0xd4] sm:$0xf0]  ;;  %v1194_v38 = vor.u32 %v1433_v33, %v1193_v32  ;;  %v1185_v44 = vld [vmem:[%s1638_s7 + $0x40] sm:$0xf] }
  0x36   : > { %v1321_v37 = vld [vmem:[%s1638_s7 + $0x150] sm:$0xf]  ;;  %758 = vmatpush.bf16.msra.mxu0 %v1202_v25  ;;  %v1465_v39 = vld [vmem:[%s1638_s7 + $0x154] sm:$0xf0]  ;;  %v1258_v42 = vor.u32 %v1449_v36, %v1257_v35  ;;  %v1431_v45 = vld [vmem:[%s1638_s7 + $0x44] sm:$0xf0] }
  0x37   : > { %v1385_v40 = vld [vmem:[%s1638_s7 + $0x1d0] sm:$0xf]  ;;  %v1481_v41 = vld [vmem:[%s1638_s7 + $0x1d4] sm:$0xf0]  ;;  %777 = vmatpush.bf16.msra.mxu1 %v1266_v26  ;;  %v1322_v43 = vor.u32 %v1465_v39, %v1321_v37  ;;  %v1249_v46 = vld [vmem:[%s1638_s7 + $0xc0] sm:$0xf]  ;;  %v1186_v53 = vor.u32 %v1431_v45, %v1185_v44 }
  0x38   : > { %796 = vmatpush.bf16.msra.mxu2 %v1330_v30  ;;  %v1386_v47 = vor.u32 %v1481_v41, %v1385_v40  ;;  %v1447_v48 = vld [vmem:[%s1638_s7 + $0xc4] sm:$0xf0]  ;;  %v1313_v49 = vld [vmem:[%s1638_s7 + $0x140] sm:$0xf]  ;;  %v1177_v56 = vld [vmem:[%s1638_s7 + $0x30] sm:$0xf] }
  0x39   : > { %815 = vmatpush.bf16.msra.mxu3 %v1394_v34  ;;  %v1463_v50 = vld [vmem:[%s1638_s7 + $0x144] sm:$0xf0]  ;;  %v1377_v51 = vld [vmem:[%s1638_s7 + $0x1c0] sm:$0xf]  ;;  %v1250_v54 = vor.u32 %v1447_v48, %v1249_v46  ;;  %v1429_v57 = vld [vmem:[%s1638_s7 + $0x34] sm:$0xf0] }
  0x3a   : > { %v1479_v52 = vld [vmem:[%s1638_s7 + $0x1c4] sm:$0xf0]  ;;  %759 = vmatpush.bf16.msra.mxu0 %v1194_v38  ;;  %v1314_v55 = vor.u32 %v1463_v50, %v1313_v49  ;;  %v1241_v58 = vld [vmem:[%s1638_s7 + $0xb0] sm:$0xf]  ;;  %v1445_v60 = vld [vmem:[%s1638_s7 + $0xb4] sm:$0xf0]  ;;  %v1178_v1 = vor.u32 %v1429_v57, %v1177_v56 }
  0x3b   : > { %778 = vmatpush.bf16.msra.mxu1 %v1258_v42  ;;  %v1378_v59 = vor.u32 %v1479_v52, %v1377_v51  ;;  %v1305_v61 = vld [vmem:[%s1638_s7 + $0x130] sm:$0xf]  ;;  %v1461_v62 = vld [vmem:[%s1638_s7 + $0x134] sm:$0xf0]  ;;  %v1242_v2 = vor.u32 %v1445_v60, %v1241_v58  ;;  %v1169_v4 = vld [vmem:[%s1638_s7 + $0x20] sm:$0xf] }
  0x3c   : > { %797 = vmatpush.bf16.msra.mxu2 %v1322_v43  ;;  %v1369_v63 = vld [vmem:[%s1638_s7 + $0x1b0] sm:$0xf]  ;;  %v1477_v0 = vld [vmem:[%s1638_s7 + $0x1b4] sm:$0xf0]  ;;  %v1306_v3 = vor.u32 %v1461_v62, %v1305_v61  ;;  %v1427_v5 = vld [vmem:[%s1638_s7 + $0x24] sm:$0xf0] }
  0x3d   : > { %816 = vmatpush.bf16.msra.mxu3 %v1386_v47  ;;  %v1233_v6 = vld [vmem:[%s1638_s7 + $0xa0] sm:$0xf]  ;;  %v1370_v7 = vor.u32 %v1477_v0, %v1369_v63  ;;  %v1443_v8 = vld [vmem:[%s1638_s7 + $0xa4] sm:$0xf0]  ;;  %v1170_v13 = vor.u32 %v1427_v5, %v1169_v4  ;;  %v1161_v16 = vld [vmem:[%s1638_s7 + $0x10] sm:$0xf] }
  0x3e   : > { %760 = vmatpush.bf16.msra.mxu0 %v1186_v53  ;;  %v1297_v9 = vld [vmem:[%s1638_s7 + $0x120] sm:$0xf]  ;;  %v1459_v10 = vld [vmem:[%s1638_s7 + $0x124] sm:$0xf0]  ;;  %v1234_v14 = vor.u32 %v1443_v8, %v1233_v6  ;;  %v1425_v17 = vld [vmem:[%s1638_s7 + $0x14] sm:$0xf0] }
  0x3f   : > { %779 = vmatpush.bf16.msra.mxu1 %v1250_v54  ;;  %v1361_v11 = vld [vmem:[%s1638_s7 + $0x1a0] sm:$0xf]  ;;  %v1475_v12 = vld [vmem:[%s1638_s7 + $0x1a4] sm:$0xf0]  ;;  %v1298_v15 = vor.u32 %v1459_v10, %v1297_v9  ;;  %v1225_v18 = vld [vmem:[%s1638_s7 + $0x90] sm:$0xf]  ;;  %v1162_v26 = vor.u32 %v1425_v17, %v1161_v16 }
  0x40   : > { %798 = vmatpush.bf16.msra.mxu2 %v1314_v55  ;;  %v1362_v19 = vor.u32 %v1475_v12, %v1361_v11  ;;  %v1441_v20 = vld [vmem:[%s1638_s7 + $0x94] sm:$0xf0]  ;;  %v1289_v21 = vld [vmem:[%s1638_s7 + $0x110] sm:$0xf]  ;;  %v1153_v25 = vld [vmem:[%s1638_s7] sm:$0xf] }
  0x41   : > { %817 = vmatpush.bf16.msra.mxu3 %v1378_v59  ;;  %v1457_v22 = vld [vmem:[%s1638_s7 + $0x114] sm:$0xf0]  ;;  %v1353_v23 = vld [vmem:[%s1638_s7 + $0x190] sm:$0xf]  ;;  %v1423_v27 = vld [vmem:[%s1638_s7 + $0x4] sm:$0xf0]  ;;  %v1226_v30 = vor.u32 %v1441_v20, %v1225_v18 }
  0x42   : > { %761 = vmatpush.bf16.msra.mxu0 %v1178_v1  ;;  %v1473_v24 = vld [vmem:[%s1638_s7 + $0x194] sm:$0xf0]  ;;  %v1217_v28 = vld [vmem:[%s1638_s7 + $0x80] sm:$0xf]  ;;  %v1439_v29 = vld [vmem:[%s1638_s7 + $0x84] sm:$0xf0]  ;;  %v1290_v31 = vor.u32 %v1457_v22, %v1289_v21  ;;  %v1154_v43 = vor.u32 %v1423_v27, %v1153_v25 }
  0x43   : > { %780 = vmatpush.bf16.msra.mxu1 %v1242_v2  ;;  %v1281_v32 = vld [vmem:[%s1638_s7 + $0x100] sm:$0xf]  ;;  %v1455_v33 = vld [vmem:[%s1638_s7 + $0x104] sm:$0xf0]  ;;  %v1354_v35 = vor.u32 %v1473_v24, %v1353_v23  ;;  %v1416_v38 = vld [vmem:[%s1640_s8 + $0xc] sm:$0xf0]  ;;  %v1218_v47 = vor.u32 %v1439_v29, %v1217_v28 }
  0x44   : > { %799 = vmatpush.bf16.msra.mxu2 %v1306_v3  ;;  %v1345_v34 = vld [vmem:[%s1638_s7 + $0x180] sm:$0xf]  ;;  %v1471_v36 = vld [vmem:[%s1638_s7 + $0x184] sm:$0xf0]  ;;  %v1414_v39 = vld [vmem:[%s1640_s8 + $0x4] sm:$0xf]  ;;  %v1282_v48 = vor.u32 %v1455_v33, %v1281_v32 }
  0x45   : > { %818 = vmatpush.bf16.msra.mxu3 %v1370_v7  ;;  %v1121_v37 = vld [vmem:[%s1640_s8] sm:$0xf]  ;;  %v1123_v40 = vld [vmem:[%s1640_s8 + $0x10] sm:$0xf0]  ;;  %v1339_v42 = vld [vmem:[%s1638_s7 + $0x178] sm:$0xf0]  ;;  %v1346_v52 = vor.u32 %v1471_v36, %v1345_v34 }
  0x46   : > { %762 = vmatpush.bf16.msra.mxu0 %v1170_v13  ;;  %v1468_v41 = vld [vmem:[%s1638_s7 + $0x174] sm:$0xf]  ;;  %v1129_v44 = vld [vmem:[%s1640_s8 + $0x8] sm:$0xf]  ;;  %v1275_v46 = vld [vmem:[%s1638_s7 + $0xf8] sm:$0xf0]  ;;  %v1722_v57 = vor.u32 %v1416_v38, %v1121_v37  ;;  %v1727_v62 = vor.u32 %v1414_v39, %v1123_v40 }
  0x47   : > { %781 = vmatpush.bf16.msra.mxu1 %v1234_v14  ;;  %v1452_v45 = vld [vmem:[%s1638_s7 + $0xf4] sm:$0xf]  ;;  %v1417_v49 = vld [vmem:[%s1640_s8 + $0x14] sm:$0xf0]  ;;  %v1415_v50 = vld [vmem:[%s1640_s8 + $0xc] sm:$0xf]  ;;  %v1342_v53 = vor.u32 %v1468_v41, %v1339_v42 }
  0x48   : > { %800 = vmatpush.bf16.msra.mxu2 %v1298_v15  ;;  %v1131_v51 = vld [vmem:[%s1640_s8 + $0x18] sm:$0xf0]  ;;  %v1436_v54 = vld [vmem:[%s1638_s7 + $0x74] sm:$0xf]  ;;  %v1278_v58 = vor.u32 %v1452_v45, %v1275_v46  ;;  %v1466_v60 = vld [vmem:[%s1638_s7 + $0x164] sm:$0xf]  ;;  %v1729_v63 = vor.u32 %v1417_v49, %v1129_v44 }
  0x49   : > { %819 = vmatpush.bf16.msra.mxu3 %v1362_v19  ;;  %v1211_v55 = vld [vmem:[%s1638_s7 + $0x78] sm:$0xf0]  ;;  %v1484_v56 = vld [vmem:[%s1638_s7 + $0x1f4] sm:$0xf]  ;;  %v1331_v61 = vld [vmem:[%s1638_s7 + $0x168] sm:$0xf0]  ;;  %v1733_v2 = vor.u32 %v1415_v50, %v1131_v51 }
  0x4a   : > { %763 = vmatpush.bf16.msra.mxu0 %v1162_v26  ;;  %v1403_v59 = vld [vmem:[%s1638_s7 + $0x1f8] sm:$0xf0]  ;;  %v1450_v0 = vld [vmem:[%s1638_s7 + $0xe4] sm:$0xf]  ;;  %v1267_v1 = vld [vmem:[%s1638_s7 + $0xe8] sm:$0xf0]  ;;  %v1214_v3 = vor.u32 %v1436_v54, %v1211_v55  ;;  %v1334_v5 = vor.u32 %v1466_v60, %v1331_v61 }
  0x4b   : > { %782 = vmatpush.bf16.msra.mxu1 %v1226_v30  ;;  %v1406_v4 = vor.u32 %v1484_v56, %v1403_v59  ;;  %v1434_v6 = vld [vmem:[%s1638_s7 + $0x64] sm:$0xf]  ;;  %v1203_v7 = vld [vmem:[%s1638_s7 + $0x68] sm:$0xf0]  ;;  %v1270_v9 = vor.u32 %v1450_v0, %v1267_v1  ;;  %v1464_v11 = vld [vmem:[%s1638_s7 + $0x154] sm:$0xf] }
  0x4c   : > { %801 = vmatpush.bf16.msra.mxu2 %v1290_v31  ;;  %v1482_v8 = vld [vmem:[%s1638_s7 + $0x1e4] sm:$0xf]  ;;  %v1395_v10 = vld [vmem:[%s1638_s7 + $0x1e8] sm:$0xf0]  ;;  %v1323_v12 = vld [vmem:[%s1638_s7 + $0x158] sm:$0xf0]  ;;  %v1206_v15 = vor.u32 %v1434_v6, %v1203_v7 }
  0x4d   : > { %820 = vmatpush.bf16.msra.mxu3 %v1354_v35  ;;  %v1448_v13 = vld [vmem:[%s1638_s7 + $0xd4] sm:$0xf]  ;;  %v1259_v14 = vld [vmem:[%s1638_s7 + $0xd8] sm:$0xf0]  ;;  %v1398_v16 = vor.u32 %v1482_v8, %v1395_v10  ;;  %v1326_v17 = vor.u32 %v1464_v11, %v1323_v12  ;;  %v1462_v23 = vld [vmem:[%s1638_s7 + $0x144] sm:$0xf] }
  0x4e   : > { %764 = vmatpush.bf16.msra.mxu0 %v1154_v43  ;;  %v1432_v18 = vld [vmem:[%s1638_s7 + $0x54] sm:$0xf]  ;;  %v1195_v19 = vld [vmem:[%s1638_s7 + $0x58] sm:$0xf0]  ;;  %v1262_v21 = vor.u32 %v1448_v13, %v1259_v14  ;;  %v1315_v24 = vld [vmem:[%s1638_s7 + $0x148] sm:$0xf0] }
  0x4f   : > { %783 = vmatpush.bf16.msra.mxu1 %v1218_v47  ;;  %v1480_v20 = vld [vmem:[%s1638_s7 + $0x1d4] sm:$0xf]  ;;  %v1387_v22 = vld [vmem:[%s1638_s7 + $0x1d8] sm:$0xf0]  ;;  %v1446_v25 = vld [vmem:[%s1638_s7 + $0xc4] sm:$0xf]  ;;  %v1198_v27 = vor.u32 %v1432_v18, %v1195_v19  ;;  %v1318_v32 = vor.u32 %v1462_v23, %v1315_v24 }
  0x50   : > { %802 = vmatpush.bf16.msra.mxu2 %v1282_v48  ;;  %v1251_v26 = vld [vmem:[%s1638_s7 + $0xc8] sm:$0xf0]  ;;  %v1430_v28 = vld [vmem:[%s1638_s7 + $0x44] sm:$0xf]  ;;  %v1390_v31 = vor.u32 %v1480_v20, %v1387_v22  ;;  %v1137_v34 = vld [vmem:[%s1640_s8 + $0x20] sm:$0xf] }
  0x51   : > { %821 = vmatpush.bf16.msra.mxu3 %v1346_v52  ;;  %765 = vmatmul.bf16.vlgmr.msra.gmra.mxu0 %v1722_v57  ;;  %v1187_v29 = vld [vmem:[%s1638_s7 + $0x48] sm:$0xf0]  ;;  %v1478_v30 = vld [vmem:[%s1638_s7 + $0x1c4] sm:$0xf]  ;;  %v1420_v35 = vld [vmem:[%s1640_s8 + $0x2c] sm:$0xf0]  ;;  %v1254_v36 = vor.u32 %v1446_v25, %v1251_v26 }
  0x52   : > { %784 = vmatmul.bf16.vlgmr.msra.gmra.mxu1 %v1727_v62  ;;  %833 = vmatpush.bf16.msrb.mxu0 %v1214_v3  ;;  %v1379_v33 = vld [vmem:[%s1638_s7 + $0x1c8] sm:$0xf0]  ;;  %v1418_v37 = vld [vmem:[%s1640_s8 + $0x24] sm:$0xf]  ;;  %v1139_v38 = vld [vmem:[%s1640_s8 + $0x30] sm:$0xf0]  ;;  %v1190_v44 = vor.u32 %v1430_v28, %v1187_v29 }
  0x53   : > { %852 = vmatpush.bf16.msrb.mxu1 %v1278_v58  ;;  %803 = vmatmul.bf16.vlgmr.msra.gmra.mxu2 %v1729_v63  ;;  %v1460_v39 = vld [vmem:[%s1638_s7 + $0x134] sm:$0xf]  ;;  %v1307_v40 = vld [vmem:[%s1638_s7 + $0x138] sm:$0xf0]  ;;  %v1145_v41 = vld [vmem:[%s1640_s8 + $0x28] sm:$0xf]  ;;  %v1382_v48 = vor.u32 %v1478_v30, %v1379_v33  ;;  %v1779_v59 = vor.u32 %v1418_v37, %v1139_v38 }
  0x54   : > { %871 = vmatpush.bf16.msrb.mxu2 %v1342_v53  ;;  %822 = vmatmul.bf16.vlgmr.msra.gmra.mxu3 %v1733_v2  ;;  %v1444_v42 = vld [vmem:[%s1638_s7 + $0xb4] sm:$0xf]  ;;  %v1243_v43 = vld [vmem:[%s1638_s7 + $0xb8] sm:$0xf0]  ;;  %v1421_v45 = vld [vmem:[%s1640_s8 + $0x34] sm:$0xf0]  ;;  %v1310_v49 = vor.u32 %v1460_v39, %v1307_v40  ;;  %v1774_v53 = vor.u32 %v1420_v35, %v1137_v34 }
  0x55   : > { %890 = vmatpush.bf16.msrb.mxu3 %v1406_v4  ;;  %v1419_v46 = vld [vmem:[%s1640_s8 + $0x2c] sm:$0xf]  ;;  %v1147_v47 = vld [vmem:[%s1640_s8 + $0x38] sm:$0xf0]  ;;  %v1428_v50 = vld [vmem:[%s1638_s7 + $0x34] sm:$0xf]  ;;  %v1246_v54 = vor.u32 %v1444_v42, %v1243_v43  ;;  %v1781_v60 = vor.u32 %v1421_v45, %v1145_v41 }
  0x56   : > { %834 = vmatpush.bf16.msrb.mxu0 %v1206_v15  ;;  %v1179_v51 = vld [vmem:[%s1638_s7 + $0x38] sm:$0xf0]  ;;  %v1476_v52 = vld [vmem:[%s1638_s7 + $0x1b4] sm:$0xf]  ;;  %v1458_v56 = vld [vmem:[%s1638_s7 + $0x124] sm:$0xf]  ;;  %v1150_v1 = vor.u32 %v1419_v46, %v1147_v47 }
  0x57   : > { %853 = vmatpush.bf16.msrb.mxu1 %v1270_v9  ;;  %v1371_v55 = vld [vmem:[%s1638_s7 + $0x1b8] sm:$0xf0]  ;;  %v1299_v58 = vld [vmem:[%s1638_s7 + $0x128] sm:$0xf0]  ;;  %v1442_v61 = vld [vmem:[%s1638_s7 + $0xa4] sm:$0xf]  ;;  %v1182_v3 = vor.u32 %v1428_v50, %v1179_v51 }
  0x58   : > { %872 = vmatpush.bf16.msrb.mxu2 %v1334_v5  ;;  %v1235_v0 = vld [vmem:[%s1638_s7 + $0xa8] sm:$0xf0]  ;;  %v1374_v4 = vor.u32 %v1476_v52, %v1371_v55  ;;  %v1302_v5 = vor.u32 %v1458_v56, %v1299_v58  ;;  %v1426_v6 = vld [vmem:[%s1638_s7 + $0x24] sm:$0xf]  ;;  %v1456_v11 = vld [vmem:[%s1638_s7 + $0x114] sm:$0xf] }
  0x59   : > { %891 = vmatpush.bf16.msrb.mxu3 %v1398_v16  ;;  %v1171_v7 = vld [vmem:[%s1638_s7 + $0x28] sm:$0xf0]  ;;  %v1474_v8 = vld [vmem:[%s1638_s7 + $0x1a4] sm:$0xf]  ;;  %v1238_v9 = vor.u32 %v1442_v61, %v1235_v0  ;;  %v1291_v12 = vld [vmem:[%s1638_s7 + $0x118] sm:$0xf0] }
  0x5a   : > { %835 = vmatpush.bf16.msrb.mxu0 %v1198_v27  ;;  %v1363_v10 = vld [vmem:[%s1638_s7 + $0x1a8] sm:$0xf0]  ;;  %v1440_v13 = vld [vmem:[%s1638_s7 + $0x94] sm:$0xf]  ;;  %v1227_v14 = vld [vmem:[%s1638_s7 + $0x98] sm:$0xf0]  ;;  %v1174_v15 = vor.u32 %v1426_v6, %v1171_v7 }
  0x5b   : > { %854 = vmatpush.bf16.msrb.mxu1 %v1262_v21  ;;  %v1366_v16 = vor.u32 %v1474_v8, %v1363_v10  ;;  %v1424_v18 = vld [vmem:[%s1638_s7 + $0x14] sm:$0xf]  ;;  %v1163_v19 = vld [vmem:[%s1638_s7 + $0x18] sm:$0xf0]  ;;  %v1230_v21 = vor.u32 %v1440_v13, %v1227_v14  ;;  %v1454_v23 = vld [vmem:[%s1638_s7 + $0x104] sm:$0xf] }
  0x5c   : > { %873 = vmatpush.bf16.msrb.mxu2 %v1326_v17  ;;  %v1294_v17 = vor.u32 %v1456_v11, %v1291_v12  ;;  %v1472_v20 = vld [vmem:[%s1638_s7 + $0x194] sm:$0xf]  ;;  %v1355_v22 = vld [vmem:[%s1638_s7 + $0x198] sm:$0xf0]  ;;  %v1283_v24 = vld [vmem:[%s1638_s7 + $0x108] sm:$0xf0]  ;;  %v1166_v27 = vor.u32 %v1424_v18, %v1163_v19 }
  0x5d   : > { %892 = vmatpush.bf16.msrb.mxu3 %v1390_v31  ;;  %v1438_v25 = vld [vmem:[%s1638_s7 + $0x84] sm:$0xf]  ;;  %v1219_v26 = vld [vmem:[%s1638_s7 + $0x88] sm:$0xf0]  ;;  %v1358_v28 = vor.u32 %v1472_v20, %v1355_v22  ;;  %v1286_v29 = vor.u32 %v1454_v23, %v1283_v24  ;;  %v317_v43 = vld [vmem:[#allocation2 + $0x30] sm:$0xff]  ;;  %p1407_p11 = scmp.ne.s32.totalorder %s1557_s14, 3 }
  0x5e   : > { %836 = vmatpush.bf16.msrb.mxu0 %v1190_v44  ;;  %v1422_v30 = vld [vmem:[%s1638_s7 + $0x4] sm:$0xf]  ;;  %v1155_v31 = vld [vmem:[%s1638_s7 + $0x8] sm:$0xf0]  ;;  %v320_v24 = vld [vmem:[#allocation2 + $0x10] sm:$0xff] }
  0x5f   : > { %855 = vmatpush.bf16.msrb.mxu1 %v1254_v36  ;;  %v1470_v33 = vld [vmem:[%s1638_s7 + $0x184] sm:$0xf]  ;;  %v1347_v34 = vld [vmem:[%s1638_s7 + $0x188] sm:$0xf0]  ;;  %v1158_v35 = vor.u32 %v1422_v30, %v1155_v31 }
  0x60   : > { %874 = vmatpush.bf16.msrb.mxu2 %v1318_v32  ;;  %v1222_v32 = vor.u32 %v1438_v25, %v1219_v26  ;;  %v1350_v36 = vor.u32 %v1470_v33, %v1347_v34  ;;  %v323_v6 = vld [vmem:[#allocation2 + $0x28] sm:$0xff]  ;;  %v322_v33 = vld [vmem:[#allocation2 + $0x20] sm:$0xff] }
  0x61   : > { %893 = vmatpush.bf16.msrb.mxu3 %v1382_v48  ;;  %770 = vmatmul.bf16.gmra.mxu0 %v1774_v53 }
  0x62   : > { %789 = vmatmul.bf16.gmra.mxu1 %v1779_v59  ;;  %837 = vmatpush.bf16.msrb.mxu0 %v1182_v3 }
  0x63   : > { %856 = vmatpush.bf16.msrb.mxu1 %v1246_v54  ;;  %808 = vmatmul.bf16.gmra.mxu2 %v1781_v60 }
  0x64   : > { %875 = vmatpush.bf16.msrb.mxu2 %v1310_v49  ;;  %827 = vmatmul.bf16.gmra.mxu3 %v1150_v1  ;;  %v319_v49 = vld [vmem:[#allocation2 + $0x18] sm:$0xff] }
  0x65   : > { %894 = vmatpush.bf16.msrb.mxu3 %v1374_v4 }
  0x66   : > { %838 = vmatpush.bf16.msrb.mxu0 %v1174_v15 }
  0x67   : > { %857 = vmatpush.bf16.msrb.mxu1 %v1238_v9 }
  0x68   : > { %876 = vmatpush.bf16.msrb.mxu2 %v1302_v5 }
  0x69   : > { %895 = vmatpush.bf16.msrb.mxu3 %v1366_v16 }
  0x6a   : > { %839 = vmatpush.bf16.msrb.mxu0 %v1166_v27 }
  0x6b   : > { %858 = vmatpush.bf16.msrb.mxu1 %v1230_v21 }
  0x6c   : > { %877 = vmatpush.bf16.msrb.mxu2 %v1294_v17  ;;  %v318_v17 = vld [vmem:[#allocation2] sm:$0xff] }
  0x6d   : > { %896 = vmatpush.bf16.msrb.mxu3 %v1358_v28 }
  0x6e   : > { %840 = vmatpush.bf16.msrb.mxu0 %v1158_v35 }
  0x6f   : > { %859 = vmatpush.bf16.msrb.mxu1 %v1222_v32 }
  0x70   : > { %878 = vmatpush.bf16.msrb.mxu2 %v1286_v29 }
  0x71   : > { %897 = vmatpush.bf16.msrb.mxu3 %v1350_v36  ;;  %841 = vmatmul.bf16.vlgmr.msrb.gmra.mxu0 %v1722_v57 }
  0x72   : > { %860 = vmatmul.bf16.vlgmr.msrb.gmra.mxu1 %v1727_v62 }
  0x73   : > { %879 = vmatmul.bf16.vlgmr.msrb.gmra.mxu2 %v1729_v63 }
  0x74   : > { %898 = vmatmul.bf16.vlgmr.msrb.gmra.mxu3 %v1733_v2 }
  0x81   : > { %846 = vmatmul.bf16.gmra.mxu0 %v1774_v53 }
  0x82   : > { %865 = vmatmul.bf16.gmra.mxu1 %v1779_v59  ;;  %v321_v59 = vld [vmem:[#allocation2 + $0x8] sm:$0xff] }
  0x83   : > { %884 = vmatmul.bf16.gmra.mxu2 %v1781_v60 }
  0x84   : > { %903 = vmatmul.bf16.gmra.mxu3 %v1150_v1 }
  0xce   : > { %v766_v37 = vpop.f32.mrf.mxu0 }
  0xcf   : > { %v785_v38 = vpop.f32.mrf.mxu1 }
  0xd0   : > { %v786_v39 = vadd.f32 %v785_v38, %v766_v37 }
  0xd6   : > { %v804_v40 = vpop.f32.mrf.mxu2  ;;  %v768_v57 = vpop.f32.mrf.mxu0 }
  0xd7   : > { %v805_v41 = vadd.f32 %v804_v40, %v786_v39  ;;  %v823_v42 = vpop.f32.mrf.mxu3  ;;  %v787_v62 = vpop.f32.mrf.mxu1 }
  0xd8   : > { %v788_v2 = vadd.f32 %v787_v62, %v768_v57 }
  0xd9   : > { %v824_v44 = vadd.f32 %v823_v42, %v805_v41  ;;  %v324_v41 = vld [vmem:[#allocation2 + $0x38] sm:$0xff] }
  0xdb   : > { %v909_v63 = vadd.f32 %v824_v44, %v317_v43 }
  0xdd   : > { %917 = vst [vmem:[#allocation2 + $0x30] sm:$0xff] %v909_v63 }
  0xde   : > { %v806_v45 = vpop.f32.mrf.mxu2  ;;  %v771_v48 = vpop.f32.mrf.mxu0 }
  0xdf   : > { %v807_v46 = vadd.f32 %v806_v45, %v788_v2  ;;  %v825_v47 = vpop.f32.mrf.mxu3  ;;  %v790_v50 = vpop.f32.mrf.mxu1 }
  0xe0   : > { %v791_v53 = vadd.f32 %v790_v50, %v771_v48 }
  0xe1   : > { %v826_v51 = vadd.f32 %v825_v47, %v807_v46 }
  0xe3   : > { %v911_v52 = vadd.f32 %v826_v51, %v319_v49 }
  0xe5   : > { %919 = vst [vmem:[#allocation2 + $0x18] sm:$0xff] %v911_v52 }
  0xe6   : > { %v809_v54 = vpop.f32.mrf.mxu2  ;;  %v773_v58 = vpop.f32.mrf.mxu0 }
  0xe7   : > { %v810_v55 = vadd.f32 %v809_v54, %v791_v53  ;;  %v828_v56 = vpop.f32.mrf.mxu3  ;;  %v792_v60 = vpop.f32.mrf.mxu1 }
  0xe8   : > { %v793_v1 = vadd.f32 %v792_v60, %v773_v58 }
  0xe9   : > { %v829_v61 = vadd.f32 %v828_v56, %v810_v55 }
  0xeb   : > { %v913_v0 = vadd.f32 %v829_v61, %v321_v59 }
  0xed   : > { %921 = vst [vmem:[#allocation2 + $0x8] sm:$0xff] %v913_v0 }
  0xee   : > { %v811_v3 = vpop.f32.mrf.mxu2  ;;  %v842_v7 = vpop.f32.mrf.mxu0 }
  0xef   : > { %v812_v4 = vadd.f32 %v811_v3, %v793_v1  ;;  %v830_v5 = vpop.f32.mrf.mxu3  ;;  %v861_v8 = vpop.f32.mrf.mxu1 }
  0xf0   : > { %v862_v11 = vadd.f32 %v861_v8, %v842_v7 }
  0xf1   : > { %v831_v9 = vadd.f32 %v830_v5, %v812_v4 }
  0xf3   : > { %v915_v10 = vadd.f32 %v831_v9, %v323_v6 }
  0xf5   : > { %923 = vst [vmem:[#allocation2 + $0x28] sm:$0xff] %v915_v10 }
  0xf6   : > { %v880_v12 = vpop.f32.mrf.mxu2  ;;  %v844_v15 = vpop.f32.mrf.mxu0 }
  0xf7   : > { %v899_v13 = vpop.f32.mrf.mxu3  ;;  %v881_v14 = vadd.f32 %v880_v12, %v862_v11  ;;  %v863_v16 = vpop.f32.mrf.mxu1 }
  0xf8   : > { %v864_v20 = vadd.f32 %v863_v16, %v844_v15 }
  0xf9   : > { %v900_v18 = vadd.f32 %v899_v13, %v881_v14 }
  0xfb   : > { %v910_v19 = vadd.f32 %v900_v18, %v318_v17 }
  0xfd   : > { %918 = vst [vmem:[#allocation2] sm:$0xff] %v910_v19 }
  0xfe   : > { %v882_v21 = vpop.f32.mrf.mxu2  ;;  %v847_v25 = vpop.f32.mrf.mxu0 }
  0xff   : > { %v901_v22 = vpop.f32.mrf.mxu3  ;;  %v883_v23 = vadd.f32 %v882_v21, %v864_v20  ;;  %v866_v26 = vpop.f32.mrf.mxu1 }
 0x100   : > { %v867_v29 = vadd.f32 %v866_v26, %v847_v25 }
 0x101   : > { %v902_v27 = vadd.f32 %v901_v22, %v883_v23 }
 0x103   : > { %v912_v28 = vadd.f32 %v902_v27, %v320_v24 }
 0x105   : > { %920 = vst [vmem:[#allocation2 + $0x10] sm:$0xff] %v912_v28 }
 0x106   : > { %v885_v30 = vpop.f32.mrf.mxu2  ;;  %v849_v35 = vpop.f32.mrf.mxu0 }
 0x107   : > { %v904_v31 = vpop.f32.mrf.mxu3  ;;  %v886_v32 = vadd.f32 %v885_v30, %v867_v29  ;;  %v868_v36 = vpop.f32.mrf.mxu1 }
 0x108   : > { %v869_v38 = vadd.f32 %v868_v36, %v849_v35 }
 0x109   : > { %v905_v34 = vadd.f32 %v904_v31, %v886_v32 }
 0x10b   : > { %v914_v37 = vadd.f32 %v905_v34, %v322_v33 }
 0x10d   : > { %922 = vst [vmem:[#allocation2 + $0x20] sm:$0xff] %v914_v37 }
 0x10e   : > { %v887_v39 = vpop.f32.mrf.mxu2 }
 0x10f   : > { %v888_v40 = vadd.f32 %v887_v39, %v869_v38  ;;  %v906_v42 = vpop.f32.mrf.mxu3 }
 0x111   : > { %v907_v57 = vadd.f32 %v906_v42, %v888_v40  ;;  %928 = sbr.rel (%p1407_p11) target bundleno = 294 (0x126), region = 63 }
 0x113   : > { %v916_v43 = vadd.f32 %v907_v57, %v324_v41 }
 0x115   : > { %924 = vst [vmem:[#allocation2 + $0x38] sm:$0xff] %v916_v43 }
 0x116   : > { %v929_v62 = vld [vmem:[#allocation2 + $0x30] sm:$0xff]  ;;  %v937_v44 = vld [vmem:[%s1860_s2] sm:$0x3]  ;;  %v931_v46 = vld [vmem:[#allocation2 + $0x18] sm:$0xff] }
 0x117   : > { %v930_v63 = vld [vmem:[#allocation2] sm:$0xff]  ;;  %v939_v2 = vperm.slane %v937_v44, 0  ;;  %v940_v45 = vperm.slane %v937_v44, 1  ;;  %v932_v47 = vld [vmem:[#allocation2 + $0x10] sm:$0xff]  ;;  %v933_v48 = vld [vmem:[#allocation2 + $0x8] sm:$0xff] }
 0x118   : > { %v934_v49 = vld [vmem:[#allocation2 + $0x20] sm:$0xff]  ;;  %v935_v50 = vld [vmem:[#allocation2 + $0x28] sm:$0xff] }
 0x119   : > { %v943_v52 = vadd.f32 %v939_v2, %v929_v62  ;;  %v944_v53 = vadd.f32 %v940_v45, %v930_v63  ;;  %v945_v54 = vadd.f32 %v939_v2, %v931_v46  ;;  %v946_v55 = vadd.f32 %v940_v45, %v932_v47 }
 0x11a   : > { %v947_v56 = vadd.f32 %v939_v2, %v933_v48  ;;  %v948_v58 = vadd.f32 %v940_v45, %v934_v49  ;;  %v949_v59 = vadd.f32 %v939_v2, %v935_v50 }
 0x11b   : > { %vm951_vm0 = vcmp.gt.f32.partialorder %v943_v52, 0.0  ;;  %v959_v61 = vmul.f32 0.2, %v943_v52  ;;  %vm952_vm1 = vcmp.gt.f32.partialorder %v944_v53, 0.0  ;;  %v960_v0 = vmul.f32 0.2, %v944_v53 }
 0x11c   : > { %v936_v51 = vld [vmem:[#allocation2 + $0x38] sm:$0xff]  ;;  %vm953_vm2 = vcmp.gt.f32.partialorder %v945_v54, 0.0  ;;  %v961_v1 = vmul.f32 0.2, %v945_v54  ;;  %vm954_vm3 = vcmp.gt.f32.partialorder %v946_v55, 0.0  ;;  %vm955_vm4 = vcmp.gt.f32.partialorder %v947_v56, 0.0 }
 0x11d   : > { %v950_v60 = vadd.f32 %v940_v45, %v936_v51  ;;  %v962_v3 = vmul.f32 0.2, %v946_v55  ;;  %v967_v4 = vsel %vm951_vm0, %v943_v52, %v959_v61  ;;  %v968_v5 = vsel %vm952_vm1, %v944_v53, %v960_v0 }
 0x11e   : > { %v963_v6 = vmul.f32 0.2, %v947_v56  ;;  %975 = vst [vmem:[%s1861_s3] sm:$0xff] %v967_v4  ;;  %v969_v7 = vsel %vm953_vm2, %v945_v54, %v961_v1  ;;  %vm956_vm5 = vcmp.gt.f32.partialorder %v948_v58, 0.0  ;;  %v964_v9 = vmul.f32 0.2, %v948_v58 }
 0x11f   : > { %v970_v8 = vsel %vm954_vm3, %v946_v55, %v962_v3  ;;  %976 = vst [vmem:[%s1861_s3 + $0x8] sm:$0xff] %v968_v5  ;;  %vm957_vm6 = vcmp.gt.f32.partialorder %v949_v59, 0.0  ;;  %v965_v11 = vmul.f32 0.2, %v949_v59  ;;  %vm958_vm7 = vcmp.gt.f32.partialorder %v950_v60, 0.0 }
 0x120   : > { %v971_v10 = vsel %vm955_vm4, %v947_v56, %v963_v6  ;;  %977 = vst [vmem:[%s1861_s3 + $0x10] sm:$0xff] %v969_v7  ;;  %v972_v12 = vsel %vm956_vm5, %v948_v58, %v964_v9  ;;  %v966_v13 = vmul.f32 0.2, %v950_v60 }
 0x121   : > { %978 = vst [vmem:[%s1861_s3 + $0x18] sm:$0xff] %v970_v8  ;;  %v973_v14 = vsel %vm957_vm6, %v949_v59, %v965_v11 }
 0x122   : > { %979 = vst [vmem:[%s1861_s3 + $0x20] sm:$0xff] %v971_v10  ;;  %v974_v15 = vsel %vm958_vm7, %v950_v60, %v966_v13 }
 0x123   : > { %980 = vst [vmem:[%s1861_s3 + $0x28] sm:$0xff] %v972_v12 }
 0x124   : > { %981 = vst [vmem:[%s1861_s3 + $0x30] sm:$0xff] %v973_v14 }
 0x125   : > { %982 = vst [vmem:[%s1861_s3 + $0x38] sm:$0xff] %v974_v15 }
 0x126 PF: > { %s13_s16 = sadd.s32 1, %s1565_s16   ;;  %s1862_s12 = smov %s1553_s13 }
 0x127   : > { %p10_p12 = scmp.ge.s32.totalorder %s13_s16, 6   ;;  %s1863_s13 = smov %s1623_s20 }
 0x128   : > { %s1864_s14 = smov %s1561_s15  ;;  %s1865_s15 = smov %s1867_s17 }
 0x129   :  { %12 = sbr.rel (!%p10_p12) target bundleno = 3 (0x3), region = 104 }

// kernel: discriminator_forward.8
= control target key start
LH: loop header
LB: loop body
LE: loop exit
PB: predicated region body
PF: predicated region fallthrough
CT: control target
= control target key end

     0   :  { %s2307_s0 = inlined_call_operand.vmem [shape: bf16[16,4096], index: 0, kind: input, shape index: {}]   ;;  %s2308_s1 = inlined_call_operand.vmem [shape: bf16[4096,512], index: 1, kind: input, shape index: {}]   ;;  %s2309_s2 = inlined_call_operand.vmem [shape: f32[1,512], index: 2, kind: input, shape index: {}]   ;;  %s2310_s3 = inlined_call_operand.vmem [shape: f32[16,512], index: 3, kind: output, shape index: {}]  }
   0x1   :  { %2312 = sst [smem:[#allocation7_spill]] %s2307_s0 }
   0x2   :  { %2313 = sst [smem:[#allocation8_spill]] %s2308_s1 }
   0x3   :  { %s1837_s12 = smov 0   ;;  %s1839_s13 = smov 0  }
   0x4   :  { %s1841_s14 = smov 0   ;;  %s1843_s15 = smov 0  }
   0x5   :  { %s1845_s16 = smov 0   ;;  %s1847_s17 = smov 0  }
   0x6   :  { %s1849_s18 = smov 0   ;;  %s1851_s19 = smov 0  }
   0x7   :  { %s1853_s20 = smov 0   ;;  %s1855_s21 = smov 0  }
   0x8   :  { %s1857_s22 = smov 0  }
   0x9 LB: > { %s1272_s23 = sadd.s32 4294967295, %s1814_s22   ;;  %s25_s24 = sadd.s32 1, %s1806_s20  ;;  %s1814_s22 = sphi %s1857_s22, %s13_s22   ;;  %s1810_s21 = sphi %s1855_s21, %s2330_s21   ;;  %s1806_s20 = sphi %s1853_s20, %s2329_s20   ;;  %s1802_s19 = sphi %s1851_s19, %s2328_s19   ;;  %s1798_s18 = sphi %s1849_s18, %s2327_s18   ;;  %s1794_s17 = sphi %s1847_s17, %s2326_s17   ;;  %s1790_s16 = sphi %s1845_s16, %s2325_s16   ;;  %s1786_s15 = sphi %s1843_s15, %s2324_s15   ;;  %s1782_s14 = sphi %s1841_s14, %s2323_s14   ;;  %s1778_s13 = sphi %s1839_s13, %s2322_s13   ;;  %s1774_s12 = sphi %s1837_s12, %s2321_s12  }
   0xa   : > { %p26_p0 = scmp.ge.s32.totalorder %s25_s24, 8  ;;  %s28_s25 = sadd.s32 1, %s1810_s21 }
   0xb   : > { %s41_s26 = sadd.s32 1, %s1794_s17  ;;  %p48_p1 = scmp.ne.s32.totalorder %s1794_s17, %s1790_s16 }
   0xc   : > { %s2332_s24 = smov (%p26_p0, %s25_s24), 0  ;;  %s2334_s25 = smov (!%p26_p0, %s28_s25), %s1810_s21 }
   0xd   : > { %s37_s27 = ssub.s32 %s1806_s20, %s2332_s24  ;;  %p49_p2 = scmp.eq.s32.totalorder %s1814_s22, 0 }
   0xe   : > { %p30_p3 = scmp.ge.s32.totalorder %s2334_s25, 2  ;;  %p39_p4 = scmp.eq.s32.totalorder %s37_s27, 0 }
   0xf   : > { %p1904_p5 = por %p49_p2, %p48_p1  ;;  %s69_s29 = sadd.s32 1, %s1786_s15 }
  0x10   : > { %s2336_s25 = smov (%p30_p3, %s2334_s25), 0  ;;  %p76_p6 = scmp.ne.s32.totalorder %s1786_s15, %s1782_s14 }
  0x11   : > { %2315 = sst [smem:[#allocation6_spill]] %s2336_s25  ;;  %s65_s4 = ssub.s32 %s1810_s21, %s2336_s25 }
  0x12   : > { %s1912_s30 = scalar_select %p39_p4, %s1794_s17, %s41_s26  }
  0x13   : > { %s66_s5 = sor.u32 %s65_s4, %s37_s27  ;;  %p121_p7 = scmp.eq.s32.totalorder %s65_s4, 0 }
  0x14   : > { %p67_p8 = scmp.eq.s32.totalorder %s66_s5, 0  ;;  %p1918_p9 = por %p76_p6, %p49_p2 }
  0x15   : > { %s123_s7 = sadd.s32 1, %s1778_s13  ;;  %p133_p10 = scmp.ne.s32.totalorder %s1778_s13, %s1774_s12 }
  0x16   : > { %s1926_s8 = scalar_select %p67_p8, %s1786_s15, %s69_s29  }
  0x17   : > { %s1929_s9 = scalar_select %p121_p7, %s1778_s13, %s123_s7  }
  0x18   : > { %p134_p11 = scmp.eq.s32.totalorder %s1272_s23, 15  ;;  %p1275_p13 = scmp.ge.s32.totalorder %s1814_s22, 16 }
  0x1a   : > { %p1931_p12 = por %p134_p11, %p133_p10  ;;  %156 = sbr.rel (%p1275_p13) target bundleno = 119 (0x77), region = 16 }
  0x1f   : > { %159 = sbr.rel (!%p1904_p5) target bundleno = 45 (0x2d), region = 20  ;;  %s161_s11 = sand.u32 (%p1904_p5), 1, %s1794_s17  }
  0x20   : > { %s1568_s26 = sshll.u32 (%p1904_p5), %s1806_s20, 4  ;;  %s1276_s27 = sshll.u32 (%p1904_p5), %s161_s11, 5 }
  0x21   : > { %s2318_s0 = sld [smem:[#allocation7_spill]] (%p1904_p5)  ;;  %s163_s23 = scalar_lea.vmem (%p1904_p5), [#allocation3], %s1276_s27 }
  0x27   : > { %s169_s5 = scalar_lea.vmem %s2318_s0, %s1568_s26 }
  0x28   : > { %v182_v0 = vld [vmem:[%s169_s5] sm:$0xff]  ;;  %v184_v1 = vld [vmem:[%s169_s5 + $0x8] sm:$0xff] }
  0x29   : > { %v186_v2 = vld [vmem:[%s169_s5 + $0x80] sm:$0xff]  ;;  %183 = vst [vmem:[%s163_s23] sm:$0xff] %v182_v0  ;;  %v188_v3 = vld [vmem:[%s169_s5 + $0x88] sm:$0xff] }
  0x2a   : > { %185 = vst [vmem:[%s163_s23 + $0x8] sm:$0xff] %v184_v1 }
  0x2b   : > { %187 = vst [vmem:[%s163_s23 + $0x10] sm:$0xff] %v186_v2 }
  0x2c   : > { %189 = vst [vmem:[%s163_s23 + $0x18] sm:$0xff] %v188_v3 }
  0x2d PF: > { %195 = sbr.rel (!%p1918_p9) target bundleno = 119 (0x77), region = 43  ;;  %s197_s28 = sand.u32 (%p1918_p9), 1, %s1786_s15  }
  0x2e   : > { %s1281_s7 = sshll.u32 (%p1918_p9), %s1810_s21, 1  ;;  %s1279_s11 = sshll.u32 (%p1918_p9), %s197_s28, 9 }
  0x2f   : > { %s1569_s26 = sshll.u32 (%p1918_p9), %s1806_s20, 8  ;;  %s2319_s1 = sld [smem:[#allocation8_spill]] (%p1918_p9) }
  0x30   : > { %s203_s29 = sadd.s32 (%p1918_p9), %s1569_s26, %s1281_s7  ;;  %s1956_s6 = scalar_lea.vmem (%p1918_p9), [#allocation4], %s1279_s11 }
  0x31   : > { %s1283_s4 = sshll.u32 (%p1918_p9), %s203_s29, 2 }
  0x35   : > { %s1951_s5 = scalar_lea.vmem %s2319_s1, %s1283_s4 }
  0x36   : > { %v360_v4 = vld [vmem:[%s1951_s5] sm:$0xff]  ;;  %v362_v5 = vld [vmem:[%s1951_s5 + $0x10] sm:$0xff] }
  0x37   : > { %v364_v6 = vld [vmem:[%s1951_s5 + $0x20] sm:$0xff]  ;;  %361 = vst [vmem:[%s1956_s6] sm:$0xff] %v360_v4  ;;  %v366_v7 = vld [vmem:[%s1951_s5 + $0x30] sm:$0xff] }
  0x38   : > { %363 = vst [vmem:[%s1956_s6 + $0x8] sm:$0xff] %v362_v5  ;;  %v368_v8 = vld [vmem:[%s1951_s5 + $0x40] sm:$0xff]  ;;  %v370_v9 = vld [vmem:[%s1951_s5 + $0x50] sm:$0xff] }
  0x39   : > { %365 = vst [vmem:[%s1956_s6 + $0x10] sm:$0xff] %v364_v6  ;;  %v372_v10 = vld [vmem:[%s1951_s5 + $0x60] sm:$0xff]  ;;  %v374_v11 = vld [vmem:[%s1951_s5 + $0x70] sm:$0xff] }
  0x3a   : > { %367 = vst [vmem:[%s1956_s6 + $0x18] sm:$0xff] %v366_v7  ;;  %v376_v12 = vld [vmem:[%s1951_s5 + $0x80] sm:$0xff]  ;;  %v378_v13 = vld [vmem:[%s1951_s5 + $0x90] sm:$0xff] }
  0x3b   : > { %369 = vst [vmem:[%s1956_s6 + $0x20] sm:$0xff] %v368_v8  ;;  %v380_v14 = vld [vmem:[%s1951_s5 + $0xa0] sm:$0xff]  ;;  %v382_v15 = vld [vmem:[%s1951_s5 + $0xb0] sm:$0xff] }
  0x3c   : > { %371 = vst [vmem:[%s1956_s6 + $0x28] sm:$0xff] %v370_v9  ;;  %v384_v16 = vld [vmem:[%s1951_s5 + $0xc0] sm:$0xff]  ;;  %v386_v17 = vld [vmem:[%s1951_s5 + $0xd0] sm:$0xff] }
  0x3d   : > { %373 = vst [vmem:[%s1956_s6 + $0x30] sm:$0xff] %v372_v10  ;;  %v388_v18 = vld [vmem:[%s1951_s5 + $0xe0] sm:$0xff]  ;;  %v390_v19 = vld [vmem:[%s1951_s5 + $0xf0] sm:$0xff] }
  0x3e   : > { %375 = vst [vmem:[%s1956_s6 + $0x38] sm:$0xff] %v374_v11  ;;  %v392_v20 = vld [vmem:[%s1951_s5 + $0x100] sm:$0xff]  ;;  %v394_v21 = vld [vmem:[%s1951_s5 + $0x110] sm:$0xff] }
  0x3f   : > { %377 = vst [vmem:[%s1956_s6 + $0x40] sm:$0xff] %v376_v12  ;;  %v396_v22 = vld [vmem:[%s1951_s5 + $0x120] sm:$0xff]  ;;  %v398_v23 = vld [vmem:[%s1951_s5 + $0x130] sm:$0xff] }
  0x40   : > { %379 = vst [vmem:[%s1956_s6 + $0x48] sm:$0xff] %v378_v13  ;;  %v400_v24 = vld [vmem:[%s1951_s5 + $0x140] sm:$0xff]  ;;  %v402_v25 = vld [vmem:[%s1951_s5 + $0x150] sm:$0xff] }
  0x41   : > { %381 = vst [vmem:[%s1956_s6 + $0x50] sm:$0xff] %v380_v14  ;;  %v404_v26 = vld [vmem:[%s1951_s5 + $0x160] sm:$0xff]  ;;  %v406_v27 = vld [vmem:[%s1951_s5 + $0x170] sm:$0xff] }
  0x42   : > { %383 = vst [vmem:[%s1956_s6 + $0x58] sm:$0xff] %v382_v15  ;;  %v408_v28 = vld [vmem:[%s1951_s5 + $0x180] sm:$0xff]  ;;  %v410_v29 = vld [vmem:[%s1951_s5 + $0x190] sm:$0xff] }
  0x43   : > { %385 = vst [vmem:[%s1956_s6 + $0x60] sm:$0xff] %v384_v16  ;;  %v412_v30 = vld [vmem:[%s1951_s5 + $0x1a0] sm:$0xff]  ;;  %v414_v31 = vld [vmem:[%s1951_s5 + $0x1b0] sm:$0xff] }
  0x44   : > { %387 = vst [vmem:[%s1956_s6 + $0x68] sm:$0xff] %v386_v17  ;;  %v416_v32 = vld [vmem:[%s1951_s5 + $0x1c0] sm:$0xff]  ;;  %v418_v33 = vld [vmem:[%s1951_s5 + $0x1d0] sm:$0xff] }
  0x45   : > { %389 = vst [vmem:[%s1956_s6 + $0x70] sm:$0xff] %v388_v18  ;;  %v420_v34 = vld [vmem:[%s1951_s5 + $0x1e0] sm:$0xff]  ;;  %v422_v35 = vld [vmem:[%s1951_s5 + $0x1f0] sm:$0xff] }
  0x46   : > { %391 = vst [vmem:[%s1956_s6 + $0x78] sm:$0xff] %v390_v19  ;;  %v424_v36 = vld [vmem:[%s1951_s5 + $0x200] sm:$0xff]  ;;  %v426_v37 = vld [vmem:[%s1951_s5 + $0x210] sm:$0xff] }
  0x47   : > { %393 = vst [vmem:[%s1956_s6 + $0x80] sm:$0xff] %v392_v20  ;;  %v428_v38 = vld [vmem:[%s1951_s5 + $0x220] sm:$0xff]  ;;  %v430_v39 = vld [vmem:[%s1951_s5 + $0x230] sm:$0xff] }
  0x48   : > { %395 = vst [vmem:[%s1956_s6 + $0x88] sm:$0xff] %v394_v21  ;;  %v432_v40 = vld [vmem:[%s1951_s5 + $0x240] sm:$0xff]  ;;  %v434_v41 = vld [vmem:[%s1951_s5 + $0x250] sm:$0xff] }
  0x49   : > { %397 = vst [vmem:[%s1956_s6 + $0x90] sm:$0xff] %v396_v22  ;;  %v436_v42 = vld [vmem:[%s1951_s5 + $0x260] sm:$0xff]  ;;  %v438_v43 = vld [vmem:[%s1951_s5 + $0x270] sm:$0xff] }
  0x4a   : > { %399 = vst [vmem:[%s1956_s6 + $0x98] sm:$0xff] %v398_v23  ;;  %v440_v44 = vld [vmem:[%s1951_s5 + $0x280] sm:$0xff]  ;;  %v442_v45 = vld [vmem:[%s1951_s5 + $0x290] sm:$0xff] }
  0x4b   : > { %401 = vst [vmem:[%s1956_s6 + $0xa0] sm:$0xff] %v400_v24  ;;  %v444_v46 = vld [vmem:[%s1951_s5 + $0x2a0] sm:$0xff]  ;;  %v446_v47 = vld [vmem:[%s1951_s5 + $0x2b0] sm:$0xff] }
  0x4c   : > { %403 = vst [vmem:[%s1956_s6 + $0xa8] sm:$0xff] %v402_v25  ;;  %v448_v48 = vld [vmem:[%s1951_s5 + $0x2c0] sm:$0xff]  ;;  %v450_v49 = vld [vmem:[%s1951_s5 + $0x2d0] sm:$0xff] }
  0x4d   : > { %405 = vst [vmem:[%s1956_s6 + $0xb0] sm:$0xff] %v404_v26  ;;  %v452_v50 = vld [vmem:[%s1951_s5 + $0x2e0] sm:$0xff]  ;;  %v454_v51 = vld [vmem:[%s1951_s5 + $0x2f0] sm:$0xff] }
  0x4e   : > { %407 = vst [vmem:[%s1956_s6 + $0xb8] sm:$0xff] %v406_v27  ;;  %v456_v52 = vld [vmem:[%s1951_s5 + $0x300] sm:$0xff]  ;;  %v458_v53 = vld [vmem:[%s1951_s5 + $0x310] sm:$0xff] }
  0x4f   : > { %409 = vst [vmem:[%s1956_s6 + $0xc0] sm:$0xff] %v408_v28  ;;  %v460_v54 = vld [vmem:[%s1951_s5 + $0x320] sm:$0xff]  ;;  %v462_v55 = vld [vmem:[%s1951_s5 + $0x330] sm:$0xff] }
  0x50   : > { %411 = vst [vmem:[%s1956_s6 + $0xc8] sm:$0xff] %v410_v29  ;;  %v464_v56 = vld [vmem:[%s1951_s5 + $0x340] sm:$0xff]  ;;  %v466_v57 = vld [vmem:[%s1951_s5 + $0x350] sm:$0xff] }
  0x51   : > { %413 = vst [vmem:[%s1956_s6 + $0xd0] sm:$0xff] %v412_v30  ;;  %v468_v58 = vld [vmem:[%s1951_s5 + $0x360] sm:$0xff]  ;;  %v470_v59 = vld [vmem:[%s1951_s5 + $0x370] sm:$0xff] }
  0x52   : > { %415 = vst [vmem:[%s1956_s6 + $0xd8] sm:$0xff] %v414_v31  ;;  %v472_v60 = vld [vmem:[%s1951_s5 + $0x380] sm:$0xff]  ;;  %v474_v61 = vld [vmem:[%s1951_s5 + $0x390] sm:$0xff] }
  0x53   : > { %417 = vst [vmem:[%s1956_s6 + $0xe0] sm:$0xff] %v416_v32  ;;  %v476_v62 = vld [vmem:[%s1951_s5 + $0x3a0] sm:$0xff]  ;;  %v478_v63 = vld [vmem:[%s1951_s5 + $0x3b0] sm:$0xff] }
  0x54   : > { %419 = vst [vmem:[%s1956_s6 + $0xe8] sm:$0xff] %v418_v33  ;;  %v480_v0 = vld [vmem:[%s1951_s5 + $0x3c0] sm:$0xff]  ;;  %v482_v1 = vld [vmem:[%s1951_s5 + $0x3d0] sm:$0xff] }
  0x55   : > { %421 = vst [vmem:[%s1956_s6 + $0xf0] sm:$0xff] %v420_v34  ;;  %v484_v2 = vld [vmem:[%s1951_s5 + $0x3e0] sm:$0xff]  ;;  %v486_v3 = vld [vmem:[%s1951_s5 + $0x3f0] sm:$0xff] }
  0x56   : > { %423 = vst [vmem:[%s1956_s6 + $0xf8] sm:$0xff] %v422_v35 }
  0x57   : > { %425 = vst [vmem:[%s1956_s6 + $0x100] sm:$0xff] %v424_v36 }
  0x58   : > { %427 = vst [vmem:[%s1956_s6 + $0x108] sm:$0xff] %v426_v37 }
  0x59   : > { %429 = vst [vmem:[%s1956_s6 + $0x110] sm:$0xff] %v428_v38 }
  0x5a   : > { %431 = vst [vmem:[%s1956_s6 + $0x118] sm:$0xff] %v430_v39 }
  0x5b   : > { %433 = vst [vmem:[%s1956_s6 + $0x120] sm:$0xff] %v432_v40 }
  0x5c   : > { %435 = vst [vmem:[%s1956_s6 + $0x128] sm:$0xff] %v434_v41 }
  0x5d   : > { %437 = vst [vmem:[%s1956_s6 + $0x130] sm:$0xff] %v436_v42 }
  0x5e   : > { %439 = vst [vmem:[%s1956_s6 + $0x138] sm:$0xff] %v438_v43 }
  0x5f   : > { %441 = vst [vmem:[%s1956_s6 + $0x140] sm:$0xff] %v440_v44 }
  0x60   : > { %443 = vst [vmem:[%s1956_s6 + $0x148] sm:$0xff] %v442_v45 }
  0x61   : > { %445 = vst [vmem:[%s1956_s6 + $0x150] sm:$0xff] %v444_v46 }
  0x62   : > { %447 = vst [vmem:[%s1956_s6 + $0x158] sm:$0xff] %v446_v47 }
  0x63   : > { %449 = vst [vmem:[%s1956_s6 + $0x160] sm:$0xff] %v448_v48 }
  0x64   : > { %451 = vst [vmem:[%s1956_s6 + $0x168] sm:$0xff] %v450_v49 }
  0x65   : > { %453 = vst [vmem:[%s1956_s6 + $0x170] sm:$0xff] %v452_v50 }
  0x66   : > { %455 = vst [vmem:[%s1956_s6 + $0x178] sm:$0xff] %v454_v51 }
  0x67   : > { %457 = vst [vmem:[%s1956_s6 + $0x180] sm:$0xff] %v456_v52 }
  0x68   : > { %459 = vst [vmem:[%s1956_s6 + $0x188] sm:$0xff] %v458_v53 }
  0x69   : > { %461 = vst [vmem:[%s1956_s6 + $0x190] sm:$0xff] %v460_v54 }
  0x6a   : > { %463 = vst [vmem:[%s1956_s6 + $0x198] sm:$0xff] %v462_v55 }
  0x6b   : > { %465 = vst [vmem:[%s1956_s6 + $0x1a0] sm:$0xff] %v464_v56 }
  0x6c   : > { %467 = vst [vmem:[%s1956_s6 + $0x1a8] sm:$0xff] %v466_v57 }
  0x6d   : > { %469 = vst [vmem:[%s1956_s6 + $0x1b0] sm:$0xff] %v468_v58 }
  0x6e   : > { %471 = vst [vmem:[%s1956_s6 + $0x1b8] sm:$0xff] %v470_v59 }
  0x6f   : > { %473 = vst [vmem:[%s1956_s6 + $0x1c0] sm:$0xff] %v472_v60 }
  0x70   : > { %475 = vst [vmem:[%s1956_s6 + $0x1c8] sm:$0xff] %v474_v61 }
  0x71   : > { %477 = vst [vmem:[%s1956_s6 + $0x1d0] sm:$0xff] %v476_v62 }
  0x72   : > { %479 = vst [vmem:[%s1956_s6 + $0x1d8] sm:$0xff] %v478_v63 }
  0x73   : > { %481 = vst [vmem:[%s1956_s6 + $0x1e0] sm:$0xff] %v480_v0 }
  0x74   : > { %483 = vst [vmem:[%s1956_s6 + $0x1e8] sm:$0xff] %v482_v1 }
  0x75   : > { %485 = vst [vmem:[%s1956_s6 + $0x1f0] sm:$0xff] %v484_v2 }
  0x76   : > { %487 = vst [vmem:[%s1956_s6 + $0x1f8] sm:$0xff] %v486_v3 }
  0x77 PF: > { %p1284_p0 = scmp.ge.s32.totalorder %s1814_s22, 1  ;;  %p500_p1 = scmp.lt.s32.totalorder %s1814_s22, 17 }
  0x79   : > { %p501_p2 = pnand %p1284_p0, %p500_p1 }
  0x7a   : > { %s507_s0 = sand.u32 (!%p501_p2), 1, %s1790_s16   ;;  %s514_s23 = sand.u32 (!%p501_p2), 1, %s1782_s14  }
  0x7b   : > { %504 = sbr.rel (%p501_p2) target bundleno = 376 (0x178), region = 85  ;;  %s1285_s28 = sshll.u32 (!%p501_p2), %s507_s0, 5 }
  0x7c   : > { %s1286_s7 = sshll.u32 (!%p501_p2), %s514_s23, 9  ;;  %s541_s11 = sand.u32 (!%p501_p2), 1, %s1774_s12  }
  0x7d   : > { %s1288_s26 = sshll.u32 (!%p501_p2), %s1802_s19, 1  ;;  %s1287_s29 = sshll.u32 (!%p501_p2), %s541_s11, 5 }
  0x7e   : > { %p549_p3 = scmp.lt.s32.totalorder (!%p501_p2), %s1288_s26, 3  ;;  %s2095_s6 = scalar_lea.vmem (!%p501_p2), [#allocation3], %s1285_s28 }
  0x7f   : > { %s2097_s1 = scalar_lea.vmem (!%p501_p2), [#allocation4], %s1286_s7  ;;  %s2099_s25 = scalar_lea.vmem (!%p501_p2), [#allocation5], %s1287_s29 }
  0x80   : > { %s2338_s26 = smov (!%p549_p3, %s1288_s26), 3  ;;  %p1289_p4 = scmp.ne.s32.totalorder %s1798_s18, 0 }
  0x81   : > { %s551_s5 = scalar_lea.vmem %s2309_s2, %s2338_s26 }
  0x82   : > { %558 = sbr.rel (%p1289_p4) target bundleno = 140 (0x8c), region = 97 }
  0x87   : > { %v1816_v4 = vmov 0.0  }
  0x88   : > { %559 = vst [vmem:[#allocation2 + $0x10] sm:$0xff] %v1816_v4 }
  0x89   : > { %560 = vst [vmem:[#allocation2] sm:$0xff] %v1816_v4 }
  0x8a   : > { %561 = vst [vmem:[#allocation2 + $0x18] sm:$0xff] %v1816_v4 }
  0x8b   : > { %562 = vst [vmem:[#allocation2 + $0x8] sm:$0xff] %v1816_v4 }
  0x8c PF: > { %v1364_v5 = vld [vmem:[%s2097_s1 + $0x70] sm:$0xf]  ;;  %v1589_v6 = vld [vmem:[%s2097_s1 + $0x74] sm:$0xf0]  ;;  %v1356_v16 = vld [vmem:[%s2097_s1 + $0x60] sm:$0xf] }
  0x8d   : > { %v1428_v7 = vld [vmem:[%s2097_s1 + $0xf0] sm:$0xf]  ;;  %v1365_v8 = vor.u32 %v1589_v6, %v1364_v5  ;;  %v1605_v9 = vld [vmem:[%s2097_s1 + $0xf4] sm:$0xf0]  ;;  %v1587_v18 = vld [vmem:[%s2097_s1 + $0x64] sm:$0xf0] }
  0x8e   : > { %v1492_v10 = vld [vmem:[%s2097_s1 + $0x170] sm:$0xf]  ;;  %v1621_v11 = vld [vmem:[%s2097_s1 + $0x174] sm:$0xf0]  ;;  %v1429_v12 = vor.u32 %v1605_v9, %v1428_v7  ;;  %v1420_v19 = vld [vmem:[%s2097_s1 + $0xe0] sm:$0xf]  ;;  %v1357_v21 = vor.u32 %v1587_v18, %v1356_v16 }
  0x8f   : > { %v1493_v13 = vor.u32 %v1621_v11, %v1492_v10  ;;  %v1556_v14 = vld [vmem:[%s2097_s1 + $0x1f0] sm:$0xf]  ;;  %v1637_v15 = vld [vmem:[%s2097_s1 + $0x1f4] sm:$0xf0]  ;;  %975 = vmatpush.bf16.msra.mxu0 %v1365_v8  ;;  %v1603_v20 = vld [vmem:[%s2097_s1 + $0xe4] sm:$0xf0] }
  0x90   : > { %v1557_v17 = vor.u32 %v1637_v15, %v1556_v14  ;;  %989 = vmatpush.bf16.msra.mxu1 %v1429_v12  ;;  %v1421_v22 = vor.u32 %v1603_v20, %v1420_v19  ;;  %v1484_v23 = vld [vmem:[%s2097_s1 + $0x160] sm:$0xf]  ;;  %v1619_v24 = vld [vmem:[%s2097_s1 + $0x164] sm:$0xf0]  ;;  %v1348_v28 = vld [vmem:[%s2097_s1 + $0x50] sm:$0xf] }
  0x91   : > { %1003 = vmatpush.bf16.msra.mxu2 %v1493_v13  ;;  %v1548_v25 = vld [vmem:[%s2097_s1 + $0x1e0] sm:$0xf]  ;;  %v1485_v26 = vor.u32 %v1619_v24, %v1484_v23  ;;  %v1635_v27 = vld [vmem:[%s2097_s1 + $0x1e4] sm:$0xf0]  ;;  %v1585_v29 = vld [vmem:[%s2097_s1 + $0x54] sm:$0xf0] }
  0x92   : > { %1017 = vmatpush.bf16.msra.mxu3 %v1557_v17  ;;  %v1549_v30 = vor.u32 %v1635_v27, %v1548_v25  ;;  %v1412_v31 = vld [vmem:[%s2097_s1 + $0xd0] sm:$0xf]  ;;  %v1601_v32 = vld [vmem:[%s2097_s1 + $0xd4] sm:$0xf0]  ;;  %v1349_v34 = vor.u32 %v1585_v29, %v1348_v28  ;;  %v1340_v40 = vld [vmem:[%s2097_s1 + $0x40] sm:$0xf] }
  0x93   : > { %v1476_v33 = vld [vmem:[%s2097_s1 + $0x150] sm:$0xf]  ;;  %976 = vmatpush.bf16.msra.mxu0 %v1357_v21  ;;  %v1617_v35 = vld [vmem:[%s2097_s1 + $0x154] sm:$0xf0]  ;;  %v1413_v38 = vor.u32 %v1601_v32, %v1412_v31  ;;  %v1583_v41 = vld [vmem:[%s2097_s1 + $0x44] sm:$0xf0] }
  0x94   : > { %v1540_v36 = vld [vmem:[%s2097_s1 + $0x1d0] sm:$0xf]  ;;  %v1633_v37 = vld [vmem:[%s2097_s1 + $0x1d4] sm:$0xf0]  ;;  %990 = vmatpush.bf16.msra.mxu1 %v1421_v22  ;;  %v1477_v39 = vor.u32 %v1617_v35, %v1476_v33  ;;  %v1404_v42 = vld [vmem:[%s2097_s1 + $0xc0] sm:$0xf]  ;;  %v1341_v49 = vor.u32 %v1583_v41, %v1340_v40 }
  0x95   : > { %1004 = vmatpush.bf16.msra.mxu2 %v1485_v26  ;;  %v1541_v43 = vor.u32 %v1633_v37, %v1540_v36  ;;  %v1599_v44 = vld [vmem:[%s2097_s1 + $0xc4] sm:$0xf0]  ;;  %v1468_v45 = vld [vmem:[%s2097_s1 + $0x140] sm:$0xf]  ;;  %v1332_v52 = vld [vmem:[%s2097_s1 + $0x30] sm:$0xf] }
  0x96   : > { %1018 = vmatpush.bf16.msra.mxu3 %v1549_v30  ;;  %v1615_v46 = vld [vmem:[%s2097_s1 + $0x144] sm:$0xf0]  ;;  %v1532_v47 = vld [vmem:[%s2097_s1 + $0x1c0] sm:$0xf]  ;;  %v1405_v50 = vor.u32 %v1599_v44, %v1404_v42  ;;  %v1581_v53 = vld [vmem:[%s2097_s1 + $0x34] sm:$0xf0] }
  0x97   : > { %v1631_v48 = vld [vmem:[%s2097_s1 + $0x1c4] sm:$0xf0]  ;;  %977 = vmatpush.bf16.msra.mxu0 %v1349_v34  ;;  %v1469_v51 = vor.u32 %v1615_v46, %v1468_v45  ;;  %v1396_v54 = vld [vmem:[%s2097_s1 + $0xb0] sm:$0xf]  ;;  %v1597_v56 = vld [vmem:[%s2097_s1 + $0xb4] sm:$0xf0]  ;;  %v1333_v61 = vor.u32 %v1581_v53, %v1332_v52 }
  0x98   : > { %991 = vmatpush.bf16.msra.mxu1 %v1413_v38  ;;  %v1533_v55 = vor.u32 %v1631_v48, %v1532_v47  ;;  %v1460_v57 = vld [vmem:[%s2097_s1 + $0x130] sm:$0xf]  ;;  %v1613_v58 = vld [vmem:[%s2097_s1 + $0x134] sm:$0xf0]  ;;  %v1397_v62 = vor.u32 %v1597_v56, %v1396_v54  ;;  %v1324_v0 = vld [vmem:[%s2097_s1 + $0x20] sm:$0xf] }
  0x99   : > { %1005 = vmatpush.bf16.msra.mxu2 %v1477_v39  ;;  %v1524_v59 = vld [vmem:[%s2097_s1 + $0x1b0] sm:$0xf]  ;;  %v1629_v60 = vld [vmem:[%s2097_s1 + $0x1b4] sm:$0xf0]  ;;  %v1461_v63 = vor.u32 %v1613_v58, %v1460_v57  ;;  %v1579_v1 = vld [vmem:[%s2097_s1 + $0x24] sm:$0xf0] }
  0x9a   : > { %1019 = vmatpush.bf16.msra.mxu3 %v1541_v43  ;;  %v1388_v2 = vld [vmem:[%s2097_s1 + $0xa0] sm:$0xf]  ;;  %v1525_v3 = vor.u32 %v1629_v60, %v1524_v59  ;;  %v1595_v4 = vld [vmem:[%s2097_s1 + $0xa4] sm:$0xf0]  ;;  %v1325_v9 = vor.u32 %v1579_v1, %v1324_v0  ;;  %v1316_v12 = vld [vmem:[%s2097_s1 + $0x10] sm:$0xf] }
  0x9b   : > { %978 = vmatpush.bf16.msra.mxu0 %v1341_v49  ;;  %v1452_v5 = vld [vmem:[%s2097_s1 + $0x120] sm:$0xf]  ;;  %v1611_v6 = vld [vmem:[%s2097_s1 + $0x124] sm:$0xf0]  ;;  %v1389_v10 = vor.u32 %v1595_v4, %v1388_v2  ;;  %v1577_v13 = vld [vmem:[%s2097_s1 + $0x14] sm:$0xf0] }
  0x9c   : > { %992 = vmatpush.bf16.msra.mxu1 %v1405_v50  ;;  %v1516_v7 = vld [vmem:[%s2097_s1 + $0x1a0] sm:$0xf]  ;;  %v1627_v8 = vld [vmem:[%s2097_s1 + $0x1a4] sm:$0xf0]  ;;  %v1453_v11 = vor.u32 %v1611_v6, %v1452_v5  ;;  %v1380_v14 = vld [vmem:[%s2097_s1 + $0x90] sm:$0xf]  ;;  %v1317_v22 = vor.u32 %v1577_v13, %v1316_v12 }
  0x9d   : > { %1006 = vmatpush.bf16.msra.mxu2 %v1469_v51  ;;  %v1517_v15 = vor.u32 %v1627_v8, %v1516_v7  ;;  %v1593_v16 = vld [vmem:[%s2097_s1 + $0x94] sm:$0xf0]  ;;  %v1444_v17 = vld [vmem:[%s2097_s1 + $0x110] sm:$0xf]  ;;  %v1308_v21 = vld [vmem:[%s2097_s1] sm:$0xf] }
  0x9e   : > { %1020 = vmatpush.bf16.msra.mxu3 %v1533_v55  ;;  %v1609_v18 = vld [vmem:[%s2097_s1 + $0x114] sm:$0xf0]  ;;  %v1508_v19 = vld [vmem:[%s2097_s1 + $0x190] sm:$0xf]  ;;  %v1575_v23 = vld [vmem:[%s2097_s1 + $0x4] sm:$0xf0]  ;;  %v1381_v26 = vor.u32 %v1593_v16, %v1380_v14 }
  0x9f   : > { %979 = vmatpush.bf16.msra.mxu0 %v1333_v61  ;;  %v1625_v20 = vld [vmem:[%s2097_s1 + $0x194] sm:$0xf0]  ;;  %v1372_v24 = vld [vmem:[%s2097_s1 + $0x80] sm:$0xf]  ;;  %v1591_v25 = vld [vmem:[%s2097_s1 + $0x84] sm:$0xf0]  ;;  %v1445_v27 = vor.u32 %v1609_v18, %v1444_v17  ;;  %v1309_v38 = vor.u32 %v1575_v23, %v1308_v21 }
  0xa0   : > { %993 = vmatpush.bf16.msra.mxu1 %v1397_v62  ;;  %v1436_v28 = vld [vmem:[%s2097_s1 + $0x100] sm:$0xf]  ;;  %v1607_v29 = vld [vmem:[%s2097_s1 + $0x104] sm:$0xf0]  ;;  %v1509_v31 = vor.u32 %v1625_v20, %v1508_v19  ;;  %v1588_v33 = vld [vmem:[%s2097_s1 + $0x74] sm:$0xf]  ;;  %v1373_v42 = vor.u32 %v1591_v25, %v1372_v24 }
  0xa1   : > { %1007 = vmatpush.bf16.msra.mxu2 %v1461_v63  ;;  %v1500_v30 = vld [vmem:[%s2097_s1 + $0x180] sm:$0xf]  ;;  %v1623_v32 = vld [vmem:[%s2097_s1 + $0x184] sm:$0xf0]  ;;  %v1366_v34 = vld [vmem:[%s2097_s1 + $0x78] sm:$0xf0]  ;;  %v1437_v43 = vor.u32 %v1607_v29, %v1436_v28 }
  0xa2   : > { %1021 = vmatpush.bf16.msra.mxu3 %v1525_v3  ;;  %v1604_v35 = vld [vmem:[%s2097_s1 + $0xf4] sm:$0xf]  ;;  %v1430_v36 = vld [vmem:[%s2097_s1 + $0xf8] sm:$0xf0]  ;;  %v1586_v44 = vld [vmem:[%s2097_s1 + $0x64] sm:$0xf]  ;;  %v1501_v48 = vor.u32 %v1623_v32, %v1500_v30  ;;  %v1369_v49 = vor.u32 %v1588_v33, %v1366_v34 }
  0xa3   : > { %980 = vmatpush.bf16.msra.mxu0 %v1325_v9  ;;  %v1620_v37 = vld [vmem:[%s2097_s1 + $0x174] sm:$0xf]  ;;  %v1494_v39 = vld [vmem:[%s2097_s1 + $0x178] sm:$0xf0]  ;;  %v1358_v45 = vld [vmem:[%s2097_s1 + $0x68] sm:$0xf0]  ;;  %v1433_v54 = vor.u32 %v1604_v35, %v1430_v36 }
  0xa4   : > { %994 = vmatpush.bf16.msra.mxu1 %v1389_v10  ;;  %v1636_v40 = vld [vmem:[%s2097_s1 + $0x1f4] sm:$0xf]  ;;  %v1558_v41 = vld [vmem:[%s2097_s1 + $0x1f8] sm:$0xf0]  ;;  %v1300_v46 = vld [vmem:[%s2095_s6 + $0x8] sm:$0xf]  ;;  %v1497_v55 = vor.u32 %v1620_v37, %v1494_v39  ;;  %v1361_v4 = vor.u32 %v1586_v44, %v1358_v45 }
  0xa5   : > { %1008 = vmatpush.bf16.msra.mxu2 %v1453_v11  ;;  %v1573_v47 = vld [vmem:[%s2095_s6 + $0x14] sm:$0xf0]  ;;  %v1602_v50 = vld [vmem:[%s2097_s1 + $0xe4] sm:$0xf]  ;;  %v1422_v51 = vld [vmem:[%s2097_s1 + $0xe8] sm:$0xf0]  ;;  %v1561_v59 = vor.u32 %v1636_v40, %v1558_v41 }
  0xa6   : > { %1022 = vmatpush.bf16.msra.mxu3 %v1517_v15  ;;  %v1618_v52 = vld [vmem:[%s2097_s1 + $0x164] sm:$0xf]  ;;  %v1486_v53 = vld [vmem:[%s2097_s1 + $0x168] sm:$0xf0]  ;;  %v1302_v57 = vld [vmem:[%s2095_s6 + $0x18] sm:$0xf0]  ;;  %v2185_v60 = vor.u32 %v1573_v47, %v1300_v46  ;;  %v1425_v6 = vor.u32 %v1602_v50, %v1422_v51 }
  0xa7   : > { %981 = vmatpush.bf16.msra.mxu0 %v1317_v22  ;;  %v1571_v56 = vld [vmem:[%s2095_s6 + $0xc] sm:$0xf]  ;;  %v1292_v58 = vld [vmem:[%s2095_s6] sm:$0xf]  ;;  %v1572_v61 = vld [vmem:[%s2095_s6 + $0xc] sm:$0xf0]  ;;  %v1489_v7 = vor.u32 %v1618_v52, %v1486_v53 }
  0xa8   : > { %995 = vmatpush.bf16.msra.mxu1 %v1381_v26  ;;  %v1570_v62 = vld [vmem:[%s2095_s6 + $0x4] sm:$0xf]  ;;  %v1294_v63 = vld [vmem:[%s2095_s6 + $0x10] sm:$0xf0]  ;;  %v1550_v1 = vld [vmem:[%s2097_s1 + $0x1e8] sm:$0xf0]  ;;  %v2192_v2 = vor.u32 %v1571_v56, %v1302_v57  ;;  %v2194_v3 = vor.u32 %v1572_v61, %v1292_v58 }
  0xa9   : > { %1009 = vmatpush.bf16.msra.mxu2 %v1445_v27  ;;  %v1634_v0 = vld [vmem:[%s2097_s1 + $0x1e4] sm:$0xf]  ;;  %v2196_v5 = vor.u32 %v1570_v62, %v1294_v63  ;;  %v1584_v8 = vld [vmem:[%s2097_s1 + $0x54] sm:$0xf]  ;;  %v1350_v9 = vld [vmem:[%s2097_s1 + $0x58] sm:$0xf0] }
  0xaa   : > { %1023 = vmatpush.bf16.msra.mxu3 %v1509_v31  ;;  %v1600_v10 = vld [vmem:[%s2097_s1 + $0xd4] sm:$0xf]  ;;  %v1553_v11 = vor.u32 %v1634_v0, %v1550_v1  ;;  %v1414_v12 = vld [vmem:[%s2097_s1 + $0xd8] sm:$0xf0]  ;;  %v1353_v17 = vor.u32 %v1584_v8, %v1350_v9  ;;  %v1582_v20 = vld [vmem:[%s2097_s1 + $0x44] sm:$0xf] }
  0xab   : > { %982 = vmatpush.bf16.msra.mxu0 %v1309_v38  ;;  %v1616_v13 = vld [vmem:[%s2097_s1 + $0x154] sm:$0xf]  ;;  %v1478_v14 = vld [vmem:[%s2097_s1 + $0x158] sm:$0xf0]  ;;  %v1417_v18 = vor.u32 %v1600_v10, %v1414_v12  ;;  %v1342_v21 = vld [vmem:[%s2097_s1 + $0x48] sm:$0xf0] }
  0xac   : > { %996 = vmatpush.bf16.msra.mxu1 %v1373_v42  ;;  %v1632_v15 = vld [vmem:[%s2097_s1 + $0x1d4] sm:$0xf]  ;;  %v1542_v16 = vld [vmem:[%s2097_s1 + $0x1d8] sm:$0xf0]  ;;  %v1481_v19 = vor.u32 %v1616_v13, %v1478_v14  ;;  %v1598_v22 = vld [vmem:[%s2097_s1 + $0xc4] sm:$0xf]  ;;  %v1345_v29 = vor.u32 %v1582_v20, %v1342_v21 }
  0xad   : > { %1010 = vmatpush.bf16.msra.mxu2 %v1437_v43  ;;  %v1545_v23 = vor.u32 %v1632_v15, %v1542_v16  ;;  %v1406_v24 = vld [vmem:[%s2097_s1 + $0xc8] sm:$0xf0]  ;;  %v1614_v25 = vld [vmem:[%s2097_s1 + $0x144] sm:$0xf]  ;;  %v1580_v32 = vld [vmem:[%s2097_s1 + $0x34] sm:$0xf] }
  0xae   : > { %1024 = vmatpush.bf16.msra.mxu3 %v1501_v48  ;;  %983 = vmatmul.bf16.vlgmr.msra.gmra.mxu0 %v2194_v3  ;;  %v1470_v26 = vld [vmem:[%s2097_s1 + $0x148] sm:$0xf0]  ;;  %v1630_v27 = vld [vmem:[%s2097_s1 + $0x1c4] sm:$0xf]  ;;  %v1409_v30 = vor.u32 %v1598_v22, %v1406_v24  ;;  %v1334_v33 = vld [vmem:[%s2097_s1 + $0x38] sm:$0xf0] }
  0xaf   : > { %1031 = vmatpush.bf16.msrb.mxu0 %v1369_v49  ;;  %997 = vmatmul.bf16.vlgmr.msra.gmra.mxu1 %v2196_v5  ;;  %v1534_v28 = vld [vmem:[%s2097_s1 + $0x1c8] sm:$0xf0]  ;;  %v1473_v31 = vor.u32 %v1614_v25, %v1470_v26  ;;  %v1596_v34 = vld [vmem:[%s2097_s1 + $0xb4] sm:$0xf]  ;;  %v1398_v36 = vld [vmem:[%s2097_s1 + $0xb8] sm:$0xf0]  ;;  %v1337_v41 = vor.u32 %v1580_v32, %v1334_v33 }
  0xb0   : > { %1045 = vmatpush.bf16.msrb.mxu1 %v1433_v54  ;;  %1011 = vmatmul.bf16.vlgmr.msra.gmra.mxu2 %v2185_v60  ;;  %v1537_v35 = vor.u32 %v1630_v27, %v1534_v28  ;;  %v1612_v37 = vld [vmem:[%s2097_s1 + $0x134] sm:$0xf]  ;;  %v1462_v38 = vld [vmem:[%s2097_s1 + $0x138] sm:$0xf0]  ;;  %v1401_v42 = vor.u32 %v1596_v34, %v1398_v36  ;;  %v1578_v44 = vld [vmem:[%s2097_s1 + $0x24] sm:$0xf] }
  0xb1   : > { %1059 = vmatpush.bf16.msrb.mxu2 %v1497_v55  ;;  %1025 = vmatmul.bf16.vlgmr.msra.gmra.mxu3 %v2192_v2  ;;  %v1628_v39 = vld [vmem:[%s2097_s1 + $0x1b4] sm:$0xf]  ;;  %v1526_v40 = vld [vmem:[%s2097_s1 + $0x1b8] sm:$0xf0]  ;;  %v1465_v43 = vor.u32 %v1612_v37, %v1462_v38  ;;  %v1326_v45 = vld [vmem:[%s2097_s1 + $0x28] sm:$0xf0] }
  0xb2   : > { %1073 = vmatpush.bf16.msrb.mxu3 %v1561_v59  ;;  %v1594_v46 = vld [vmem:[%s2097_s1 + $0xa4] sm:$0xf]  ;;  %v1529_v47 = vor.u32 %v1628_v39, %v1526_v40  ;;  %v1390_v48 = vld [vmem:[%s2097_s1 + $0xa8] sm:$0xf0]  ;;  %v1329_v53 = vor.u32 %v1578_v44, %v1326_v45  ;;  %v1576_v56 = vld [vmem:[%s2097_s1 + $0x14] sm:$0xf] }
  0xb3   : > { %1032 = vmatpush.bf16.msrb.mxu0 %v1361_v4  ;;  %v1610_v49 = vld [vmem:[%s2097_s1 + $0x124] sm:$0xf]  ;;  %v1454_v50 = vld [vmem:[%s2097_s1 + $0x128] sm:$0xf0]  ;;  %v1393_v54 = vor.u32 %v1594_v46, %v1390_v48  ;;  %v1318_v57 = vld [vmem:[%s2097_s1 + $0x18] sm:$0xf0] }
  0xb4   : > { %1046 = vmatpush.bf16.msrb.mxu1 %v1425_v6  ;;  %v1626_v51 = vld [vmem:[%s2097_s1 + $0x1a4] sm:$0xf]  ;;  %v1518_v52 = vld [vmem:[%s2097_s1 + $0x1a8] sm:$0xf0]  ;;  %v1457_v55 = vor.u32 %v1610_v49, %v1454_v50  ;;  %v1592_v58 = vld [vmem:[%s2097_s1 + $0x94] sm:$0xf]  ;;  %v1321_v4 = vor.u32 %v1576_v56, %v1318_v57 }
  0xb5   : > { %1060 = vmatpush.bf16.msrb.mxu2 %v1489_v7  ;;  %v1521_v59 = vor.u32 %v1626_v51, %v1518_v52  ;;  %v1382_v61 = vld [vmem:[%s2097_s1 + $0x98] sm:$0xf0]  ;;  %v1608_v62 = vld [vmem:[%s2097_s1 + $0x114] sm:$0xf]  ;;  %v1574_v8 = vld [vmem:[%s2097_s1 + $0x4] sm:$0xf] }
  0xb6   : > { %1074 = vmatpush.bf16.msrb.mxu3 %v1553_v11  ;;  %v1446_v63 = vld [vmem:[%s2097_s1 + $0x118] sm:$0xf0]  ;;  %v1624_v0 = vld [vmem:[%s2097_s1 + $0x194] sm:$0xf]  ;;  %v1385_v6 = vor.u32 %v1592_v58, %v1382_v61  ;;  %v1310_v9 = vld [vmem:[%s2097_s1 + $0x8] sm:$0xf0] }
  0xb7   : > { %1033 = vmatpush.bf16.msrb.mxu0 %v1353_v17  ;;  %v1510_v1 = vld [vmem:[%s2097_s1 + $0x198] sm:$0xf0]  ;;  %v1449_v7 = vor.u32 %v1608_v62, %v1446_v63  ;;  %v1590_v10 = vld [vmem:[%s2097_s1 + $0x84] sm:$0xf]  ;;  %v1374_v12 = vld [vmem:[%s2097_s1 + $0x88] sm:$0xf0]  ;;  %v1313_v17 = vor.u32 %v1574_v8, %v1310_v9 }
  0xb8   : > { %1047 = vmatpush.bf16.msrb.mxu1 %v1417_v18  ;;  %v1513_v11 = vor.u32 %v1624_v0, %v1510_v1  ;;  %v1606_v13 = vld [vmem:[%s2097_s1 + $0x104] sm:$0xf]  ;;  %v1438_v14 = vld [vmem:[%s2097_s1 + $0x108] sm:$0xf0]  ;;  %v1377_v18 = vor.u32 %v1590_v10, %v1374_v12  ;;  %v563_v27 = vld [vmem:[#allocation2 + $0x10] sm:$0xff]  ;;  %p1562_p5 = scmp.ne.s32.totalorder %s1798_s18, 7 }
  0xb9   : > { %1061 = vmatpush.bf16.msrb.mxu2 %v1481_v19  ;;  %v1622_v15 = vld [vmem:[%s2097_s1 + $0x184] sm:$0xf]  ;;  %v1502_v16 = vld [vmem:[%s2097_s1 + $0x188] sm:$0xf0]  ;;  %v1441_v19 = vor.u32 %v1606_v13, %v1438_v14  ;;  %v565_v34 = vld [vmem:[#allocation2 + $0x18] sm:$0xff] }
  0xba   : > { %1075 = vmatpush.bf16.msrb.mxu3 %v1545_v23  ;;  %v1505_v20 = vor.u32 %v1622_v15, %v1502_v16  ;;  %v566_v49 = vld [vmem:[#allocation2 + $0x8] sm:$0xff] }
  0xbb   : > { %1034 = vmatpush.bf16.msrb.mxu0 %v1345_v29 }
  0xbc   : > { %1048 = vmatpush.bf16.msrb.mxu1 %v1409_v30 }
  0xbd   : > { %1062 = vmatpush.bf16.msrb.mxu2 %v1473_v31 }
  0xbe   : > { %1076 = vmatpush.bf16.msrb.mxu3 %v1537_v35 }
  0xbf   : > { %1035 = vmatpush.bf16.msrb.mxu0 %v1337_v41  ;;  %v564_v41 = vld [vmem:[#allocation2] sm:$0xff] }
  0xc0   : > { %1049 = vmatpush.bf16.msrb.mxu1 %v1401_v42 }
  0xc1   : > { %1063 = vmatpush.bf16.msrb.mxu2 %v1465_v43 }
  0xc2   : > { %1077 = vmatpush.bf16.msrb.mxu3 %v1529_v47 }
  0xc3   : > { %1036 = vmatpush.bf16.msrb.mxu0 %v1329_v53 }
  0xc4   : > { %1050 = vmatpush.bf16.msrb.mxu1 %v1393_v54 }
  0xc5   : > { %1064 = vmatpush.bf16.msrb.mxu2 %v1457_v55 }
  0xc6   : > { %1078 = vmatpush.bf16.msrb.mxu3 %v1521_v59 }
  0xc7   : > { %1037 = vmatpush.bf16.msrb.mxu0 %v1321_v4 }
  0xc8   : > { %1051 = vmatpush.bf16.msrb.mxu1 %v1385_v6 }
  0xc9   : > { %1065 = vmatpush.bf16.msrb.mxu2 %v1449_v7 }
  0xca   : > { %1079 = vmatpush.bf16.msrb.mxu3 %v1513_v11 }
  0xcb   : > { %1038 = vmatpush.bf16.msrb.mxu0 %v1313_v17 }
  0xcc   : > { %1052 = vmatpush.bf16.msrb.mxu1 %v1377_v18 }
  0xcd   : > { %1066 = vmatpush.bf16.msrb.mxu2 %v1441_v19 }
  0xce   : > { %1080 = vmatpush.bf16.msrb.mxu3 %v1505_v20  ;;  %1039 = vmatmul.bf16.vlgmr.msrb.gmra.mxu0 %v2194_v3 }
  0xcf   : > { %1053 = vmatmul.bf16.vlgmr.msrb.gmra.mxu1 %v2196_v5 }
  0xd0   : > { %1067 = vmatmul.bf16.vlgmr.msrb.gmra.mxu2 %v2185_v60 }
  0xd1   : > { %1081 = vmatmul.bf16.vlgmr.msrb.gmra.mxu3 %v2192_v2 }
 0x12b   : > { %v984_v21 = vpop.f32.mrf.mxu0 }
 0x12c   : > { %v998_v22 = vpop.f32.mrf.mxu1 }
 0x12d   : > { %v999_v23 = vadd.f32 %v998_v22, %v984_v21 }
 0x133   : > { %v1012_v24 = vpop.f32.mrf.mxu2  ;;  %v986_v29 = vpop.f32.mrf.mxu0 }
 0x134   : > { %v1013_v25 = vadd.f32 %v1012_v24, %v999_v23  ;;  %v1026_v26 = vpop.f32.mrf.mxu3  ;;  %v1000_v30 = vpop.f32.mrf.mxu1 }
 0x135   : > { %v1001_v32 = vadd.f32 %v1000_v30, %v986_v29 }
 0x136   : > { %v1027_v28 = vadd.f32 %v1026_v26, %v1013_v25 }
 0x138   : > { %v1087_v31 = vadd.f32 %v1027_v28, %v563_v27 }
 0x13a   : > { %1091 = vst [vmem:[#allocation2 + $0x10] sm:$0xff] %v1087_v31 }
 0x13b   : > { %v1014_v3 = vpop.f32.mrf.mxu2 }
 0x13c   : > { %v1015_v33 = vadd.f32 %v1014_v3, %v1001_v32  ;;  %v1028_v5 = vpop.f32.mrf.mxu3 }
 0x13e   : > { %v1029_v60 = vadd.f32 %v1028_v5, %v1015_v33 }
 0x140   : > { %v1089_v35 = vadd.f32 %v1029_v60, %v565_v34 }
 0x142   : > { %1093 = vst [vmem:[#allocation2 + $0x18] sm:$0xff] %v1089_v35 }
 0x14b   : > { %v1040_v2 = vpop.f32.mrf.mxu0 }
 0x14c   : > { %v1054_v36 = vpop.f32.mrf.mxu1 }
 0x14d   : > { %v1055_v37 = vadd.f32 %v1054_v36, %v1040_v2 }
 0x153   : > { %v1068_v38 = vpop.f32.mrf.mxu2  ;;  %v1042_v43 = vpop.f32.mrf.mxu0 }
 0x154   : > { %v1069_v39 = vadd.f32 %v1068_v38, %v1055_v37  ;;  %v1082_v40 = vpop.f32.mrf.mxu3  ;;  %v1056_v44 = vpop.f32.mrf.mxu1 }
 0x155   : > { %v1057_v46 = vadd.f32 %v1056_v44, %v1042_v43 }
 0x156   : > { %v1083_v42 = vadd.f32 %v1082_v40, %v1069_v39 }
 0x158   : > { %v1088_v45 = vadd.f32 %v1083_v42, %v564_v41 }
 0x15a   : > { %1092 = vst [vmem:[#allocation2] sm:$0xff] %v1088_v45 }
 0x15b   : > { %v1070_v47 = vpop.f32.mrf.mxu2 }
 0x15c   : > { %v1071_v48 = vadd.f32 %v1070_v47, %v1057_v46  ;;  %v1084_v50 = vpop.f32.mrf.mxu3 }
 0x15e   : > { %v1085_v51 = vadd.f32 %v1084_v50, %v1071_v48  ;;  %1098 = sbr.rel (%p1562_p5) target bundleno = 368 (0x170), region = 101 }
 0x160   : > { %v1090_v52 = vadd.f32 %v1085_v51, %v566_v49 }
 0x162   : > { %1094 = vst [vmem:[#allocation2 + $0x8] sm:$0xff] %v1090_v52 }
 0x163   : > { %v1099_v53 = vld [vmem:[#allocation2 + $0x10] sm:$0xff]  ;;  %v1103_v54 = vld [vmem:[%s551_s5] sm:$0x3]  ;;  %v1101_v58 = vld [vmem:[#allocation2 + $0x18] sm:$0xff] }
 0x164   : > { %v1100_v55 = vld [vmem:[#allocation2] sm:$0xff]  ;;  %v1105_v56 = vperm.slane %v1103_v54, 0  ;;  %v1106_v57 = vperm.slane %v1103_v54, 1 }
 0x166   : > { %v1109_v61 = vadd.f32 %v1105_v56, %v1099_v53  ;;  %v1110_v62 = vadd.f32 %v1106_v57, %v1100_v55  ;;  %v1111_v63 = vadd.f32 %v1105_v56, %v1101_v58 }
 0x168   : > { %vm1113_vm0 = vcmp.gt.f32.partialorder %v1109_v61, 0.0  ;;  %v1117_v1 = vmul.f32 0.2, %v1109_v61  ;;  %vm1114_vm1 = vcmp.gt.f32.partialorder %v1110_v62, 0.0  ;;  %v1118_v4 = vmul.f32 0.2, %v1110_v62 }
 0x169   : > { %v1102_v59 = vld [vmem:[#allocation2 + $0x8] sm:$0xff]  ;;  %vm1115_vm2 = vcmp.gt.f32.partialorder %v1111_v63, 0.0  ;;  %v1119_v6 = vmul.f32 0.2, %v1111_v63 }
 0x16a   : > { %v1112_v0 = vadd.f32 %v1106_v57, %v1102_v59  ;;  %v1121_v8 = vsel %vm1113_vm0, %v1109_v61, %v1117_v1  ;;  %v1122_v9 = vsel %vm1114_vm1, %v1110_v62, %v1118_v4 }
 0x16b   : > { %1125 = vst [vmem:[%s2099_s25] sm:$0xff] %v1121_v8  ;;  %v1123_v10 = vsel %vm1115_vm2, %v1111_v63, %v1119_v6 }
 0x16c   : > { %vm1116_vm3 = vcmp.gt.f32.partialorder %v1112_v0, 0.0  ;;  %v1120_v7 = vmul.f32 0.2, %v1112_v0  ;;  %1126 = vst [vmem:[%s2099_s25 + $0x8] sm:$0xff] %v1122_v9 }
 0x16d   : > { %1127 = vst [vmem:[%s2099_s25 + $0x10] sm:$0xff] %v1123_v10 }
 0x16e   : > { %v1124_v11 = vsel %vm1116_vm3, %v1112_v0, %v1120_v7 }
 0x16f   : > { %1128 = vst [vmem:[%s2099_s25 + $0x18] sm:$0xff] %v1124_v11 }
 0x170 PF: > { %1135 = sbr.rel (!%p1931_p12) target bundleno = 376 (0x178), region = 105  ;;  %s1638_s14 = sshll.u32 (%p1931_p12), %s1802_s19, 4 }
 0x171   : > { %s1141_s0 = scalar_lea.vmem (%p1931_p12), %s2310_s3, %s1638_s14 }
 0x172   : > { %v1154_v12 = vld [vmem:[%s2099_s25] sm:$0xff] (%p1931_p12) }
 0x173   : > { %v1156_v13 = vld [vmem:[%s2099_s25 + $0x8] sm:$0xff] (%p1931_p12)  ;;  %1155 = vst [vmem:[%s1141_s0] sm:$0xff] (%p1931_p12), %v1154_v12 }
 0x174   : > { %v1158_v14 = vld [vmem:[%s2099_s25 + $0x10] sm:$0xff] (%p1931_p12)  ;;  %1157 = vst [vmem:[%s1141_s0 + $0x8] sm:$0xff] (%p1931_p12), %v1156_v13 }
 0x175   : > { %1159 = vst [vmem:[%s1141_s0 + $0x20] sm:$0xff] %v1158_v14 }
 0x176   : > { %v1160_v15 = vld [vmem:[%s2099_s25 + $0x18] sm:$0xff] }
 0x177   : > { %1161 = vst [vmem:[%s1141_s0 + $0x28] sm:$0xff] %v1160_v15 }
 0x178 PF: > { %s13_s22 = sadd.s32 1, %s1814_s22   ;;  %s2320_s10 = sld [smem:[#allocation6_spill]] }
 0x179   : > { %p10_p6 = scmp.ge.s32.totalorder %s13_s22, 18   ;;  %s2321_s12 = smov %s1778_s13 }
 0x17a   : > { %s2322_s13 = smov %s1929_s9  ;;  %s2323_s14 = smov %s1786_s15 }
 0x17b   : > { %s2324_s15 = smov %s1926_s8  ;;  %s2325_s16 = smov %s1794_s17 }
 0x17c   : > { %s2326_s17 = smov %s1912_s30  ;;  %s2327_s18 = smov %s1806_s20 }
 0x17d   : > { %s2328_s19 = smov %s1810_s21  ;;  %s2329_s20 = smov %s2332_s24 }
 0x17e   : > { %s2330_s21 = smov %s2320_s10  ;;  %12 = sbr.rel (!%p10_p6) target bundleno = 9 (0x9), region = 170 }

// kernel: discriminator_forward.9
= control target key start
LH: loop header
LB: loop body
LE: loop exit
PB: predicated region body
PF: predicated region fallthrough
CT: control target
= control target key end

     0   :  { %vm704_vm0 = vcmask 7168   ;;  %s1437_s1 = inlined_call_operand.vmem [shape: bf16[1,8192], index: 1, kind: input, shape index: {}]   ;;  %s1438_s0 = inlined_call_operand.vmem [shape: bf16[16,8192], index: 0, kind: input, shape index: {}]   ;;  %s1439_s2 = inlined_call_operand.<no memory space> [shape: f32[1,1], index: 2, kind: input, shape index: {}]   ;;  %s1440_s3 = inlined_call_operand.vmem [shape: f32[16,1], index: 3, kind: output, shape index: {}]  }
   0x1   :  { %v208_v0 = vld [vmem:[%s1437_s1] sm:$0xff]  ;;  %v17_v7 = vld [vmem:[%s1438_s0 + $0x8] sm:$0xff]  ;;  %v18_v13 = vld [vmem:[%s1438_s0 + $0x10] sm:$0xff] }
   0x2   :  { %v216_v1 = vunpack.c.l.bf16 %v208_v0  ;;  %v16_v2 = vld [vmem:[%s1438_s0] sm:$0xff]  ;;  %v217_v5 = vunpack.c.h.bf16 %v208_v0  ;;  %v751_v14 = vld [vmem:[%s1438_s0 + $0x18] sm:$0xff]  ;;  %v82_v15 = vunpack.c.l.bf16 %v17_v7  ;;  %v83_v18 = vunpack.c.h.bf16 %v17_v7  ;;  %v209_v19 = vld [vmem:[%s1437_s1 + $0x8] sm:$0xff] }
   0x3   :  { %v80_v8 = vunpack.c.l.bf16 %v16_v2  ;;  %v81_v9 = vunpack.c.h.bf16 %v16_v2  ;;  %v761_v20 = vld [vmem:[%s1438_s0 + $0x20] sm:$0xff]  ;;  %v766_v21 = vld [vmem:[%s1438_s0 + $0x28] sm:$0xff]  ;;  %v84_v26 = vunpack.c.l.bf16 %v18_v13  ;;  %v85_v27 = vunpack.c.h.bf16 %v18_v13  ;;  %v777_v30 = vld [vmem:[%s1438_s0 + $0x30] sm:$0xff] }
   0x4   :  { %v248_v3 = vperm.slane %v216_v1, 0  ;;  %v249_v4 = vperm.slane %v216_v1, 2  ;;  %v250_v6 = vperm.slane %v216_v1, 4  ;;  %v251_v10 = vperm.slane %v216_v1, 6  ;;  %v782_v31 = vld [vmem:[%s1438_s0 + $0x38] sm:$0xff]  ;;  %v796_v40 = vld [vmem:[%s1438_s0 + $0x40] sm:$0xff] }
   0x5   :  { %v252_v16 = vperm.slane %v217_v5, 0  ;;  %v253_v22 = vperm.slane %v217_v5, 2  ;;  %v86_v28 = vunpack.c.l.bf16 %v751_v14  ;;  %v87_v29 = vunpack.c.h.bf16 %v751_v14  ;;  %v48_v45 = vld [vmem:[%s1438_s0 + $0x100] sm:$0xff]  ;;  %v811_v50 = vld [vmem:[%s1438_s0 + $0x48] sm:$0xff]  ;;  %v825_v60 = vld [vmem:[%s1438_s0 + $0x50] sm:$0xff] }
   0x6   :  { %v741_v11 = vperm.slane %v248_v3, 0  ;;  %v743_v12 = vperm.slane %v249_v4, 0  ;;  %v753_v17 = vperm.slane %v250_v6, 0  ;;  %v768_v23 = vperm.slane %v251_v10, 0  ;;  %v49_v55 = vld [vmem:[%s1438_s0 + $0x108] sm:$0xff]  ;;  %v50_v10 = vld [vmem:[%s1438_s0 + $0x110] sm:$0xff] }
   0x7   :  { %v784_v32 = vunpack.c.l.bf16 %v209_v19  ;;  %v254_v33 = vperm.slane %v217_v5, 4  ;;  %v786_v34 = vperm.slane %v252_v16, 0  ;;  %v88_v36 = vunpack.c.l.bf16 %v761_v20 }
   0x8   :  { %v440_v24 = vmul.f32 %v741_v11, %v80_v8  ;;  %v441_v25 = vmul.f32 %v743_v12, %v81_v9  ;;  %v442_v35 = vmul.f32 %v753_v17, %v82_v15  ;;  %v89_v37 = vunpack.c.h.bf16 %v761_v20  ;;  %v52_v20 = vld [vmem:[%s1438_s0 + $0x120] sm:$0xff] }
   0x9   :  { %v90_v38 = vunpack.c.l.bf16 %v766_v21  ;;  %v91_v39 = vunpack.c.h.bf16 %v766_v21  ;;  %v255_v41 = vperm.slane %v217_v5, 6  ;;  %v798_v42 = vperm.slane %v253_v22, 0  ;;  %v838_v5 = vld [vmem:[%s1438_s0 + $0x58] sm:$0xff]  ;;  %v53_v21 = vld [vmem:[%s1438_s0 + $0x128] sm:$0xff] }
   0xa   :  { %v443_v43 = vmul.f32 %v768_v23, %v83_v18  ;;  %v568_v44 = vadd.f32 %v441_v25, %v440_v24  ;;  %v92_v46 = vunpack.c.l.bf16 %v777_v30  ;;  %v93_v47 = vunpack.c.h.bf16 %v777_v30 }
   0xb   :  { %v94_v48 = vunpack.c.l.bf16 %v782_v31  ;;  %v95_v49 = vunpack.c.h.bf16 %v782_v31  ;;  %v256_v51 = vperm.slane %v784_v32, 0  ;;  %v814_v52 = vperm.slane %v254_v33, 0 }
   0xc   :  { %v444_v53 = vmul.f32 %v786_v34, %v84_v26  ;;  %v569_v54 = vadd.f32 %v568_v44, %v442_v35  ;;  %v96_v56 = vunpack.c.l.bf16 %v796_v40  ;;  %v97_v57 = vunpack.c.h.bf16 %v796_v40  ;;  %v56_v40 = vld [vmem:[%s1438_s0 + $0x140] sm:$0xff] }
   0xd   :  { %v144_v58 = vunpack.c.l.bf16 %v48_v45  ;;  %v145_v59 = vunpack.c.h.bf16 %v48_v45  ;;  %v257_v61 = vperm.slane %v784_v32, 2  ;;  %v828_v62 = vperm.slane %v255_v41, 0  ;;  %v872_v45 = vld [vmem:[%s1438_s0 + $0x60] sm:$0xff] }
   0xe   :  { %v445_v63 = vmul.f32 %v798_v42, %v85_v27  ;;  %v570_v0 = vadd.f32 %v569_v54, %v443_v43  ;;  %v98_v1 = vunpack.c.l.bf16 %v811_v50  ;;  %v99_v2 = vunpack.c.h.bf16 %v811_v50  ;;  %v57_v50 = vld [vmem:[%s1438_s0 + $0x148] sm:$0xff] }
   0xf   :  { %v833_v3 = vunpack.c.h.bf16 %v209_v19  ;;  %v146_v4 = vunpack.c.l.bf16 %v49_v55  ;;  %v258_v6 = vperm.slane %v784_v32, 4  ;;  %v841_v7 = vperm.slane %v256_v51, 0 }
  0x10   :  { %v446_v8 = vmul.f32 %v814_v52, %v86_v28  ;;  %v571_v9 = vadd.f32 %v570_v0, %v444_v53  ;;  %v100_v13 = vunpack.c.l.bf16 %v825_v60  ;;  %v147_v14 = vunpack.c.h.bf16 %v49_v55 }
  0x11   :  { %v504_v15 = vmul.f32 %v741_v11, %v144_v58  ;;  %v505_v16 = vmul.f32 %v743_v12, %v145_v59  ;;  %v259_v18 = vperm.slane %v784_v32, 6  ;;  %v851_v19 = vperm.slane %v257_v61, 0  ;;  %v210_v11 = vld [vmem:[%s1437_s1 + $0x10] sm:$0xff] }
  0x12   :  { %v447_v22 = vmul.f32 %v828_v62, %v87_v29  ;;  %v572_v24 = vadd.f32 %v571_v9, %v445_v63  ;;  %v101_v25 = vunpack.c.h.bf16 %v825_v60  ;;  %v102_v26 = vunpack.c.l.bf16 %v838_v5  ;;  %v51_v29 = vld [vmem:[%s1438_s0 + $0x118] sm:$0xff]  ;;  %v897_v9 = vld [vmem:[%s1438_s0 + $0x68] sm:$0xff] }
  0x13   :  { %v148_v27 = vunpack.c.l.bf16 %v50_v10  ;;  %v506_v28 = vmul.f32 %v753_v17, %v146_v4  ;;  %v260_v12 = vperm.slane %v833_v3, 0  ;;  %v861_v33 = vperm.slane %v258_v6, 0 }
  0x14   :  { %v448_v32 = vmul.f32 %v841_v7, %v88_v36  ;;  %v573_v35 = vadd.f32 %v572_v24, %v446_v8  ;;  %v103_v41 = vunpack.c.h.bf16 %v838_v5  ;;  %v149_v43 = vunpack.c.h.bf16 %v50_v10 }
  0x15   :  { %v507_v17 = vmul.f32 %v768_v23, %v147_v14  ;;  %v633_v44 = vadd.f32 %v505_v16, %v504_v15  ;;  %v261_v51 = vperm.slane %v833_v3, 2  ;;  %v875_v53 = vperm.slane %v259_v18, 0 }
  0x16   :  { %v449_v36 = vmul.f32 %v851_v19, %v89_v37  ;;  %v574_v54 = vadd.f32 %v573_v35, %v447_v22  ;;  %v880_v55 = vunpack.c.l.bf16 %v210_v11  ;;  %v150_v58 = vunpack.c.l.bf16 %v51_v29 }
  0x17   :  { %v508_v23 = vmul.f32 %v786_v34, %v148_v27  ;;  %v634_v59 = vadd.f32 %v633_v44, %v506_v28  ;;  %v262_v61 = vperm.slane %v833_v3, 4  ;;  %v884_v63 = vperm.slane %v260_v12, 0 }
  0x18   :  { %v450_v0 = vmul.f32 %v861_v33, %v90_v38  ;;  %v575_v4 = vadd.f32 %v574_v54, %v448_v32  ;;  %v104_v37 = vunpack.c.l.bf16 %v872_v45  ;;  %v151_v6 = vunpack.c.h.bf16 %v51_v29 }
  0x19   :  { %v509_v8 = vmul.f32 %v798_v42, %v149_v43  ;;  %v635_v34 = vadd.f32 %v634_v59, %v507_v17  ;;  %v263_v10 = vperm.slane %v833_v3, 6  ;;  %v900_v14 = vperm.slane %v261_v51, 0 }
  0x1a   :  { %v451_v38 = vmul.f32 %v875_v53, %v91_v39  ;;  %v576_v15 = vadd.f32 %v575_v4, %v449_v36  ;;  %v105_v16 = vunpack.c.h.bf16 %v872_v45  ;;  %v152_v18 = vunpack.c.l.bf16 %v52_v20  ;;  %v60_v45 = vld [vmem:[%s1438_s0 + $0x160] sm:$0xff] }
  0x1b   :  { %v510_v42 = vmul.f32 %v814_v52, %v150_v58  ;;  %v636_v22 = vadd.f32 %v635_v34, %v508_v23  ;;  %v264_v24 = vperm.slane %v880_v55, 0  ;;  %v908_v27 = vperm.slane %v262_v61, 0 }
  0x1c   :  { %v452_v3 = vmul.f32 %v884_v63, %v92_v46  ;;  %v577_v28 = vadd.f32 %v576_v15, %v450_v0  ;;  %v106_v39 = vunpack.c.l.bf16 %v897_v9  ;;  %v153_v12 = vunpack.c.h.bf16 %v52_v20  ;;  %v55_v15 = vld [vmem:[%s1438_s0 + $0x138] sm:$0xff] }
  0x1d   :  { %v511_v32 = vmul.f32 %v828_v62, %v151_v6  ;;  %v637_v52 = vadd.f32 %v636_v22, %v509_v8  ;;  %v265_v35 = vperm.slane %v880_v55, 2  ;;  %v919_v29 = vperm.slane %v263_v10, 0  ;;  %v930_v62 = vld [vmem:[%s1438_s0 + $0x70] sm:$0xff] }
  0x1e   :  { %v453_v43 = vmul.f32 %v900_v14, %v93_v47  ;;  %v578_v46 = vadd.f32 %v577_v28, %v451_v38  ;;  %v924_v17 = vunpack.c.h.bf16 %v210_v11  ;;  %v154_v44 = vunpack.c.l.bf16 %v53_v21  ;;  %v54_v11 = vld [vmem:[%s1438_s0 + $0x130] sm:$0xff] }
  0x1f   :  { %v512_v51 = vmul.f32 %v841_v7, %v152_v18  ;;  %v638_v36 = vadd.f32 %v637_v52, %v510_v42  ;;  %v266_v54 = vperm.slane %v880_v55, 4  ;;  %v933_v58 = vperm.slane %v264_v24, 0  ;;  %v968_v24 = vld [vmem:[%s1438_s0 + $0x78] sm:$0xff] }
  0x20   :  { %v454_v30 = vmul.f32 %v908_v27, %v94_v48  ;;  %v579_v47 = vadd.f32 %v578_v46, %v452_v3  ;;  %v107_v7 = vunpack.c.h.bf16 %v897_v9  ;;  %v155_v23 = vunpack.c.h.bf16 %v53_v21  ;;  %v61_v9 = vld [vmem:[%s1438_s0 + $0x168] sm:$0xff] }
  0x21   :  { %v513_v59 = vmul.f32 %v851_v19, %v153_v12  ;;  %v639_v61 = vadd.f32 %v638_v36, %v511_v32  ;;  %v267_v0 = vperm.slane %v880_v55, 6  ;;  %v944_v4 = vperm.slane %v265_v35, 0  ;;  %v211_v19 = vld [vmem:[%s1437_s1 + $0x18] sm:$0xff] }
  0x22   :  { %v455_v20 = vmul.f32 %v919_v29, %v95_v49  ;;  %v580_v48 = vadd.f32 %v579_v47, %v453_v43  ;;  %v108_v6 = vunpack.c.l.bf16 %v930_v62  ;;  %v156_v8 = vunpack.c.l.bf16 %v54_v11 }
  0x23   :  { %v514_v34 = vmul.f32 %v861_v33, %v154_v44  ;;  %v640_v10 = vadd.f32 %v639_v61, %v512_v51  ;;  %v268_v38 = vperm.slane %v924_v17, 0  ;;  %v955_v55 = vperm.slane %v266_v54, 0  ;;  %v993_v54 = vld [vmem:[%s1438_s0 + $0x80] sm:$0xff] }
  0x24   :  { %v456_v31 = vmul.f32 %v933_v58, %v96_v56  ;;  %v581_v49 = vadd.f32 %v580_v48, %v454_v30  ;;  %v109_v33 = vunpack.c.h.bf16 %v930_v62  ;;  %v157_v18 = vunpack.c.h.bf16 %v54_v11 }
  0x25   :  { %v515_v42 = vmul.f32 %v875_v53, %v155_v23  ;;  %v641_v22 = vadd.f32 %v640_v10, %v513_v59  ;;  %v269_v3 = vperm.slane %v924_v17, 2  ;;  %v971_v28 = vperm.slane %v267_v0, 0 }
  0x26   :  { %v457_v56 = vmul.f32 %v944_v4, %v97_v57  ;;  %v582_v21 = vadd.f32 %v581_v49, %v455_v20  ;;  %v976_v12 = vunpack.c.l.bf16 %v211_v19  ;;  %v158_v32 = vunpack.c.l.bf16 %v55_v15 }
  0x27   :  { %v516_v53 = vmul.f32 %v884_v63, %v156_v8  ;;  %v642_v52 = vadd.f32 %v641_v22, %v514_v34  ;;  %v270_v35 = vperm.slane %v924_v17, 4  ;;  %v980_v43 = vperm.slane %v268_v38, 0 }
  0x28   :  { %v458_v46 = vmul.f32 %v955_v55, %v98_v1  ;;  %v583_v44 = vadd.f32 %v582_v21, %v456_v31  ;;  %v110_v57 = vunpack.c.l.bf16 %v968_v24  ;;  %v159_v51 = vunpack.c.h.bf16 %v55_v15 }
  0x29   :  { %v517_v36 = vmul.f32 %v900_v14, %v157_v18  ;;  %v643_v63 = vadd.f32 %v642_v52, %v515_v42  ;;  %v271_v30 = vperm.slane %v924_v17, 6  ;;  %v996_v47 = vperm.slane %v269_v3, 0 }
  0x2a   :  { %v459_v1 = vmul.f32 %v971_v28, %v99_v2  ;;  %v584_v11 = vadd.f32 %v583_v44, %v457_v56  ;;  %v111_v23 = vunpack.c.h.bf16 %v968_v24  ;;  %v160_v59 = vunpack.c.l.bf16 %v56_v40 }
  0x2b   :  { %v518_v14 = vmul.f32 %v908_v27, %v158_v32  ;;  %v644_v61 = vadd.f32 %v643_v63, %v516_v53  ;;  %v272_v0 = vperm.slane %v976_v12, 0  ;;  %v1004_v20 = vperm.slane %v270_v35, 0  ;;  %v59_v63 = vld [vmem:[%s1438_s0 + $0x158] sm:$0xff] }
  0x2c   :  { %v460_v17 = vmul.f32 %v980_v43, %v100_v13  ;;  %v585_v48 = vadd.f32 %v584_v11, %v458_v46  ;;  %v112_v2 = vunpack.c.l.bf16 %v993_v54  ;;  %v161_v8 = vunpack.c.h.bf16 %v56_v40 }
  0x2d   :  { %v519_v34 = vmul.f32 %v919_v29, %v159_v51  ;;  %v645_v27 = vadd.f32 %v644_v61, %v517_v36  ;;  %v273_v10 = vperm.slane %v976_v12, 2  ;;  %v1015_v38 = vperm.slane %v271_v30, 0  ;;  %v1026_v29 = vld [vmem:[%s1438_s0 + $0x88] sm:$0xff] }
  0x2e   :  { %v461_v31 = vmul.f32 %v996_v47, %v101_v25  ;;  %v586_v13 = vadd.f32 %v585_v48, %v459_v1  ;;  %v1020_v49 = vunpack.c.h.bf16 %v211_v19  ;;  %v162_v15 = vunpack.c.l.bf16 %v57_v50  ;;  %v58_v19 = vld [vmem:[%s1438_s0 + $0x150] sm:$0xff] }
  0x2f   :  { %v520_v18 = vmul.f32 %v933_v58, %v160_v59  ;;  %v646_v42 = vadd.f32 %v645_v27, %v518_v14  ;;  %v274_v22 = vperm.slane %v976_v12, 4  ;;  %v1029_v3 = vperm.slane %v272_v0, 0  ;;  %v1064_v59 = vld [vmem:[%s1438_s0 + $0x90] sm:$0xff] }
  0x30   :  { %v462_v60 = vmul.f32 %v1004_v20, %v102_v26  ;;  %v587_v25 = vadd.f32 %v586_v13, %v460_v17  ;;  %v113_v58 = vunpack.c.h.bf16 %v993_v54  ;;  %v163_v56 = vunpack.c.h.bf16 %v57_v50  ;;  %v64_v54 = vld [vmem:[%s1438_s0 + $0x180] sm:$0xff] }
  0x31   :  { %v521_v21 = vmul.f32 %v944_v4, %v161_v8  ;;  %v647_v32 = vadd.f32 %v646_v42, %v519_v34  ;;  %v275_v53 = vperm.slane %v976_v12, 6  ;;  %v1040_v52 = vperm.slane %v273_v10, 0  ;;  %v212_v4 = vld [vmem:[%s1437_s1 + $0x20] sm:$0xff] }
  0x32   :  { %v463_v35 = vmul.f32 %v1015_v38, %v103_v41  ;;  %v588_v26 = vadd.f32 %v587_v25, %v461_v31  ;;  %v114_v46 = vunpack.c.l.bf16 %v1026_v29  ;;  %v164_v44 = vunpack.c.l.bf16 %v58_v19 }
  0x33   :  { %v522_v40 = vmul.f32 %v955_v55, %v162_v15  ;;  %v648_v51 = vadd.f32 %v647_v32, %v520_v18  ;;  %v276_v36 = vperm.slane %v1020_v49, 0  ;;  %v1051_v12 = vperm.slane %v274_v22, 0  ;;  %v1089_v15 = vld [vmem:[%s1438_s0 + $0x98] sm:$0xff] }
  0x34   :  { %v464_v5 = vmul.f32 %v1029_v3, %v104_v37  ;;  %v589_v41 = vadd.f32 %v588_v26, %v462_v60  ;;  %v115_v55 = vunpack.c.h.bf16 %v1026_v29  ;;  %v165_v30 = vunpack.c.h.bf16 %v58_v19  ;;  %v65_v29 = vld [vmem:[%s1438_s0 + $0x188] sm:$0xff] }
  0x35   :  { %v523_v1 = vmul.f32 %v971_v28, %v163_v56  ;;  %v649_v11 = vadd.f32 %v648_v51, %v521_v21  ;;  %v277_v14 = vperm.slane %v1020_v49, 2  ;;  %v1067_v61 = vperm.slane %v275_v53, 0 }
  0x36   :  { %v465_v37 = vmul.f32 %v1040_v52, %v105_v16  ;;  %v590_v0 = vadd.f32 %v589_v41, %v463_v35  ;;  %v1072_v17 = vunpack.c.l.bf16 %v212_v4  ;;  %v166_v48 = vunpack.c.l.bf16 %v59_v63 }
  0x37   :  { %v524_v28 = vmul.f32 %v980_v43, %v164_v44  ;;  %v650_v50 = vadd.f32 %v649_v11, %v522_v40  ;;  %v278_v8 = vperm.slane %v1020_v49, 4  ;;  %v1076_v34 = vperm.slane %v276_v36, 0 }
  0x38   :  { %v466_v27 = vmul.f32 %v1051_v12, %v106_v39  ;;  %v591_v10 = vadd.f32 %v590_v0, %v464_v5  ;;  %v116_v16 = vunpack.c.l.bf16 %v1064_v59  ;;  %v167_v31 = vunpack.c.h.bf16 %v59_v63 }
  0x39   :  { %v525_v13 = vmul.f32 %v996_v47, %v165_v30  ;;  %v651_v43 = vadd.f32 %v650_v50, %v523_v1  ;;  %v279_v18 = vperm.slane %v1020_v49, 6  ;;  %v1092_v42 = vperm.slane %v277_v14, 0 }
  0x3a   :  { %v467_v39 = vmul.f32 %v1067_v61, %v107_v7  ;;  %v592_v22 = vadd.f32 %v591_v10, %v465_v37  ;;  %v117_v60 = vunpack.c.h.bf16 %v1064_v59  ;;  %v168_v25 = vunpack.c.l.bf16 %v60_v45 }
  0x3b   :  { %v526_v47 = vmul.f32 %v1004_v20, %v166_v48  ;;  %v652_v19 = vadd.f32 %v651_v43, %v524_v28  ;;  %v280_v56 = vperm.slane %v1072_v17, 0  ;;  %v1100_v21 = vperm.slane %v278_v8, 0 }
  0x3c   :  { %v468_v49 = vmul.f32 %v1076_v34, %v108_v6  ;;  %v593_v32 = vadd.f32 %v592_v22, %v466_v27  ;;  %v118_v7 = vunpack.c.l.bf16 %v1089_v15  ;;  %v169_v53 = vunpack.c.h.bf16 %v60_v45  ;;  %v63_v45 = vld [vmem:[%s1438_s0 + $0x178] sm:$0xff] }
  0x3d   :  { %v527_v35 = vmul.f32 %v1015_v38, %v167_v31  ;;  %v653_v20 = vadd.f32 %v652_v19, %v525_v13  ;;  %v281_v26 = vperm.slane %v1072_v17, 2  ;;  %v1111_v44 = vperm.slane %v279_v18, 0  ;;  %v1122_v38 = vld [vmem:[%s1438_s0 + $0xa0] sm:$0xff]  ;;  %v1160_v18 = vld [vmem:[%s1438_s0 + $0xa8] sm:$0xff] }
  0x3e   :  { %v469_v40 = vmul.f32 %v1092_v42, %v109_v33  ;;  %v594_v6 = vadd.f32 %v593_v32, %v467_v39  ;;  %v1116_v51 = vunpack.c.h.bf16 %v212_v4  ;;  %v170_v36 = vunpack.c.l.bf16 %v61_v9  ;;  %v62_v4 = vld [vmem:[%s1438_s0 + $0x170] sm:$0xff] }
  0x3f   :  { %v528_v5 = vmul.f32 %v1029_v3, %v168_v25  ;;  %v654_v41 = vadd.f32 %v653_v20, %v526_v47  ;;  %v282_v63 = vperm.slane %v1072_v17, 4  ;;  %v1125_v30 = vperm.slane %v280_v56, 0 }
  0x40   :  { %v470_v62 = vmul.f32 %v1100_v21, %v110_v57  ;;  %v595_v33 = vadd.f32 %v594_v6, %v468_v49  ;;  %v119_v3 = vunpack.c.h.bf16 %v1089_v15  ;;  %v171_v1 = vunpack.c.h.bf16 %v61_v9 }
  0x41   :  { %v529_v11 = vmul.f32 %v1040_v52, %v169_v53  ;;  %v655_v14 = vadd.f32 %v654_v41, %v527_v35  ;;  %v283_v37 = vperm.slane %v1072_v17, 6  ;;  %v1136_v0 = vperm.slane %v281_v26, 0  ;;  %v213_v52 = vld [vmem:[%s1437_s1 + $0x28] sm:$0xff]  ;;  %v1185_v26 = vld [vmem:[%s1438_s0 + $0xb0] sm:$0xff] }
  0x42   :  { %v471_v48 = vmul.f32 %v1111_v44, %v111_v23  ;;  %v596_v57 = vadd.f32 %v595_v33, %v469_v40  ;;  %v120_v28 = vunpack.c.l.bf16 %v1122_v38  ;;  %v172_v50 = vunpack.c.l.bf16 %v62_v4 }
  0x43   :  { %v530_v8 = vmul.f32 %v1051_v12, %v170_v36  ;;  %v656_v27 = vadd.f32 %v655_v14, %v528_v5  ;;  %v284_v10 = vperm.slane %v1116_v51, 0  ;;  %v1147_v17 = vperm.slane %v282_v63, 0 }
  0x44   :  { %v472_v24 = vmul.f32 %v1125_v30, %v112_v2  ;;  %v597_v23 = vadd.f32 %v596_v57, %v470_v62  ;;  %v121_v12 = vunpack.c.h.bf16 %v1122_v38  ;;  %v173_v31 = vunpack.c.h.bf16 %v62_v4  ;;  %v68_v38 = vld [vmem:[%s1438_s0 + $0x1a0] sm:$0xff] }
  0x45   :  { %v531_v13 = vmul.f32 %v1067_v61, %v171_v1  ;;  %v657_v43 = vadd.f32 %v656_v27, %v529_v11  ;;  %v285_v39 = vperm.slane %v1116_v51, 2  ;;  %v1163_v22 = vperm.slane %v283_v37, 0 }
  0x46   :  { %v473_v2 = vmul.f32 %v1136_v0, %v113_v58  ;;  %v598_v25 = vadd.f32 %v597_v23, %v471_v48  ;;  %v1168_v47 = vunpack.c.l.bf16 %v213_v52  ;;  %v174_v19 = vunpack.c.l.bf16 %v63_v45 }
  0x47   :  { %v532_v61 = vmul.f32 %v1076_v34, %v172_v50  ;;  %v658_v56 = vadd.f32 %v657_v43, %v530_v8  ;;  %v286_v49 = vperm.slane %v1116_v51, 4  ;;  %v1172_v32 = vperm.slane %v284_v10, 0 }
  0x48   :  { %v474_v9 = vmul.f32 %v1147_v17, %v114_v46  ;;  %v599_v53 = vadd.f32 %v598_v25, %v472_v24  ;;  %v122_v58 = vunpack.c.l.bf16 %v1160_v18  ;;  %v175_v35 = vunpack.c.h.bf16 %v63_v45 }
  0x49   :  { %v533_v20 = vmul.f32 %v1092_v42, %v173_v31  ;;  %v659_v34 = vadd.f32 %v658_v56, %v531_v13  ;;  %v287_v40 = vperm.slane %v1116_v51, 6  ;;  %v1188_v6 = vperm.slane %v285_v39, 0 }
  0x4a   :  { %v475_v46 = vmul.f32 %v1163_v22, %v115_v55  ;;  %v600_v36 = vadd.f32 %v599_v53, %v473_v2  ;;  %v123_v5 = vunpack.c.h.bf16 %v1160_v18  ;;  %v176_v41 = vunpack.c.l.bf16 %v64_v54  ;;  %v69_v18 = vld [vmem:[%s1438_s0 + $0x1a8] sm:$0xff] }
  0x4b   :  { %v534_v42 = vmul.f32 %v1100_v21, %v174_v19  ;;  %v660_v63 = vadd.f32 %v659_v34, %v532_v61  ;;  %v288_v62 = vperm.slane %v1168_v47, 0  ;;  %v1196_v33 = vperm.slane %v286_v49, 0  ;;  %v67_v49 = vld [vmem:[%s1438_s0 + $0x198] sm:$0xff] }
  0x4c   :  { %v476_v51 = vmul.f32 %v1172_v32, %v116_v16  ;;  %v601_v4 = vadd.f32 %v600_v36, %v474_v9  ;;  %v124_v55 = vunpack.c.l.bf16 %v1185_v26  ;;  %v177_v1 = vunpack.c.h.bf16 %v64_v54 }
  0x4d   :  { %v535_v11 = vmul.f32 %v1111_v44, %v175_v35  ;;  %v661_v21 = vadd.f32 %v660_v63, %v533_v20  ;;  %v289_v14 = vperm.slane %v1168_v47, 2  ;;  %v1207_v37 = vperm.slane %v287_v40, 0  ;;  %v1218_v44 = vld [vmem:[%s1438_s0 + $0xb8] sm:$0xff]  ;;  %v1256_v35 = vld [vmem:[%s1438_s0 + $0xc0] sm:$0xff] }
  0x4e   :  { %v477_v48 = vmul.f32 %v1188_v6, %v117_v60  ;;  %v602_v16 = vadd.f32 %v601_v4, %v475_v46  ;;  %v1212_v57 = vunpack.c.h.bf16 %v213_v52  ;;  %v178_v50 = vunpack.c.l.bf16 %v65_v29  ;;  %v66_v52 = vld [vmem:[%s1438_s0 + $0x190] sm:$0xff] }
  0x4f   :  { %v536_v8 = vmul.f32 %v1125_v30, %v176_v41  ;;  %v662_v27 = vadd.f32 %v661_v21, %v534_v42  ;;  %v290_v10 = vperm.slane %v1168_v47, 4  ;;  %v1221_v24 = vperm.slane %v288_v62, 0 }
  0x50   :  { %v478_v59 = vmul.f32 %v1196_v33, %v118_v7  ;;  %v603_v60 = vadd.f32 %v602_v16, %v476_v51  ;;  %v125_v30 = vunpack.c.h.bf16 %v1185_v26  ;;  %v179_v23 = vunpack.c.h.bf16 %v65_v29 }
  0x51   :  { %v537_v45 = vmul.f32 %v1136_v0, %v177_v1  ;;  %v663_v31 = vadd.f32 %v662_v27, %v535_v11  ;;  %v291_v13 = vperm.slane %v1168_v47, 6  ;;  %v1232_v43 = vperm.slane %v289_v14, 0  ;;  %v214_v0 = vld [vmem:[%s1437_s1 + $0x30] sm:$0xff]  ;;  %v1281_v1 = vld [vmem:[%s1438_s0 + $0xc8] sm:$0xff] }
  0x52   :  { %v479_v39 = vmul.f32 %v1207_v37, %v119_v3  ;;  %v604_v7 = vadd.f32 %v603_v60, %v477_v48  ;;  %v126_v2 = vunpack.c.l.bf16 %v1218_v44  ;;  %v180_v25 = vunpack.c.l.bf16 %v66_v52 }
  0x53   :  { %v538_v19 = vmul.f32 %v1147_v17, %v178_v50  ;;  %v664_v61 = vadd.f32 %v663_v31, %v536_v8  ;;  %v292_v56 = vperm.slane %v1212_v57, 0  ;;  %v1243_v47 = vperm.slane %v290_v10, 0 }
  0x54   :  { %v480_v15 = vmul.f32 %v1221_v24, %v120_v28  ;;  %v605_v3 = vadd.f32 %v604_v7, %v478_v59  ;;  %v127_v17 = vunpack.c.h.bf16 %v1218_v44  ;;  %v181_v9 = vunpack.c.h.bf16 %v66_v52 }
  0x55   :  { %v539_v53 = vmul.f32 %v1163_v22, %v179_v23  ;;  %v665_v54 = vadd.f32 %v664_v61, %v537_v45  ;;  %v293_v20 = vperm.slane %v1212_v57, 2  ;;  %v1259_v34 = vperm.slane %v291_v13, 0 }
  0x56   :  { %v481_v28 = vmul.f32 %v1232_v43, %v121_v12  ;;  %v606_v40 = vadd.f32 %v605_v3, %v479_v39  ;;  %v1264_v46 = vunpack.c.l.bf16 %v214_v0  ;;  %v182_v36 = vunpack.c.l.bf16 %v67_v49  ;;  %v1312_v39 = vld [vmem:[%s1438_s0 + $0xd0] sm:$0xff] }
  0x57   :  { %v540_v22 = vmul.f32 %v1172_v32, %v180_v25  ;;  %v666_v41 = vadd.f32 %v665_v54, %v538_v19  ;;  %v294_v42 = vperm.slane %v1212_v57, 4  ;;  %v1268_v63 = vperm.slane %v292_v56, 0 }
  0x58   :  { %v482_v62 = vmul.f32 %v1243_v47, %v122_v58  ;;  %v607_v51 = vadd.f32 %v606_v40, %v480_v15  ;;  %v128_v12 = vunpack.c.l.bf16 %v1256_v35  ;;  %v183_v4 = vunpack.c.h.bf16 %v67_v49 }
  0x59   :  { %v541_v29 = vmul.f32 %v1188_v6, %v181_v9  ;;  %v667_v32 = vadd.f32 %v666_v41, %v539_v53  ;;  %v295_v11 = vperm.slane %v1212_v57, 6  ;;  %v1284_v21 = vperm.slane %v293_v20, 0  ;;  %v215_v20 = vld [vmem:[%s1437_s1 + $0x38] sm:$0xff] }
  0x5a   :  { %v483_v58 = vmul.f32 %v1259_v34, %v123_v5  ;;  %v608_v14 = vadd.f32 %v607_v51, %v481_v28  ;;  %v129_v48 = vunpack.c.h.bf16 %v1256_v35  ;;  %v184_v16 = vunpack.c.l.bf16 %v68_v38 }
  0x5b   :  { %v542_v6 = vmul.f32 %v1196_v33, %v182_v36  ;;  %v668_v50 = vadd.f32 %v667_v32, %v540_v22  ;;  %v296_v8 = vperm.slane %v1264_v46, 0  ;;  %v1292_v27 = vperm.slane %v294_v42, 0  ;;  %v43_v42 = vld [vmem:[%s1438_s0 + $0xd8] sm:$0xff] }
  0x5c   :  { %v484_v57 = vmul.f32 %v1268_v63, %v124_v55  ;;  %v609_v44 = vadd.f32 %v608_v14, %v482_v62  ;;  %v130_v5 = vunpack.c.l.bf16 %v1281_v1  ;;  %v185_v10 = vunpack.c.h.bf16 %v68_v38 }
  0x5d   :  { %v543_v59 = vmul.f32 %v1207_v37, %v183_v4  ;;  %v669_v33 = vadd.f32 %v668_v50, %v541_v29  ;;  %v297_v60 = vperm.slane %v1264_v46, 2  ;;  %v1303_v52 = vperm.slane %v295_v11, 0 }
  0x5e   :  { %v485_v23 = vmul.f32 %v1284_v21, %v125_v30  ;;  %v610_v26 = vadd.f32 %v609_v44, %v483_v58  ;;  %v1306_v45 = vunpack.c.h.bf16 %v214_v0  ;;  %v186_v55 = vunpack.c.l.bf16 %v69_v18  ;;  %v70_v30 = vld [vmem:[%s1438_s0 + $0x1b0] sm:$0xff] }
  0x5f   :  { %v544_v31 = vmul.f32 %v1221_v24, %v184_v16  ;;  %v670_v13 = vadd.f32 %v669_v33, %v542_v6  ;;  %v298_v37 = vperm.slane %v1264_v46, 4  ;;  %v1315_v7 = vperm.slane %v296_v8, 0  ;;  %v72_v16 = vld [vmem:[%s1438_s0 + $0x1c0] sm:$0xff] }
  0x60   :  { %v486_v25 = vmul.f32 %v1292_v27, %v126_v2  ;;  %v611_v19 = vadd.f32 %v610_v26, %v484_v57  ;;  %v131_v61 = vunpack.c.h.bf16 %v1281_v1  ;;  %v187_v24 = vunpack.c.h.bf16 %v69_v18 }
  0x61   :  { %v545_v0 = vmul.f32 %v1232_v43, %v185_v10  ;;  %v671_v56 = vadd.f32 %v670_v13, %v543_v59  ;;  %v299_v15 = vperm.slane %v1264_v46, 6  ;;  %v1324_v3 = vperm.slane %v297_v60, 0 }
  0x62   :  { %v487_v49 = vmul.f32 %v1303_v52, %v127_v17  ;;  %v612_v9 = vadd.f32 %v611_v19, %v485_v23  ;;  %v132_v2 = vunpack.c.l.bf16 %v1312_v39  ;;  %v188_v53 = vunpack.c.l.bf16 %v70_v30  ;;  %v71_v17 = vld [vmem:[%s1438_s0 + $0x1b8] sm:$0xff] }
  0x63   :  { %v546_v54 = vmul.f32 %v1243_v47, %v186_v55  ;;  %v672_v35 = vadd.f32 %v671_v56, %v544_v31  ;;  %v300_v43 = vperm.slane %v1306_v45, 0  ;;  %v1333_v28 = vperm.slane %v298_v37, 0 }
  0x64   :  { %v488_v40 = vmul.f32 %v1315_v7, %v128_v12  ;;  %v613_v46 = vadd.f32 %v612_v9, %v486_v25  ;;  %v133_v36 = vunpack.c.h.bf16 %v1312_v39  ;;  %v189_v22 = vunpack.c.h.bf16 %v70_v30 }
  0x65   :  { %v547_v47 = vmul.f32 %v1259_v34, %v187_v24  ;;  %v673_v41 = vadd.f32 %v672_v35, %v545_v0  ;;  %v301_v62 = vperm.slane %v1306_v45, 2  ;;  %v1345_v51 = vperm.slane %v299_v15, 0  ;;  %v45_v15 = vld [vmem:[%s1438_s0 + $0xe8] sm:$0xff] }
  0x66   :  { %v489_v38 = vmul.f32 %v1324_v3, %v129_v48  ;;  %v614_v12 = vadd.f32 %v613_v46, %v487_v49  ;;  %v1348_v4 = vunpack.c.l.bf16 %v215_v20  ;;  %v190_v29 = vunpack.c.l.bf16 %v71_v17 }
  0x67   :  { %v548_v32 = vmul.f32 %v1268_v63, %v188_v53  ;;  %v674_v1 = vadd.f32 %v673_v41, %v546_v54  ;;  %v302_v34 = vperm.slane %v1306_v45, 4  ;;  %v1352_v11 = vperm.slane %v300_v43, 0  ;;  %v44_v63 = vld [vmem:[%s1438_s0 + $0xe0] sm:$0xff]  ;;  %v74_v53 = vld [vmem:[%s1438_s0 + $0x1d0] sm:$0xff] }
  0x68   :  { %v490_v58 = vmul.f32 %v1333_v28, %v130_v5  ;;  %v615_v14 = vadd.f32 %v614_v12, %v488_v40  ;;  %v134_v6 = vunpack.c.l.bf16 %v43_v42  ;;  %v191_v48 = vunpack.c.h.bf16 %v71_v17 }
  0x69   :  { %v549_v50 = vmul.f32 %v1284_v21, %v189_v22  ;;  %v675_v8 = vadd.f32 %v674_v1, %v547_v47  ;;  %v303_v57 = vperm.slane %v1306_v45, 6  ;;  %v1363_v44 = vperm.slane %v301_v62, 0  ;;  %v73_v45 = vld [vmem:[%s1438_s0 + $0x1c8] sm:$0xff] }
  0x6a   :  { %v491_v18 = vmul.f32 %v1345_v51, %v131_v61  ;;  %v616_v5 = vadd.f32 %v615_v14, %v489_v38  ;;  %v135_v10 = vunpack.c.h.bf16 %v43_v42  ;;  %v192_v59 = vunpack.c.l.bf16 %v72_v16  ;;  %v46_v42 = vld [vmem:[%s1438_s0 + $0xf0] sm:$0xff] }
  0x6b   :  { %v550_v33 = vmul.f32 %v1292_v27, %v190_v29  ;;  %v676_v60 = vadd.f32 %v675_v8, %v548_v32  ;;  %v304_v23 = vperm.slane %v1348_v4, 0  ;;  %v1368_v21 = vperm.slane %v302_v34, 0 }
  0x6c   :  { %v492_v26 = vmul.f32 %v1352_v11, %v132_v2  ;;  %v617_v55 = vadd.f32 %v616_v5, %v490_v58  ;;  %v136_v31 = vunpack.c.l.bf16 %v44_v63  ;;  %v193_v13 = vunpack.c.h.bf16 %v72_v16 }
  0x6d   :  { %v551_v39 = vmul.f32 %v1303_v52, %v191_v48  ;;  %v677_v37 = vadd.f32 %v676_v60, %v549_v50  ;;  %v305_v25 = vperm.slane %v1348_v4, 2  ;;  %v1376_v27 = vperm.slane %v303_v57, 0 }
  0x6e   :  { %v493_v19 = vmul.f32 %v1363_v44, %v133_v36  ;;  %v618_v30 = vadd.f32 %v617_v55, %v491_v18  ;;  %v1379_v61 = vunpack.c.h.bf16 %v215_v20  ;;  %v194_v24 = vunpack.c.l.bf16 %v73_v45 }
  0x6f   :  { %v552_v0 = vmul.f32 %v1315_v7, %v192_v59  ;;  %v678_v56 = vadd.f32 %v677_v37, %v550_v33  ;;  %v306_v52 = vperm.slane %v1348_v4, 4  ;;  %v1386_v49 = vperm.slane %v304_v23, 0 }
  0x70   :  { %v494_v9 = vmul.f32 %v1368_v21, %v134_v6  ;;  %v619_v2 = vadd.f32 %v618_v30, %v492_v26  ;;  %v137_v54 = vunpack.c.h.bf16 %v44_v63  ;;  %v195_v35 = vunpack.c.h.bf16 %v73_v45 }
  0x71   :  { %v553_v7 = vmul.f32 %v1324_v3, %v193_v13  ;;  %v679_v20 = vadd.f32 %v678_v56, %v551_v39  ;;  %v307_v43 = vperm.slane %v1348_v4, 6  ;;  %v433_v40 = vperm.slane %v305_v25, 0  ;;  %v75_v4 = vld [vmem:[%s1438_s0 + $0x1d8] sm:$0xff] }
  0x72   :  { %v495_v46 = vmul.f32 %v1376_v27, %v135_v10  ;;  %v620_v17 = vadd.f32 %v619_v2, %v493_v19  ;;  %v138_v36 = vunpack.c.l.bf16 %v45_v15  ;;  %v196_v22 = vunpack.c.l.bf16 %v74_v53  ;;  %v47_v10 = vld [vmem:[%s1438_s0 + $0xf8] sm:$0xff] }
  0x73   :  { %v554_v47 = vmul.f32 %v1333_v28, %v194_v24  ;;  %v680_v41 = vadd.f32 %v679_v20, %v552_v0  ;;  %v308_v62 = vperm.slane %v1379_v61, 0  ;;  %v434_v38 = vperm.slane %v306_v52, 0  ;;  %v77_v24 = vld [vmem:[%s1438_s0 + $0x1e8] sm:$0xff] }
  0x74   :  { %v496_v3 = vmul.f32 %v1386_v49, %v136_v31  ;;  %v621_v12 = vadd.f32 %v620_v17, %v494_v9  ;;  %v139_v29 = vunpack.c.h.bf16 %v45_v15  ;;  %v197_v32 = vunpack.c.h.bf16 %v74_v53 }
  0x75   :  { %v555_v1 = vmul.f32 %v1345_v51, %v195_v35  ;;  %v681_v28 = vadd.f32 %v680_v41, %v553_v7  ;;  %v309_v34 = vperm.slane %v1379_v61, 2  ;;  %v435_v58 = vperm.slane %v307_v43, 0  ;;  %v76_v51 = vld [vmem:[%s1438_s0 + $0x1e0] sm:$0xff]  ;;  %v78_v7 = vld [vmem:[%s1438_s0 + $0x1f0] sm:$0xff] }
  0x76   :  { %v497_v14 = vmul.f32 %v433_v40, %v137_v54  ;;  %v622_v16 = vadd.f32 %v621_v12, %v495_v46  ;;  %v140_v6 = vunpack.c.l.bf16 %v46_v42  ;;  %v198_v48 = vunpack.c.l.bf16 %v75_v4 }
  0x77   :  { %v556_v50 = vmul.f32 %v1352_v11, %v196_v22  ;;  %v682_v8 = vadd.f32 %v681_v28, %v554_v47  ;;  %v310_v63 = vperm.slane %v1379_v61, 4  ;;  %v436_v57 = vperm.slane %v308_v62, 0 }
  0x78   :  { %v498_v18 = vmul.f32 %v434_v38, %v138_v36  ;;  %v623_v5 = vadd.f32 %v622_v16, %v496_v3  ;;  %v141_v59 = vunpack.c.h.bf16 %v46_v42  ;;  %v199_v33 = vunpack.c.h.bf16 %v75_v4 }
  0x79   :  { %v557_v60 = vmul.f32 %v1363_v44, %v197_v32  ;;  %v683_v23 = vadd.f32 %v682_v8, %v555_v1  ;;  %v311_v11 = vperm.slane %v1379_v61, 6  ;;  %v437_v26 = vperm.slane %v309_v34, 0 }
  0x7a   :  { %v499_v55 = vmul.f32 %v435_v58, %v139_v29  ;;  %v624_v45 = vadd.f32 %v623_v5, %v497_v14  ;;  %v200_v31 = vunpack.c.l.bf16 %v76_v51  ;;  %v558_v13 = vmul.f32 %v1368_v21, %v198_v48 }
  0x7b   :  { %v684_v39 = vadd.f32 %v683_v23, %v556_v50  ;;  %v142_v37 = vunpack.c.l.bf16 %v47_v10  ;;  %v438_v25 = vperm.slane %v310_v63, 0  ;;  %v500_v19 = vmul.f32 %v436_v57, %v140_v6 }
  0x7c   :  { %v625_v30 = vadd.f32 %v624_v45, %v498_v18  ;;  %v201_v0 = vunpack.c.h.bf16 %v76_v51  ;;  %v559_v44 = vmul.f32 %v1376_v27, %v199_v33  ;;  %v143_v61 = vunpack.c.h.bf16 %v47_v10 }
  0x7d   :  { %v685_v56 = vadd.f32 %v684_v39, %v557_v60  ;;  %v439_v15 = vperm.slane %v311_v11, 0  ;;  %v501_v52 = vmul.f32 %v437_v26, %v141_v59  ;;  %v202_v2 = vunpack.c.l.bf16 %v77_v24 }
  0x7e   :  { %v626_v9 = vadd.f32 %v625_v30, %v499_v55  ;;  %v560_v21 = vmul.f32 %v1386_v49, %v200_v31  ;;  %v502_v54 = vmul.f32 %v438_v25, %v142_v37  ;;  %v203_v20 = vunpack.c.h.bf16 %v77_v24  ;;  %v79_v49 = vld [vmem:[%s1438_s0 + $0x1f8] sm:$0xff] }
  0x7f   :  { %v686_v53 = vadd.f32 %v685_v56, %v558_v13  ;;  %v561_v43 = vmul.f32 %v433_v40, %v201_v0  ;;  %v503_v17 = vmul.f32 %v439_v15, %v143_v61  ;;  %v204_v36 = vunpack.c.l.bf16 %v78_v7 }
  0x80   :  { %v627_v35 = vadd.f32 %v626_v9, %v500_v19  ;;  %v562_v22 = vmul.f32 %v434_v38, %v202_v2  ;;  %v205_v42 = vunpack.c.h.bf16 %v78_v7  ;;  %v563_v62 = vmul.f32 %v435_v58, %v203_v20 }
  0x81   :  { %v687_v46 = vadd.f32 %v686_v53, %v559_v44  ;;  %v206_v4 = vunpack.c.l.bf16 %v79_v49  ;;  %v564_v29 = vmul.f32 %v436_v57, %v204_v36  ;;  %v207_v40 = vunpack.c.h.bf16 %v79_v49 }
  0x82   :  { %v628_v27 = vadd.f32 %v627_v35, %v501_v52  ;;  %v565_v1 = vmul.f32 %v437_v26, %v205_v42  ;;  %v8_v58 = vstv %s1439_s2 }
  0x83   :  { %v688_v47 = vadd.f32 %v687_v46, %v560_v21  ;;  %v566_v34 = vmul.f32 %v438_v25, %v206_v4  ;;  %v567_v38 = vmul.f32 %v439_v15, %v207_v40  ;;  %9 = vst [vmem:[#allocation2] sm:$0x1] %v8_v58 }
  0x84   :  { %v629_v41 = vadd.f32 %v628_v27, %v502_v54 }
  0x85   :  { %v689_v3 = vadd.f32 %v688_v47, %v561_v43 }
  0x86   :  { %v630_v12 = vadd.f32 %v629_v41, %v503_v17 }
  0x87   :  { %v690_v32 = vadd.f32 %v689_v3, %v562_v22 }
  0x88   :  { %631 = vadd.xlane.f32.xlu0 %v630_v12 }
  0x89   :  { %v691_v28 = vadd.f32 %v690_v32, %v563_v62 }
  0x8a   :  { %v711_v50 = vld [vmem:[#allocation2] ss:$0 sm:$0xff] }
  0x8b   :  { %v692_v14 = vadd.f32 %v691_v28, %v564_v29 }
  0x8d   :  { %v693_v16 = vadd.f32 %v692_v14, %v565_v1 }
  0x8f   :  { %v694_v6 = vadd.f32 %v693_v16, %v566_v34 }
  0x91   :  { %v695_v48 = vadd.f32 %v694_v6, %v567_v38 }
  0x93   :  { %696 = vadd.xlane.f32.xlu0 %v695_v48 }
  0xfb   :  { %v632_v8 = vpop.xlane.xlu0 %631 }
  0xfc   :  { %v702_v63 = vadd.f32 %v711_v50, %v632_v8 }
  0xfe   :  { %705 = vst.msk [vmem:[%s1440_s3] sm:$0xff] %vm704_vm0, %v702_v63 }
 0x106   :  { %v697_v57 = vpop.xlane.xlu0 %696 }
 0x107   :  { %v703_v18 = vadd.f32 %v711_v50, %v697_v57 }
 0x109   :  { %706 = vst.msk [vmem:[%s1440_s3 + $0x8] sm:$0xff] %vm704_vm0, %v703_v18 }

</bundles_post_ra>
